<compile_context>
chip_gen: v6e
topology: v6e:2x2x1
jax: 0.10.0
libtpu: 0.0.40
codegen_flags: <defaults>
</compile_context>

<pallas_src>
import functools

import jax
import jax.numpy as jnp
import numpy as np
from jax.experimental import pallas as pl
from jax.experimental.pallas import tpu as pltpu


def _round_up(x, m):
    return ((x + m - 1) // m) * m


# ----------------------------------------------------------------------------
# Fused kernel: LSTM stack (layer_num layers) + fc + softmax, one grid step
# handles one batch tile.
# ----------------------------------------------------------------------------
def _make_dkt_kernel(layer_num: int, unroll: int):
    def kernel(*refs):
        # ----- unpack refs: inputs, outputs, scratch -------------------------
        qa_ref = refs[0]                                     # (Bt, T, E) f32
        w_refs = refs[1:1 + 3 * layer_num]                   # per layer: wih_t, whh_t, bias
        idx = 1 + 3 * layer_num
        fcw_ref, fcb_ref, h0_ref, c0_ref = refs[idx:idx + 4]
        logits_ref, probs_ref, hT_ref, cT_ref = refs[idx + 4:idx + 8]
        xw_slab, hs_slab = refs[idx + 8:idx + 10]            # VMEM scratch

        Bt, T, E = qa_ref.shape
        Hp = h0_ref.shape[-1]                                # lane-padded hidden
        Op = fcw_ref.shape[-1]                               # lane-padded output
        mm_dtype = fcw_ref.dtype                             # f32 or bf16 matmul operands

        # ----- layer-0 input: batch-first -> time-major rows (VMEM resident) -
        x_bf = qa_ref[...]                                   # (Bt, T, E) f32
        x_tm = pltpu.einshape("bte->tbe", x_bf)              # (T, Bt, E)
        x_flat = x_tm.reshape(T * Bt, E).astype(mm_dtype)

        # ----- LSTM stack: layers statically unrolled, all fused --------------
        for l in range(layer_num):
            wih = w_refs[3 * l][...]                         # (in_dim, 4*Hp)
            whh = w_refs[3 * l + 1][...]                     # (Hp, 4*Hp)
            bias = w_refs[3 * l + 2][...]                    # (1, 4*Hp) f32

            if l > 0:
                # previous layer's hidden slab (time-major) is the new input
                x_flat = hs_slab[...].reshape(T * Bt, Hp).astype(mm_dtype)

            # Hoisted input projection: one big MXU matmul for all timesteps,
            # off the serial critical path; result lives in a VMEM scratch slab.
            xw = jnp.dot(x_flat, wih, preferred_element_type=jnp.float32) + bias
            xw_slab[...] = xw.reshape(T, Bt, 4 * Hp)

            # Serial recurrence: fori_loop bounds vreg live-ranges; per-step h
            # is written straight into the hidden slab (no concatenate copy).
            def step(t, carry):
                h, c = carry
                gates = xw_slab[t] + jnp.dot(h.astype(mm_dtype), whh,
                                             preferred_element_type=jnp.float32)
                # PyTorch gate order [i, f, g, o]; Hp multiple of 128 => each
                # slice is a whole-vreg lane block (no sub-lane masking).
                i_g = jax.nn.sigmoid(gates[:, 0 * Hp:1 * Hp])
                f_g = jax.nn.sigmoid(gates[:, 1 * Hp:2 * Hp])
                g_g = jnp.tanh(gates[:, 2 * Hp:3 * Hp])
                o_g = jax.nn.sigmoid(gates[:, 3 * Hp:4 * Hp])
                c_new = f_g * c + i_g * g_g
                h_new = o_g * jnp.tanh(c_new)
                hs_slab[t] = h_new
                return (h_new, c_new)

            h_fin, c_fin = jax.lax.fori_loop(
                0, T, step, (h0_ref[l], c0_ref[l]), unroll=unroll)

            hT_ref[l] = h_fin.astype(hT_ref.dtype)           # lane-dense (Bt, Hp) store
            cT_ref[l] = c_fin.astype(cT_ref.dtype)

        # ----- fused fc + softmax on the resident hidden-state slab ----------
        x_last = hs_slab[...].reshape(T * Bt, Hp).astype(mm_dtype)
        logits = jnp.dot(x_last, fcw_ref[...],
                         preferred_element_type=jnp.float32) + fcb_ref[...]   # (T*Bt, Op)
        m = jnp.max(logits, axis=-1, keepdims=True)
        e = jnp.exp(logits - m)
        probs = e / jnp.sum(e, axis=-1, keepdims=True)       # exact division (log-loss safe)

        logits_ref[...] = pltpu.einshape(
            "tbo->bto", logits.reshape(T, Bt, Op)).astype(logits_ref.dtype)
        probs_ref[...] = pltpu.einshape(
            "tbo->bto", probs.reshape(T, Bt, Op)).astype(probs_ref.dtype)

    return kernel


# ----------------------------------------------------------------------------
# Parameter construction / one-time layout preparation
# ----------------------------------------------------------------------------
def init_params(key, embed_dim, hidden_dim, layer_num, output_dim):
    """PyTorch-layout parameters (uniform(-k, k)); used by the pure-JAX reference."""
    params = {"lstm": [], "fc": None}
    k = 1.0 / np.sqrt(hidden_dim)
    for layer in range(layer_num):
        in_dim = embed_dim if layer == 0 else hidden_dim
        key, k1, k2, k3, k4 = jax.random.split(key, 5)
        w_ih = jax.random.uniform(k1, (4 * hidden_dim, in_dim), jnp.float32, -k, k)
        w_hh = jax.random.uniform(k2, (4 * hidden_dim, hidden_dim), jnp.float32, -k, k)
        b_ih = jax.random.uniform(k3, (4 * hidden_dim,), jnp.float32, -k, k)
        b_hh = jax.random.uniform(k4, (4 * hidden_dim,), jnp.float32, -k, k)
        params["lstm"].append((w_ih, w_hh, b_ih, b_hh))
    key, k1, k2 = jax.random.split(key, 3)
    fc_w = jax.random.uniform(k1, (output_dim, hidden_dim), jnp.float32, -k, k)
    fc_b = jax.random.uniform(k2, (output_dim,), jnp.float32, -k, k)
    params["fc"] = (fc_w, fc_b)
    return params


def prepare_pallas_params(params, matmul_dtype=jnp.float32):
    """ONE-TIME layout conversion + lane padding (not per forward call):
      * per-gate blocks padded to Hp (multiple of 128) so gate slices land on
        vreg lane boundaries; weights transposed to (in, 4*Hp) / (Hp, 4*Hp),
      * combined bias (1, 4*Hp) with zero-padded lanes,
      * fc head (Hp, Op) / (1, Op); padded fc-bias lanes = -1e9 so padded
        output columns vanish under softmax,
      * optional bf16 cast of matmul weights (gate/softmax math stays f32).
    Returns (pallas_params, dims) where dims holds the static unpadded sizes."""
    H = params["lstm"][0][1].shape[1]
    E = params["lstm"][0][0].shape[1]
    L = len(params["lstm"])
    Hp = _round_up(H, 128)

    def pack_gates(w, in_dim_p):
        # w: (4H, in_dim) -> (in_dim_p, 4*Hp), PyTorch gate order [i, f, g, o]
        gates = jnp.split(w, 4, axis=0)
        gates = [jnp.pad(g, ((0, Hp - H), (0, in_dim_p - g.shape[1]))) for g in gates]
        return jnp.transpose(jnp.concatenate(gates, axis=0))

    lstm = []
    for l, (w_ih, w_hh, b_ih, b_hh) in enumerate(params["lstm"]):
        in_p = E if l == 0 else Hp
        wih_t = pack_gates(w_ih, in_p).astype(matmul_dtype)
        whh_t = pack_gates(w_hh, Hp).astype(matmul_dtype)
        b = b_ih + b_hh
        b_pad = jnp.concatenate(
            [jnp.pad(g, (0, Hp - H)) for g in jnp.split(b, 4)]).reshape(1, -1)
        lstm.append((wih_t, whh_t, b_pad.astype(jnp.float32)))

    fc_w, fc_b = params["fc"]
    O = fc_w.shape[0]
    Op = _round_up(O, 128)
    fcw_t = jnp.pad(jnp.transpose(fc_w),
                    ((0, Hp - H), (0, Op - O))).astype(matmul_dtype)
    fcb = jnp.concatenate(
        [fc_b.astype(jnp.float32),
         jnp.full((Op - O,), -1e9, jnp.float32)]).reshape(1, -1)

    dims = dict(L=L, H=H, Hp=Hp, E=E, O=O, Op=Op)
    return {"lstm": lstm, "fc": (fcw_t, fcb)}, dims


# ----------------------------------------------------------------------------
# DKTTranslation forward (thin wrapper; batch-tiled grid, single kernel call)
# ----------------------------------------------------------------------------
def dkt_translation_forward(pallas_params, qa, state_in=None, *, dims):
    """qa: (B, T, embed_dim) float, batch-first (PyTorch convention)."""
    B, T, E = qa.shape
    L, H, Hp, O, Op = dims["L"], dims["H"], dims["Hp"], dims["O"], dims["Op"]
    lstm_params = pallas_params["lstm"]
    fcw_t, fcb_row = pallas_params["fc"]

    # Batch tiling: pad to sublane multiple; at scale use 128-row tiles so the
    # grid axis exists and the two v7x TensorCores split it.
    if B <= 128:
        Bp = _round_up(max(B, 8), 8)
        b_tile = Bp
    else:
        Bp = _round_up(B, 128)
        b_tile = 128
    pad_b = Bp - B
    grid = (Bp // b_tile,)

    qa_p = jnp.pad(qa.astype(jnp.float32), ((0, pad_b), (0, 0), (0, 0)))
    if state_in is None:
        h0 = jnp.zeros((L, Bp, Hp), jnp.float32)
        c0 = jnp.zeros((L, Bp, Hp), jnp.float32)
    else:
        h0 = jnp.pad(state_in[0].astype(jnp.float32),
                     ((0, 0), (0, pad_b), (0, Hp - H)))
        c0 = jnp.pad(state_in[1].astype(jnp.float32),
                     ((0, 0), (0, pad_b), (0, Hp - H)))

    flat_w = []
    for (wih_t, whh_t, b_row) in lstm_params:
        flat_w += [wih_t, whh_t, b_row]

    def full_spec(arr):
        nd = arr.ndim
        return pl.BlockSpec(arr.shape, lambda b: (0,) * nd)   # resident across tiles

    in_specs = [pl.BlockSpec((b_tile, T, E), lambda b: (b, 0, 0))]
    in_specs += [full_spec(w) for w in flat_w]
    in_specs += [full_spec(fcw_t), full_spec(fcb_row)]
    in_specs += [pl.BlockSpec((L, b_tile, Hp), lambda b: (0, b, 0)),
                 pl.BlockSpec((L, b_tile, Hp), lambda b: (0, b, 0))]

    out_specs = [pl.BlockSpec((b_tile, T, Op), lambda b: (b, 0, 0)),
                 pl.BlockSpec((b_tile, T, Op), lambda b: (b, 0, 0)),
                 pl.BlockSpec((L, b_tile, Hp), lambda b: (0, b, 0)),
                 pl.BlockSpec((L, b_tile, Hp), lambda b: (0, b, 0))]

    out_shape = [
        jax.ShapeDtypeStruct((Bp, T, Op), jnp.float32),   # logits (lane-padded)
        jax.ShapeDtypeStruct((Bp, T, Op), jnp.float32),   # probs  (lane-padded)
        jax.ShapeDtypeStruct((L, Bp, Hp), jnp.float32),   # final h per layer
        jax.ShapeDtypeStruct((L, Bp, Hp), jnp.float32),   # final c per layer
    ]

    scratch_shapes = [
        pltpu.VMEM((T, b_tile, 4 * Hp), jnp.float32),     # hoisted x @ W_ih^T + b
        pltpu.VMEM((T, b_tile, Hp), jnp.float32),         # per-layer hidden slab
    ]

    # ---- VMEM budget from actual buffer sizes, clamped to the HW ceiling ----
    w_bytes = sum(int(w.size) * w.dtype.itemsize for w in flat_w)
    w_bytes += int(fcw_t.size) * fcw_t.dtype.itemsize + int(fcb_row.size) * 4
    tiled_elems = (b_tile * T * E + 2 * L * b_tile * Hp            # qa, h0, c0 tiles
                   + 2 * b_tile * T * Op + 2 * L * b_tile * Hp)    # output tiles
    scratch_bytes = 4 * (T * b_tile * 4 * Hp + T * b_tile * Hp)
    need = 2 * (4 * tiled_elems) + 2 * w_bytes + scratch_bytes + (4 << 20)
    try:
        phys = int(pltpu.get_tpu_info().vmem_capacity_bytes)
    except Exception:
        phys = 64 * 1024 * 1024            # conservative (v7x per-TC physical)
    vmem_limit = int(min(max(need, 32 << 20), int(0.85 * phys)))

    unroll = int(min(T, 8))

    logits_p, probs_p, hT_p, cT_p = pl.pallas_call(
        _make_dkt_kernel(L, unroll),
        grid=grid,
        in_specs=in_specs,
        out_specs=out_specs,
        out_shape=out_shape,
        scratch_shapes=scratch_shapes,
        compiler_params=pltpu.CompilerParams(
            dimension_semantics=("parallel",),    # megacore-shard batch tiles (v7x)
            vmem_limit_bytes=vmem_limit),
    )(qa_p, *flat_w, fcw_t, fcb_row, h0, c0)

    return dict(
        logits=logits_p[:B, :, :O],
        probs=probs_p[:B, :, :O],
        state_out=(hT_p[:, :B, :H], cT_p[:, :B, :H]),
        last_qa=qa[:, -1:, :],
    )


# ----------------------------------------------------------------------------
# Pure-JAX reference (PyTorch-layout params) for the correctness check
# ----------------------------------------------------------------------------
def dkt_reference(params, qa):
    B, T, _ = qa.shape
    hidden_dim = params["lstm"][0][1].shape[1]
    x = qa.astype(jnp.float32)
    hT_list, cT_list = [], []
    for (w_ih, w_hh, b_ih, b_hh) in params["lstm"]:
        h0 = jnp.zeros((B, hidden_dim), jnp.float32)
        c0 = jnp.zeros((B, hidden_dim), jnp.float32)

        def step(carry, xt):
            h, c = carry
            gates = xt @ w_ih.T + b_ih + h @ w_hh.T + b_hh
            i, f, g, o = jnp.split(gates, 4, axis=-1)
            c = jax.nn.sigmoid(f) * c + jax.nn.sigmoid(i) * jnp.tanh(g)
            h = jax.nn.sigmoid(o) * jnp.tanh(c)
            return (h, c), h

        (hT, cT), hs = jax.lax.scan(step, (h0, c0), jnp.swapaxes(x, 0, 1))
        hT_list.append(hT)
        cT_list.append(cT)
        x = jnp.swapaxes(hs, 0, 1)

    fc_w, fc_b = params["fc"]
    logits = x @ fc_w.T + fc_b
    probs = jax.nn.softmax(logits, axis=-1)
    return dict(logits=logits, probs=probs,
                state_out=(jnp.stack(hT_list), jnp.stack(cT_list)),
                last_qa=qa[:, -1:, :])


if __name__ == "__main__":
    # Small shapes consistent with DKTTranslation.forward: qa is (B, T, embed_dim)
    B, T = 2, 8
    embed_dim, hidden_dim, layer_num, output_dim = 32, 32, 2, 32

    key = jax.random.PRNGKey(0)
    key, kp, kx = jax.random.split(key, 3)
    params = init_params(kp, embed_dim, hidden_dim, layer_num, output_dim)
    qa = jax.random.normal(kx, (B, T, embed_dim), jnp.float32)

    ref = dkt_reference(params, qa)

    # --- f32 matmul path (tight numerics; default on v5e) -------------------
    pp32, dims = prepare_pallas_params(params, matmul_dtype=jnp.float32)
    fwd = jax.jit(functools.partial(dkt_translation_forward, dims=dims))
    out = fwd(pp32, qa)
    jax.block_until_ready(out)

    np.testing.assert_allclose(np.asarray(out["logits"]), np.asarray(ref["logits"]),
                               rtol=1e-3, atol=1e-3)
    np.testing.assert_allclose(np.asarray(out["probs"]), np.asarray(ref["probs"]),
                               rtol=2e-3, atol=2e-3)
    np.testing.assert_allclose(np.asarray(out["state_out"][0]),
                               np.asarray(ref["state_out"][0]), rtol=1e-3, atol=1e-3)
    np.testing.assert_allclose(np.asarray(out["state_out"][1]),
                               np.asarray(ref["state_out"][1]), rtol=1e-3, atol=1e-3)

    assert out["logits"].shape == (B, T, output_dim)
    assert out["probs"].shape == (B, T, output_dim)
    assert out["last_qa"].shape == (B, 1, embed_dim)
    assert out["state_out"][0].shape == (layer_num, B, hidden_dim)
    assert out["state_out"][1].shape == (layer_num, B, hidden_dim)

    # --- bf16 matmul path (v6e/v7x MXU rate; gate/softmax math stays f32) ---
    pp_bf16, dims_bf16 = prepare_pallas_params(params, matmul_dtype=jnp.bfloat16)
    fwd_bf16 = jax.jit(functools.partial(dkt_translation_forward, dims=dims_bf16))
    out_bf16 = fwd_bf16(pp_bf16, qa)
    jax.block_until_ready(out_bf16)
    np.testing.assert_allclose(np.asarray(out_bf16["probs"]), np.asarray(ref["probs"]),
                               rtol=1e-1, atol=2e-2)
    np.testing.assert_allclose(np.asarray(out_bf16["logits"]), np.asarray(ref["logits"]),
                               rtol=1e-1, atol=6e-2)

    print("KERNEL_OK")
</pallas_src>

<mosaic_0001>
module attributes {stable_mosaic.version = 11 : i64} {
  func.func @kernel(%arg0: i32, %arg1: memref<8x8x32xf32, #tpu.memory_space<vmem>>, %arg2: memref<32x512xf32, #tpu.memory_space<vmem>>, %arg3: memref<128x512xf32, #tpu.memory_space<vmem>>, %arg4: memref<1x512xf32, #tpu.memory_space<vmem>>, %arg5: memref<128x512xf32, #tpu.memory_space<vmem>>, %arg6: memref<128x512xf32, #tpu.memory_space<vmem>>, %arg7: memref<1x512xf32, #tpu.memory_space<vmem>>, %arg8: memref<128x128xf32, #tpu.memory_space<vmem>>, %arg9: memref<1x128xf32, #tpu.memory_space<vmem>>, %arg10: memref<2x8x128xf32, #tpu.memory_space<vmem>>, %arg11: memref<2x8x128xf32, #tpu.memory_space<vmem>>, %arg12: memref<8x8x128xf32, #tpu.memory_space<vmem>>, %arg13: memref<8x8x128xf32, #tpu.memory_space<vmem>>, %arg14: memref<2x8x128xf32, #tpu.memory_space<vmem>>, %arg15: memref<2x8x128xf32, #tpu.memory_space<vmem>>, %arg16: memref<8x8x512xf32, #tpu.memory_space<vmem>>, %arg17: memref<8x8x128xf32, #tpu.memory_space<vmem>>) attributes {dimension_semantics = [#tpu.dimension_semantics<parallel>], iteration_bounds = array<i64: 1>, scalar_prefetch = 0 : i64, scratch_operands = 2 : i64, tpu.core_type = #tpu.core_type<tc>, window_params = [{transform_indices = @transform_0, window_bounds = array<i64: 8, 8, 32>}, {pipeline_mode = #tpu.pipeline_mode<synchronous>, transform_indices = @transform_1, window_bounds = array<i64: 32, 512>}, {pipeline_mode = #tpu.pipeline_mode<synchronous>, transform_indices = @transform_2, window_bounds = array<i64: 128, 512>}, {pipeline_mode = #tpu.pipeline_mode<synchronous>, transform_indices = @transform_3, window_bounds = array<i64: 1, 512>}, {pipeline_mode = #tpu.pipeline_mode<synchronous>, transform_indices = @transform_4, window_bounds = array<i64: 128, 512>}, {pipeline_mode = #tpu.pipeline_mode<synchronous>, transform_indices = @transform_5, window_bounds = array<i64: 128, 512>}, {pipeline_mode = #tpu.pipeline_mode<synchronous>, transform_indices = @transform_6, window_bounds = array<i64: 1, 512>}, {pipeline_mode = #tpu.pipeline_mode<synchronous>, transform_indices = @transform_7, window_bounds = array<i64: 128, 128>}, {pipeline_mode = #tpu.pipeline_mode<synchronous>, transform_indices = @transform_8, window_bounds = array<i64: 1, 128>}, {transform_indices = @transform_9, window_bounds = array<i64: 2, 8, 128>}, {transform_indices = @transform_10, window_bounds = array<i64: 2, 8, 128>}, {transform_indices = @transform_11, window_bounds = array<i64: 8, 8, 128>}, {transform_indices = @transform_12, window_bounds = array<i64: 8, 8, 128>}, {transform_indices = @transform_13, window_bounds = array<i64: 2, 8, 128>}, {transform_indices = @transform_14, window_bounds = array<i64: 2, 8, 128>}]} {
    %c0 = arith.constant 0 : index
    %c0_0 = arith.constant 0 : index
    %c0_1 = arith.constant 0 : index
    %0 = vector.load %arg1[%c0, %c0_0, %c0_1] : memref<8x8x32xf32, #tpu.memory_space<vmem>>, vector<8x8x32xf32>
    %1 = tpu.transpose %0, [1, 0, 2] : vector<8x8x32xf32> -> vector<8x8x32xf32>
    %2 = vector.shape_cast %1 : vector<8x8x32xf32> to vector<64x32xf32>
    %c0_2 = arith.constant 0 : index
    %c0_3 = arith.constant 0 : index
    %3 = vector.load %arg2[%c0_2, %c0_3] : memref<32x512xf32, #tpu.memory_space<vmem>>, vector<32x512xf32>
    %c0_4 = arith.constant 0 : index
    %c0_5 = arith.constant 0 : index
    %4 = vector.load %arg3[%c0_4, %c0_5] : memref<128x512xf32, #tpu.memory_space<vmem>>, vector<128x512xf32>
    %c0_6 = arith.constant 0 : index
    %c0_7 = arith.constant 0 : index
    %5 = vector.load %arg4[%c0_6, %c0_7] : memref<1x512xf32, #tpu.memory_space<vmem>>, vector<1x512xf32>
    %cst = arith.constant dense<0.000000e+00> : vector<64x512xf32>
    %6 = tpu.matmul %2, %3, %cst {dimension_numbers = #tpu.dot_dimension_numbers<[1], [0], [0], [1], [0, 0, 1, 1], [], []>} : vector<64x32xf32>, vector<32x512xf32>, vector<64x512xf32> -> vector<64x512xf32>
    %7 = vector.broadcast %5 : vector<1x512xf32> to vector<64x512xf32>
    %8 = arith.addf %6, %7 : vector<64x512xf32>
    %9 = vector.shape_cast %8 : vector<64x512xf32> to vector<8x8x512xf32>
    %c0_8 = arith.constant 0 : index
    %c0_9 = arith.constant 0 : index
    %c0_10 = arith.constant 0 : index
    %10 = vector.load %arg16[%c0_8, %c0_9, %c0_10] : memref<8x8x512xf32, #tpu.memory_space<vmem>>, vector<8x8x512xf32>
    tpu.vector_store %arg16[%c0_8, %c0_9, %c0_10], %9 {strides = array<i32>} : memref<8x8x512xf32, #tpu.memory_space<vmem>>, vector<8x8x512xf32>,
    %c0_11 = arith.constant 0 : index
    %c0_12 = arith.constant 0 : index
    %c0_13 = arith.constant 0 : index
    %11 = vector.load %arg10[%c0_11, %c0_12, %c0_13] : memref<2x8x128xf32, #tpu.memory_space<vmem>>, vector<1x8x128xf32>
    %12 = vector.shape_cast %11 : vector<1x8x128xf32> to vector<8x128xf32>
    %c0_14 = arith.constant 0 : index
    %c0_15 = arith.constant 0 : index
    %c0_16 = arith.constant 0 : index
    %13 = vector.load %arg11[%c0_14, %c0_15, %c0_16] : memref<2x8x128xf32, #tpu.memory_space<vmem>>, vector<1x8x128xf32>
    %14 = vector.shape_cast %13 : vector<1x8x128xf32> to vector<8x128xf32>
    %c0_i32 = arith.constant 0 : i32
    %15 = arith.index_cast %c0_i32 : i32 to index
    %c0_17 = arith.constant 0 : index
    %c0_18 = arith.constant 0 : index
    %16 = vector.load %arg16[%15, %c0_17, %c0_18] : memref<8x8x512xf32, #tpu.memory_space<vmem>>, vector<1x8x512xf32>
    %17 = vector.shape_cast %16 : vector<1x8x512xf32> to vector<8x512xf32>
    %cst_19 = arith.constant dense<0.000000e+00> : vector<8x512xf32>
    %18 = tpu.matmul %12, %4, %cst_19 {dimension_numbers = #tpu.dot_dimension_numbers<[1], [0], [0], [1], [0, 0, 1, 1], [], []>} : vector<8x128xf32>, vector<128x512xf32>, vector<8x512xf32> -> vector<8x512xf32>
    %19 = arith.addf %17, %18 : vector<8x512xf32>
    %20 = vector.extract_strided_slice %19 {offsets = [0, 0], sizes = [8, 128], strides = [1, 1]} : vector<8x512xf32> to vector<8x128xf32>
    %21 = arith.negf %20 : vector<8x128xf32>
    %22 = math.exp %21 : vector<8x128xf32>
    %cst_20 = arith.constant 1.000000e+00 : f32
    %23 = vector.broadcast %cst_20 : f32 to vector<8x128xf32>
    %24 = arith.addf %23, %22 : vector<8x128xf32>
    %25 = arith.divf %23, %24 : vector<8x128xf32>
    %26 = vector.extract_strided_slice %19 {offsets = [0, 128], sizes = [8, 128], strides = [1, 1]} : vector<8x512xf32> to vector<8x128xf32>
    %27 = arith.negf %26 : vector<8x128xf32>
    %28 = math.exp %27 : vector<8x128xf32>
    %cst_21 = arith.constant 1.000000e+00 : f32
    %29 = vector.broadcast %cst_21 : f32 to vector<8x128xf32>
    %30 = arith.addf %29, %28 : vector<8x128xf32>
    %31 = arith.divf %29, %30 : vector<8x128xf32>
    %32 = vector.extract_strided_slice %19 {offsets = [0, 256], sizes = [8, 128], strides = [1, 1]} : vector<8x512xf32> to vector<8x128xf32>
    %33 = math.tanh %32 : vector<8x128xf32>
    %34 = vector.extract_strided_slice %19 {offsets = [0, 384], sizes = [8, 128], strides = [1, 1]} : vector<8x512xf32> to vector<8x128xf32>
    %35 = arith.negf %34 : vector<8x128xf32>
    %36 = math.exp %35 : vector<8x128xf32>
    %cst_22 = arith.constant 1.000000e+00 : f32
    %37 = vector.broadcast %cst_22 : f32 to vector<8x128xf32>
    %38 = arith.addf %37, %36 : vector<8x128xf32>
    %39 = arith.divf %37, %38 : vector<8x128xf32>
    %40 = arith.mulf %31, %14 : vector<8x128xf32>
    %41 = arith.mulf %25, %33 : vector<8x128xf32>
    %42 = arith.addf %40, %41 : vector<8x128xf32>
    %43 = math.tanh %42 : vector<8x128xf32>
    %44 = arith.mulf %39, %43 : vector<8x128xf32>
    %45 = arith.index_cast %c0_i32 : i32 to index
    %c0_23 = arith.constant 0 : index
    %c0_24 = arith.constant 0 : index
    %46 = vector.load %arg17[%45, %c0_23, %c0_24] : memref<8x8x128xf32, #tpu.memory_space<vmem>>, vector<1x8x128xf32>
    %47 = vector.shape_cast %46 : vector<1x8x128xf32> to vector<8x128xf32>
    %48 = vector.shape_cast %44 : vector<8x128xf32> to vector<1x8x128xf32>
    tpu.vector_store %arg17[%45, %c0_23, %c0_24], %48 {strides = array<i32>} : memref<8x8x128xf32, #tpu.memory_space<vmem>>, vector<1x8x128xf32>,
    %c1_i32 = arith.constant 1 : i32
    %49 = arith.index_cast %c1_i32 : i32 to index
    %c0_25 = arith.constant 0 : index
    %c0_26 = arith.constant 0 : index
    %50 = vector.load %arg16[%49, %c0_25, %c0_26] : memref<8x8x512xf32, #tpu.memory_space<vmem>>, vector<1x8x512xf32>
    %51 = vector.shape_cast %50 : vector<1x8x512xf32> to vector<8x512xf32>
    %cst_27 = arith.constant dense<0.000000e+00> : vector<8x512xf32>
    %52 = tpu.matmul %44, %4, %cst_27 {dimension_numbers = #tpu.dot_dimension_numbers<[1], [0], [0], [1], [0, 0, 1, 1], [], []>} : vector<8x128xf32>, vector<128x512xf32>, vector<8x512xf32> -> vector<8x512xf32>
    %53 = arith.addf %51, %52 : vector<8x512xf32>
    %54 = vector.extract_strided_slice %53 {offsets = [0, 0], sizes = [8, 128], strides = [1, 1]} : vector<8x512xf32> to vector<8x128xf32>
    %55 = arith.negf %54 : vector<8x128xf32>
    %56 = math.exp %55 : vector<8x128xf32>
    %cst_28 = arith.constant 1.000000e+00 : f32
    %57 = vector.broadcast %cst_28 : f32 to vector<8x128xf32>
    %58 = arith.addf %57, %56 : vector<8x128xf32>
    %59 = arith.divf %57, %58 : vector<8x128xf32>
    %60 = vector.extract_strided_slice %53 {offsets = [0, 128], sizes = [8, 128], strides = [1, 1]} : vector<8x512xf32> to vector<8x128xf32>
    %61 = arith.negf %60 : vector<8x128xf32>
    %62 = math.exp %61 : vector<8x128xf32>
    %cst_29 = arith.constant 1.000000e+00 : f32
    %63 = vector.broadcast %cst_29 : f32 to vector<8x128xf32>
    %64 = arith.addf %63, %62 : vector<8x128xf32>
    %65 = arith.divf %63, %64 : vector<8x128xf32>
    %66 = vector.extract_strided_slice %53 {offsets = [0, 256], sizes = [8, 128], strides = [1, 1]} : vector<8x512xf32> to vector<8x128xf32>
    %67 = math.tanh %66 : vector<8x128xf32>
    %68 = vector.extract_strided_slice %53 {offsets = [0, 384], sizes = [8, 128], strides = [1, 1]} : vector<8x512xf32> to vector<8x128xf32>
    %69 = arith.negf %68 : vector<8x128xf32>
    %70 = math.exp %69 : vector<8x128xf32>
    %cst_30 = arith.constant 1.000000e+00 : f32
    %71 = vector.broadcast %cst_30 : f32 to vector<8x128xf32>
    %72 = arith.addf %71, %70 : vector<8x128xf32>
    %73 = arith.divf %71, %72 : vector<8x128xf32>
    %74 = arith.mulf %65, %42 : vector<8x128xf32>
    %75 = arith.mulf %59, %67 : vector<8x128xf32>
    %76 = arith.addf %74, %75 : vector<8x128xf32>
    %77 = math.tanh %76 : vector<8x128xf32>
    %78 = arith.mulf %73, %77 : vector<8x128xf32>
    %79 = arith.index_cast %c1_i32 : i32 to index
    %c0_31 = arith.constant 0 : index
    %c0_32 = arith.constant 0 : index
    %80 = vector.load %arg17[%79, %c0_31, %c0_32] : memref<8x8x128xf32, #tpu.memory_space<vmem>>, vector<1x8x128xf32>
    %81 = vector.shape_cast %80 : vector<1x8x128xf32> to vector<8x128xf32>
    %82 = vector.shape_cast %78 : vector<8x128xf32> to vector<1x8x128xf32>
    tpu.vector_store %arg17[%79, %c0_31, %c0_32], %82 {strides = array<i32>} : memref<8x8x128xf32, #tpu.memory_space<vmem>>, vector<1x8x128xf32>,
    %c2_i32 = arith.constant 2 : i32
    %83 = arith.index_cast %c2_i32 : i32 to index
    %c0_33 = arith.constant 0 : index
    %c0_34 = arith.constant 0 : index
    %84 = vector.load %arg16[%83, %c0_33, %c0_34] : memref<8x8x512xf32, #tpu.memory_space<vmem>>, vector<1x8x512xf32>
    %85 = vector.shape_cast %84 : vector<1x8x512xf32> to vector<8x512xf32>
    %cst_35 = arith.constant dense<0.000000e+00> : vector<8x512xf32>
    %86 = tpu.matmul %78, %4, %cst_35 {dimension_numbers = #tpu.dot_dimension_numbers<[1], [0], [0], [1], [0, 0, 1, 1], [], []>} : vector<8x128xf32>, vector<128x512xf32>, vector<8x512xf32> -> vector<8x512xf32>
    %87 = arith.addf %85, %86 : vector<8x512xf32>
    %88 = vector.extract_strided_slice %87 {offsets = [0, 0], sizes = [8, 128], strides = [1, 1]} : vector<8x512xf32> to vector<8x128xf32>
    %89 = arith.negf %88 : vector<8x128xf32>
    %90 = math.exp %89 : vector<8x128xf32>
    %cst_36 = arith.constant 1.000000e+00 : f32
    %91 = vector.broadcast %cst_36 : f32 to vector<8x128xf32>
    %92 = arith.addf %91, %90 : vector<8x128xf32>
    %93 = arith.divf %91, %92 : vector<8x128xf32>
    %94 = vector.extract_strided_slice %87 {offsets = [0, 128], sizes = [8, 128], strides = [1, 1]} : vector<8x512xf32> to vector<8x128xf32>
    %95 = arith.negf %94 : vector<8x128xf32>
    %96 = math.exp %95 : vector<8x128xf32>
    %cst_37 = arith.constant 1.000000e+00 : f32
    %97 = vector.broadcast %cst_37 : f32 to vector<8x128xf32>
    %98 = arith.addf %97, %96 : vector<8x128xf32>
    %99 = arith.divf %97, %98 : vector<8x128xf32>
    %100 = vector.extract_strided_slice %87 {offsets = [0, 256], sizes = [8, 128], strides = [1, 1]} : vector<8x512xf32> to vector<8x128xf32>
    %101 = math.tanh %100 : vector<8x128xf32>
    %102 = vector.extract_strided_slice %87 {offsets = [0, 384], sizes = [8, 128], strides = [1, 1]} : vector<8x512xf32> to vector<8x128xf32>
    %103 = arith.negf %102 : vector<8x128xf32>
    %104 = math.exp %103 : vector<8x128xf32>
    %cst_38 = arith.constant 1.000000e+00 : f32
    %105 = vector.broadcast %cst_38 : f32 to vector<8x128xf32>
    %106 = arith.addf %105, %104 : vector<8x128xf32>
    %107 = arith.divf %105, %106 : vector<8x128xf32>
    %108 = arith.mulf %99, %76 : vector<8x128xf32>
    %109 = arith.mulf %93, %101 : vector<8x128xf32>
    %110 = arith.addf %108, %109 : vector<8x128xf32>
    %111 = math.tanh %110 : vector<8x128xf32>
    %112 = arith.mulf %107, %111 : vector<8x128xf32>
    %113 = arith.index_cast %c2_i32 : i32 to index
    %c0_39 = arith.constant 0 : index
    %c0_40 = arith.constant 0 : index
    %114 = vector.load %arg17[%113, %c0_39, %c0_40] : memref<8x8x128xf32, #tpu.memory_space<vmem>>, vector<1x8x128xf32>
    %115 = vector.shape_cast %114 : vector<1x8x128xf32> to vector<8x128xf32>
    %116 = vector.shape_cast %112 : vector<8x128xf32> to vector<1x8x128xf32>
    tpu.vector_store %arg17[%113, %c0_39, %c0_40], %116 {strides = array<i32>} : memref<8x8x128xf32, #tpu.memory_space<vmem>>, vector<1x8x128xf32>,
    %c3_i32 = arith.constant 3 : i32
    %117 = arith.index_cast %c3_i32 : i32 to index
    %c0_41 = arith.constant 0 : index
    %c0_42 = arith.constant 0 : index
    %118 = vector.load %arg16[%117, %c0_41, %c0_42] : memref<8x8x512xf32, #tpu.memory_space<vmem>>, vector<1x8x512xf32>
    %119 = vector.shape_cast %118 : vector<1x8x512xf32> to vector<8x512xf32>
    %cst_43 = arith.constant dense<0.000000e+00> : vector<8x512xf32>
    %120 = tpu.matmul %112, %4, %cst_43 {dimension_numbers = #tpu.dot_dimension_numbers<[1], [0], [0], [1], [0, 0, 1, 1], [], []>} : vector<8x128xf32>, vector<128x512xf32>, vector<8x512xf32> -> vector<8x512xf32>
    %121 = arith.addf %119, %120 : vector<8x512xf32>
    %122 = vector.extract_strided_slice %121 {offsets = [0, 0], sizes = [8, 128], strides = [1, 1]} : vector<8x512xf32> to vector<8x128xf32>
    %123 = arith.negf %122 : vector<8x128xf32>
    %124 = math.exp %123 : vector<8x128xf32>
    %cst_44 = arith.constant 1.000000e+00 : f32
    %125 = vector.broadcast %cst_44 : f32 to vector<8x128xf32>
    %126 = arith.addf %125, %124 : vector<8x128xf32>
    %127 = arith.divf %125, %126 : vector<8x128xf32>
    %128 = vector.extract_strided_slice %121 {offsets = [0, 128], sizes = [8, 128], strides = [1, 1]} : vector<8x512xf32> to vector<8x128xf32>
    %129 = arith.negf %128 : vector<8x128xf32>
    %130 = math.exp %129 : vector<8x128xf32>
    %cst_45 = arith.constant 1.000000e+00 : f32
    %131 = vector.broadcast %cst_45 : f32 to vector<8x128xf32>
    %132 = arith.addf %131, %130 : vector<8x128xf32>
    %133 = arith.divf %131, %132 : vector<8x128xf32>
    %134 = vector.extract_strided_slice %121 {offsets = [0, 256], sizes = [8, 128], strides = [1, 1]} : vector<8x512xf32> to vector<8x128xf32>
    %135 = math.tanh %134 : vector<8x128xf32>
    %136 = vector.extract_strided_slice %121 {offsets = [0, 384], sizes = [8, 128], strides = [1, 1]} : vector<8x512xf32> to vector<8x128xf32>
    %137 = arith.negf %136 : vector<8x128xf32>
    %138 = math.exp %137 : vector<8x128xf32>
    %cst_46 = arith.constant 1.000000e+00 : f32
    %139 = vector.broadcast %cst_46 : f32 to vector<8x128xf32>
    %140 = arith.addf %139, %138 : vector<8x128xf32>
    %141 = arith.divf %139, %140 : vector<8x128xf32>
    %142 = arith.mulf %133, %110 : vector<8x128xf32>
    %143 = arith.mulf %127, %135 : vector<8x128xf32>
    %144 = arith.addf %142, %143 : vector<8x128xf32>
    %145 = math.tanh %144 : vector<8x128xf32>
    %146 = arith.mulf %141, %145 : vector<8x128xf32>
    %147 = arith.index_cast %c3_i32 : i32 to index
    %c0_47 = arith.constant 0 : index
    %c0_48 = arith.constant 0 : index
    %148 = vector.load %arg17[%147, %c0_47, %c0_48] : memref<8x8x128xf32, #tpu.memory_space<vmem>>, vector<1x8x128xf32>
    %149 = vector.shape_cast %148 : vector<1x8x128xf32> to vector<8x128xf32>
    %150 = vector.shape_cast %146 : vector<8x128xf32> to vector<1x8x128xf32>
    tpu.vector_store %arg17[%147, %c0_47, %c0_48], %150 {strides = array<i32>} : memref<8x8x128xf32, #tpu.memory_space<vmem>>, vector<1x8x128xf32>,
    %c4_i32 = arith.constant 4 : i32
    %151 = arith.index_cast %c4_i32 : i32 to index
    %c0_49 = arith.constant 0 : index
    %c0_50 = arith.constant 0 : index
    %152 = vector.load %arg16[%151, %c0_49, %c0_50] : memref<8x8x512xf32, #tpu.memory_space<vmem>>, vector<1x8x512xf32>
    %153 = vector.shape_cast %152 : vector<1x8x512xf32> to vector<8x512xf32>
    %cst_51 = arith.constant dense<0.000000e+00> : vector<8x512xf32>
    %154 = tpu.matmul %146, %4, %cst_51 {dimension_numbers = #tpu.dot_dimension_numbers<[1], [0], [0], [1], [0, 0, 1, 1], [], []>} : vector<8x128xf32>, vector<128x512xf32>, vector<8x512xf32> -> vector<8x512xf32>
    %155 = arith.addf %153, %154 : vector<8x512xf32>
    %156 = vector.extract_strided_slice %155 {offsets = [0, 0], sizes = [8, 128], strides = [1, 1]} : vector<8x512xf32> to vector<8x128xf32>
    %157 = arith.negf %156 : vector<8x128xf32>
    %158 = math.exp %157 : vector<8x128xf32>
    %cst_52 = arith.constant 1.000000e+00 : f32
    %159 = vector.broadcast %cst_52 : f32 to vector<8x128xf32>
    %160 = arith.addf %159, %158 : vector<8x128xf32>
    %161 = arith.divf %159, %160 : vector<8x128xf32>
    %162 = vector.extract_strided_slice %155 {offsets = [0, 128], sizes = [8, 128], strides = [1, 1]} : vector<8x512xf32> to vector<8x128xf32>
    %163 = arith.negf %162 : vector<8x128xf32>
    %164 = math.exp %163 : vector<8x128xf32>
    %cst_53 = arith.constant 1.000000e+00 : f32
    %165 = vector.broadcast %cst_53 : f32 to vector<8x128xf32>
    %166 = arith.addf %165, %164 : vector<8x128xf32>
    %167 = arith.divf %165, %166 : vector<8x128xf32>
    %168 = vector.extract_strided_slice %155 {offsets = [0, 256], sizes = [8, 128], strides = [1, 1]} : vector<8x512xf32> to vector<8x128xf32>
    %169 = math.tanh %168 : vector<8x128xf32>
    %170 = vector.extract_strided_slice %155 {offsets = [0, 384], sizes = [8, 128], strides = [1, 1]} : vector<8x512xf32> to vector<8x128xf32>
    %171 = arith.negf %170 : vector<8x128xf32>
    %172 = math.exp %171 : vector<8x128xf32>
    %cst_54 = arith.constant 1.000000e+00 : f32
    %173 = vector.broadcast %cst_54 : f32 to vector<8x128xf32>
    %174 = arith.addf %173, %172 : vector<8x128xf32>
    %175 = arith.divf %173, %174 : vector<8x128xf32>
    %176 = arith.mulf %167, %144 : vector<8x128xf32>
    %177 = arith.mulf %161, %169 : vector<8x128xf32>
    %178 = arith.addf %176, %177 : vector<8x128xf32>
    %179 = math.tanh %178 : vector<8x128xf32>
    %180 = arith.mulf %175, %179 : vector<8x128xf32>
    %181 = arith.index_cast %c4_i32 : i32 to index
    %c0_55 = arith.constant 0 : index
    %c0_56 = arith.constant 0 : index
    %182 = vector.load %arg17[%181, %c0_55, %c0_56] : memref<8x8x128xf32, #tpu.memory_space<vmem>>, vector<1x8x128xf32>
    %183 = vector.shape_cast %182 : vector<1x8x128xf32> to vector<8x128xf32>
    %184 = vector.shape_cast %180 : vector<8x128xf32> to vector<1x8x128xf32>
    tpu.vector_store %arg17[%181, %c0_55, %c0_56], %184 {strides = array<i32>} : memref<8x8x128xf32, #tpu.memory_space<vmem>>, vector<1x8x128xf32>,
    %c5_i32 = arith.constant 5 : i32
    %185 = arith.index_cast %c5_i32 : i32 to index
    %c0_57 = arith.constant 0 : index
    %c0_58 = arith.constant 0 : index
    %186 = vector.load %arg16[%185, %c0_57, %c0_58] : memref<8x8x512xf32, #tpu.memory_space<vmem>>, vector<1x8x512xf32>
    %187 = vector.shape_cast %186 : vector<1x8x512xf32> to vector<8x512xf32>
    %cst_59 = arith.constant dense<0.000000e+00> : vector<8x512xf32>
    %188 = tpu.matmul %180, %4, %cst_59 {dimension_numbers = #tpu.dot_dimension_numbers<[1], [0], [0], [1], [0, 0, 1, 1], [], []>} : vector<8x128xf32>, vector<128x512xf32>, vector<8x512xf32> -> vector<8x512xf32>
    %189 = arith.addf %187, %188 : vector<8x512xf32>
    %190 = vector.extract_strided_slice %189 {offsets = [0, 0], sizes = [8, 128], strides = [1, 1]} : vector<8x512xf32> to vector<8x128xf32>
    %191 = arith.negf %190 : vector<8x128xf32>
    %192 = math.exp %191 : vector<8x128xf32>
    %cst_60 = arith.constant 1.000000e+00 : f32
    %193 = vector.broadcast %cst_60 : f32 to vector<8x128xf32>
    %194 = arith.addf %193, %192 : vector<8x128xf32>
    %195 = arith.divf %193, %194 : vector<8x128xf32>
    %196 = vector.extract_strided_slice %189 {offsets = [0, 128], sizes = [8, 128], strides = [1, 1]} : vector<8x512xf32> to vector<8x128xf32>
    %197 = arith.negf %196 : vector<8x128xf32>
    %198 = math.exp %197 : vector<8x128xf32>
    %cst_61 = arith.constant 1.000000e+00 : f32
    %199 = vector.broadcast %cst_61 : f32 to vector<8x128xf32>
    %200 = arith.addf %199, %198 : vector<8x128xf32>
    %201 = arith.divf %199, %200 : vector<8x128xf32>
    %202 = vector.extract_strided_slice %189 {offsets = [0, 256], sizes = [8, 128], strides = [1, 1]} : vector<8x512xf32> to vector<8x128xf32>
    %203 = math.tanh %202 : vector<8x128xf32>
    %204 = vector.extract_strided_slice %189 {offsets = [0, 384], sizes = [8, 128], strides = [1, 1]} : vector<8x512xf32> to vector<8x128xf32>
    %205 = arith.negf %204 : vector<8x128xf32>
    %206 = math.exp %205 : vector<8x128xf32>
    %cst_62 = arith.constant 1.000000e+00 : f32
    %207 = vector.broadcast %cst_62 : f32 to vector<8x128xf32>
    %208 = arith.addf %207, %206 : vector<8x128xf32>
    %209 = arith.divf %207, %208 : vector<8x128xf32>
    %210 = arith.mulf %201, %178 : vector<8x128xf32>
    %211 = arith.mulf %195, %203 : vector<8x128xf32>
    %212 = arith.addf %210, %211 : vector<8x128xf32>
    %213 = math.tanh %212 : vector<8x128xf32>
    %214 = arith.mulf %209, %213 : vector<8x128xf32>
    %215 = arith.index_cast %c5_i32 : i32 to index
    %c0_63 = arith.constant 0 : index
    %c0_64 = arith.constant 0 : index
    %216 = vector.load %arg17[%215, %c0_63, %c0_64] : memref<8x8x128xf32, #tpu.memory_space<vmem>>, vector<1x8x128xf32>
    %217 = vector.shape_cast %216 : vector<1x8x128xf32> to vector<8x128xf32>
    %218 = vector.shape_cast %214 : vector<8x128xf32> to vector<1x8x128xf32>
    tpu.vector_store %arg17[%215, %c0_63, %c0_64], %218 {strides = array<i32>} : memref<8x8x128xf32, #tpu.memory_space<vmem>>, vector<1x8x128xf32>,
    %c6_i32 = arith.constant 6 : i32
    %219 = arith.index_cast %c6_i32 : i32 to index
    %c0_65 = arith.constant 0 : index
    %c0_66 = arith.constant 0 : index
    %220 = vector.load %arg16[%219, %c0_65, %c0_66] : memref<8x8x512xf32, #tpu.memory_space<vmem>>, vector<1x8x512xf32>
    %221 = vector.shape_cast %220 : vector<1x8x512xf32> to vector<8x512xf32>
    %cst_67 = arith.constant dense<0.000000e+00> : vector<8x512xf32>
    %222 = tpu.matmul %214, %4, %cst_67 {dimension_numbers = #tpu.dot_dimension_numbers<[1], [0], [0], [1], [0, 0, 1, 1], [], []>} : vector<8x128xf32>, vector<128x512xf32>, vector<8x512xf32> -> vector<8x512xf32>
    %223 = arith.addf %221, %222 : vector<8x512xf32>
    %224 = vector.extract_strided_slice %223 {offsets = [0, 0], sizes = [8, 128], strides = [1, 1]} : vector<8x512xf32> to vector<8x128xf32>
    %225 = arith.negf %224 : vector<8x128xf32>
    %226 = math.exp %225 : vector<8x128xf32>
    %cst_68 = arith.constant 1.000000e+00 : f32
    %227 = vector.broadcast %cst_68 : f32 to vector<8x128xf32>
    %228 = arith.addf %227, %226 : vector<8x128xf32>
    %229 = arith.divf %227, %228 : vector<8x128xf32>
    %230 = vector.extract_strided_slice %223 {offsets = [0, 128], sizes = [8, 128], strides = [1, 1]} : vector<8x512xf32> to vector<8x128xf32>
    %231 = arith.negf %230 : vector<8x128xf32>
    %232 = math.exp %231 : vector<8x128xf32>
    %cst_69 = arith.constant 1.000000e+00 : f32
    %233 = vector.broadcast %cst_69 : f32 to vector<8x128xf32>
    %234 = arith.addf %233, %232 : vector<8x128xf32>
    %235 = arith.divf %233, %234 : vector<8x128xf32>
    %236 = vector.extract_strided_slice %223 {offsets = [0, 256], sizes = [8, 128], strides = [1, 1]} : vector<8x512xf32> to vector<8x128xf32>
    %237 = math.tanh %236 : vector<8x128xf32>
    %238 = vector.extract_strided_slice %223 {offsets = [0, 384], sizes = [8, 128], strides = [1, 1]} : vector<8x512xf32> to vector<8x128xf32>
    %239 = arith.negf %238 : vector<8x128xf32>
    %240 = math.exp %239 : vector<8x128xf32>
    %cst_70 = arith.constant 1.000000e+00 : f32
    %241 = vector.broadcast %cst_70 : f32 to vector<8x128xf32>
    %242 = arith.addf %241, %240 : vector<8x128xf32>
    %243 = arith.divf %241, %242 : vector<8x128xf32>
    %244 = arith.mulf %235, %212 : vector<8x128xf32>
    %245 = arith.mulf %229, %237 : vector<8x128xf32>
    %246 = arith.addf %244, %245 : vector<8x128xf32>
    %247 = math.tanh %246 : vector<8x128xf32>
    %248 = arith.mulf %243, %247 : vector<8x128xf32>
    %249 = arith.index_cast %c6_i32 : i32 to index
    %c0_71 = arith.constant 0 : index
    %c0_72 = arith.constant 0 : index
    %250 = vector.load %arg17[%249, %c0_71, %c0_72] : memref<8x8x128xf32, #tpu.memory_space<vmem>>, vector<1x8x128xf32>
    %251 = vector.shape_cast %250 : vector<1x8x128xf32> to vector<8x128xf32>
    %252 = vector.shape_cast %248 : vector<8x128xf32> to vector<1x8x128xf32>
    tpu.vector_store %arg17[%249, %c0_71, %c0_72], %252 {strides = array<i32>} : memref<8x8x128xf32, #tpu.memory_space<vmem>>, vector<1x8x128xf32>,
    %c7_i32 = arith.constant 7 : i32
    %253 = arith.index_cast %c7_i32 : i32 to index
    %c0_73 = arith.constant 0 : index
    %c0_74 = arith.constant 0 : index
    %254 = vector.load %arg16[%253, %c0_73, %c0_74] : memref<8x8x512xf32, #tpu.memory_space<vmem>>, vector<1x8x512xf32>
    %255 = vector.shape_cast %254 : vector<1x8x512xf32> to vector<8x512xf32>
    %cst_75 = arith.constant dense<0.000000e+00> : vector<8x512xf32>
    %256 = tpu.matmul %248, %4, %cst_75 {dimension_numbers = #tpu.dot_dimension_numbers<[1], [0], [0], [1], [0, 0, 1, 1], [], []>} : vector<8x128xf32>, vector<128x512xf32>, vector<8x512xf32> -> vector<8x512xf32>
    %257 = arith.addf %255, %256 : vector<8x512xf32>
    %258 = vector.extract_strided_slice %257 {offsets = [0, 0], sizes = [8, 128], strides = [1, 1]} : vector<8x512xf32> to vector<8x128xf32>
    %259 = arith.negf %258 : vector<8x128xf32>
    %260 = math.exp %259 : vector<8x128xf32>
    %cst_76 = arith.constant 1.000000e+00 : f32
    %261 = vector.broadcast %cst_76 : f32 to vector<8x128xf32>
    %262 = arith.addf %261, %260 : vector<8x128xf32>
    %263 = arith.divf %261, %262 : vector<8x128xf32>
    %264 = vector.extract_strided_slice %257 {offsets = [0, 128], sizes = [8, 128], strides = [1, 1]} : vector<8x512xf32> to vector<8x128xf32>
    %265 = arith.negf %264 : vector<8x128xf32>
    %266 = math.exp %265 : vector<8x128xf32>
    %cst_77 = arith.constant 1.000000e+00 : f32
    %267 = vector.broadcast %cst_77 : f32 to vector<8x128xf32>
    %268 = arith.addf %267, %266 : vector<8x128xf32>
    %269 = arith.divf %267, %268 : vector<8x128xf32>
    %270 = vector.extract_strided_slice %257 {offsets = [0, 256], sizes = [8, 128], strides = [1, 1]} : vector<8x512xf32> to vector<8x128xf32>
    %271 = math.tanh %270 : vector<8x128xf32>
    %272 = vector.extract_strided_slice %257 {offsets = [0, 384], sizes = [8, 128], strides = [1, 1]} : vector<8x512xf32> to vector<8x128xf32>
    %273 = arith.negf %272 : vector<8x128xf32>
    %274 = math.exp %273 : vector<8x128xf32>
    %cst_78 = arith.constant 1.000000e+00 : f32
    %275 = vector.broadcast %cst_78 : f32 to vector<8x128xf32>
    %276 = arith.addf %275, %274 : vector<8x128xf32>
    %277 = arith.divf %275, %276 : vector<8x128xf32>
    %278 = arith.mulf %269, %246 : vector<8x128xf32>
    %279 = arith.mulf %263, %271 : vector<8x128xf32>
    %280 = arith.addf %278, %279 : vector<8x128xf32>
    %281 = math.tanh %280 : vector<8x128xf32>
    %282 = arith.mulf %277, %281 : vector<8x128xf32>
    %283 = arith.index_cast %c7_i32 : i32 to index
    %c0_79 = arith.constant 0 : index
    %c0_80 = arith.constant 0 : index
    %284 = vector.load %arg17[%283, %c0_79, %c0_80] : memref<8x8x128xf32, #tpu.memory_space<vmem>>, vector<1x8x128xf32>
    %285 = vector.shape_cast %284 : vector<1x8x128xf32> to vector<8x128xf32>
    %286 = vector.shape_cast %282 : vector<8x128xf32> to vector<1x8x128xf32>
    tpu.vector_store %arg17[%283, %c0_79, %c0_80], %286 {strides = array<i32>} : memref<8x8x128xf32, #tpu.memory_space<vmem>>, vector<1x8x128xf32>,
    %c8_i32 = arith.constant 8 : i32
    %c0_81 = arith.constant 0 : index
    %c0_82 = arith.constant 0 : index
    %c0_83 = arith.constant 0 : index
    %287 = vector.load %arg14[%c0_81, %c0_82, %c0_83] : memref<2x8x128xf32, #tpu.memory_space<vmem>>, vector<1x8x128xf32>
    %288 = vector.shape_cast %287 : vector<1x8x128xf32> to vector<8x128xf32>
    %289 = vector.shape_cast %282 : vector<8x128xf32> to vector<1x8x128xf32>
    tpu.vector_store %arg14[%c0_81, %c0_82, %c0_83], %289 {strides = array<i32>} : memref<2x8x128xf32, #tpu.memory_space<vmem>>, vector<1x8x128xf32>,
    %c0_84 = arith.constant 0 : index
    %c0_85 = arith.constant 0 : index
    %c0_86 = arith.constant 0 : index
    %290 = vector.load %arg15[%c0_84, %c0_85, %c0_86] : memref<2x8x128xf32, #tpu.memory_space<vmem>>, vector<1x8x128xf32>
    %291 = vector.shape_cast %290 : vector<1x8x128xf32> to vector<8x128xf32>
    %292 = vector.shape_cast %280 : vector<8x128xf32> to vector<1x8x128xf32>
    tpu.vector_store %arg15[%c0_84, %c0_85, %c0_86], %292 {strides = array<i32>} : memref<2x8x128xf32, #tpu.memory_space<vmem>>, vector<1x8x128xf32>,
    %c0_87 = arith.constant 0 : index
    %c0_88 = arith.constant 0 : index
    %293 = vector.load %arg5[%c0_87, %c0_88] : memref<128x512xf32, #tpu.memory_space<vmem>>, vector<128x512xf32>
    %c0_89 = arith.constant 0 : index
    %c0_90 = arith.constant 0 : index
    %294 = vector.load %arg6[%c0_89, %c0_90] : memref<128x512xf32, #tpu.memory_space<vmem>>, vector<128x512xf32>
    %c0_91 = arith.constant 0 : index
    %c0_92 = arith.constant 0 : index
    %295 = vector.load %arg7[%c0_91, %c0_92] : memref<1x512xf32, #tpu.memory_space<vmem>>, vector<1x512xf32>
    %c0_93 = arith.constant 0 : index
    %c0_94 = arith.constant 0 : index
    %c0_95 = arith.constant 0 : index
    %296 = vector.load %arg17[%c0_93, %c0_94, %c0_95] : memref<8x8x128xf32, #tpu.memory_space<vmem>>, vector<8x8x128xf32>
    %297 = vector.shape_cast %296 : vector<8x8x128xf32> to vector<64x128xf32>
    %cst_96 = arith.constant dense<0.000000e+00> : vector<64x512xf32>
    %298 = tpu.matmul %297, %293, %cst_96 {dimension_numbers = #tpu.dot_dimension_numbers<[1], [0], [0], [1], [0, 0, 1, 1], [], []>} : vector<64x128xf32>, vector<128x512xf32>, vector<64x512xf32> -> vector<64x512xf32>
    %299 = vector.broadcast %295 : vector<1x512xf32> to vector<64x512xf32>
    %300 = arith.addf %298, %299 : vector<64x512xf32>
    %301 = vector.shape_cast %300 : vector<64x512xf32> to vector<8x8x512xf32>
    %c0_97 = arith.constant 0 : index
    %c0_98 = arith.constant 0 : index
    %c0_99 = arith.constant 0 : index
    %302 = vector.load %arg16[%c0_97, %c0_98, %c0_99] : memref<8x8x512xf32, #tpu.memory_space<vmem>>, vector<8x8x512xf32>
    tpu.vector_store %arg16[%c0_97, %c0_98, %c0_99], %301 {strides = array<i32>} : memref<8x8x512xf32, #tpu.memory_space<vmem>>, vector<8x8x512xf32>,
    %c1 = arith.constant 1 : index
    %c0_100 = arith.constant 0 : index
    %c0_101 = arith.constant 0 : index
    %303 = vector.load %arg10[%c1, %c0_100, %c0_101] : memref<2x8x128xf32, #tpu.memory_space<vmem>>, vector<1x8x128xf32>
    %304 = vector.shape_cast %303 : vector<1x8x128xf32> to vector<8x128xf32>
    %c1_102 = arith.constant 1 : index
    %c0_103 = arith.constant 0 : index
    %c0_104 = arith.constant 0 : index
    %305 = vector.load %arg11[%c1_102, %c0_103, %c0_104] : memref<2x8x128xf32, #tpu.memory_space<vmem>>, vector<1x8x128xf32>
    %306 = vector.shape_cast %305 : vector<1x8x128xf32> to vector<8x128xf32>
    %c0_i32_105 = arith.constant 0 : i32
    %307 = arith.index_cast %c0_i32_105 : i32 to index
    %c0_106 = arith.constant 0 : index
    %c0_107 = arith.constant 0 : index
    %308 = vector.load %arg16[%307, %c0_106, %c0_107] : memref<8x8x512xf32, #tpu.memory_space<vmem>>, vector<1x8x512xf32>
    %309 = vector.shape_cast %308 : vector<1x8x512xf32> to vector<8x512xf32>
    %cst_108 = arith.constant dense<0.000000e+00> : vector<8x512xf32>
    %310 = tpu.matmul %304, %294, %cst_108 {dimension_numbers = #tpu.dot_dimension_numbers<[1], [0], [0], [1], [0, 0, 1, 1], [], []>} : vector<8x128xf32>, vector<128x512xf32>, vector<8x512xf32> -> vector<8x512xf32>
    %311 = arith.addf %309, %310 : vector<8x512xf32>
    %312 = vector.extract_strided_slice %311 {offsets = [0, 0], sizes = [8, 128], strides = [1, 1]} : vector<8x512xf32> to vector<8x128xf32>
    %313 = arith.negf %312 : vector<8x128xf32>
    %314 = math.exp %313 : vector<8x128xf32>
    %cst_109 = arith.constant 1.000000e+00 : f32
    %315 = vector.broadcast %cst_109 : f32 to vector<8x128xf32>
    %316 = arith.addf %315, %314 : vector<8x128xf32>
    %317 = arith.divf %315, %316 : vector<8x128xf32>
    %318 = vector.extract_strided_slice %311 {offsets = [0, 128], sizes = [8, 128], strides = [1, 1]} : vector<8x512xf32> to vector<8x128xf32>
    %319 = arith.negf %318 : vector<8x128xf32>
    %320 = math.exp %319 : vector<8x128xf32>
    %cst_110 = arith.constant 1.000000e+00 : f32
    %321 = vector.broadcast %cst_110 : f32 to vector<8x128xf32>
    %322 = arith.addf %321, %320 : vector<8x128xf32>
    %323 = arith.divf %321, %322 : vector<8x128xf32>
    %324 = vector.extract_strided_slice %311 {offsets = [0, 256], sizes = [8, 128], strides = [1, 1]} : vector<8x512xf32> to vector<8x128xf32>
    %325 = math.tanh %324 : vector<8x128xf32>
    %326 = vector.extract_strided_slice %311 {offsets = [0, 384], sizes = [8, 128], strides = [1, 1]} : vector<8x512xf32> to vector<8x128xf32>
    %327 = arith.negf %326 : vector<8x128xf32>
    %328 = math.exp %327 : vector<8x128xf32>
    %cst_111 = arith.constant 1.000000e+00 : f32
    %329 = vector.broadcast %cst_111 : f32 to vector<8x128xf32>
    %330 = arith.addf %329, %328 : vector<8x128xf32>
    %331 = arith.divf %329, %330 : vector<8x128xf32>
    %332 = arith.mulf %323, %306 : vector<8x128xf32>
    %333 = arith.mulf %317, %325 : vector<8x128xf32>
    %334 = arith.addf %332, %333 : vector<8x128xf32>
    %335 = math.tanh %334 : vector<8x128xf32>
    %336 = arith.mulf %331, %335 : vector<8x128xf32>
    %337 = arith.index_cast %c0_i32_105 : i32 to index
    %c0_112 = arith.constant 0 : index
    %c0_113 = arith.constant 0 : index
    %338 = vector.load %arg17[%337, %c0_112, %c0_113] : memref<8x8x128xf32, #tpu.memory_space<vmem>>, vector<1x8x128xf32>
    %339 = vector.shape_cast %338 : vector<1x8x128xf32> to vector<8x128xf32>
    %340 = vector.shape_cast %336 : vector<8x128xf32> to vector<1x8x128xf32>
    tpu.vector_store %arg17[%337, %c0_112, %c0_113], %340 {strides = array<i32>} : memref<8x8x128xf32, #tpu.memory_space<vmem>>, vector<1x8x128xf32>,
    %c1_i32_114 = arith.constant 1 : i32
    %341 = arith.index_cast %c1_i32_114 : i32 to index
    %c0_115 = arith.constant 0 : index
    %c0_116 = arith.constant 0 : index
    %342 = vector.load %arg16[%341, %c0_115, %c0_116] : memref<8x8x512xf32, #tpu.memory_space<vmem>>, vector<1x8x512xf32>
    %343 = vector.shape_cast %342 : vector<1x8x512xf32> to vector<8x512xf32>
    %cst_117 = arith.constant dense<0.000000e+00> : vector<8x512xf32>
    %344 = tpu.matmul %336, %294, %cst_117 {dimension_numbers = #tpu.dot_dimension_numbers<[1], [0], [0], [1], [0, 0, 1, 1], [], []>} : vector<8x128xf32>, vector<128x512xf32>, vector<8x512xf32> -> vector<8x512xf32>
    %345 = arith.addf %343, %344 : vector<8x512xf32>
    %346 = vector.extract_strided_slice %345 {offsets = [0, 0], sizes = [8, 128], strides = [1, 1]} : vector<8x512xf32> to vector<8x128xf32>
    %347 = arith.negf %346 : vector<8x128xf32>
    %348 = math.exp %347 : vector<8x128xf32>
    %cst_118 = arith.constant 1.000000e+00 : f32
    %349 = vector.broadcast %cst_118 : f32 to vector<8x128xf32>
    %350 = arith.addf %349, %348 : vector<8x128xf32>
    %351 = arith.divf %349, %350 : vector<8x128xf32>
    %352 = vector.extract_strided_slice %345 {offsets = [0, 128], sizes = [8, 128], strides = [1, 1]} : vector<8x512xf32> to vector<8x128xf32>
    %353 = arith.negf %352 : vector<8x128xf32>
    %354 = math.exp %353 : vector<8x128xf32>
    %cst_119 = arith.constant 1.000000e+00 : f32
    %355 = vector.broadcast %cst_119 : f32 to vector<8x128xf32>
    %356 = arith.addf %355, %354 : vector<8x128xf32>
    %357 = arith.divf %355, %356 : vector<8x128xf32>
    %358 = vector.extract_strided_slice %345 {offsets = [0, 256], sizes = [8, 128], strides = [1, 1]} : vector<8x512xf32> to vector<8x128xf32>
    %359 = math.tanh %358 : vector<8x128xf32>
    %360 = vector.extract_strided_slice %345 {offsets = [0, 384], sizes = [8, 128], strides = [1, 1]} : vector<8x512xf32> to vector<8x128xf32>
    %361 = arith.negf %360 : vector<8x128xf32>
    %362 = math.exp %361 : vector<8x128xf32>
    %cst_120 = arith.constant 1.000000e+00 : f32
    %363 = vector.broadcast %cst_120 : f32 to vector<8x128xf32>
    %364 = arith.addf %363, %362 : vector<8x128xf32>
    %365 = arith.divf %363, %364 : vector<8x128xf32>
    %366 = arith.mulf %357, %334 : vector<8x128xf32>
    %367 = arith.mulf %351, %359 : vector<8x128xf32>
    %368 = arith.addf %366, %367 : vector<8x128xf32>
    %369 = math.tanh %368 : vector<8x128xf32>
    %370 = arith.mulf %365, %369 : vector<8x128xf32>
    %371 = arith.index_cast %c1_i32_114 : i32 to index
    %c0_121 = arith.constant 0 : index
    %c0_122 = arith.constant 0 : index
    %372 = vector.load %arg17[%371, %c0_121, %c0_122] : memref<8x8x128xf32, #tpu.memory_space<vmem>>, vector<1x8x128xf32>
    %373 = vector.shape_cast %372 : vector<1x8x128xf32> to vector<8x128xf32>
    %374 = vector.shape_cast %370 : vector<8x128xf32> to vector<1x8x128xf32>
    tpu.vector_store %arg17[%371, %c0_121, %c0_122], %374 {strides = array<i32>} : memref<8x8x128xf32, #tpu.memory_space<vmem>>, vector<1x8x128xf32>,
    %c2_i32_123 = arith.constant 2 : i32
    %375 = arith.index_cast %c2_i32_123 : i32 to index
    %c0_124 = arith.constant 0 : index
    %c0_125 = arith.constant 0 : index
    %376 = vector.load %arg16[%375, %c0_124, %c0_125] : memref<8x8x512xf32, #tpu.memory_space<vmem>>, vector<1x8x512xf32>
    %377 = vector.shape_cast %376 : vector<1x8x512xf32> to vector<8x512xf32>
    %cst_126 = arith.constant dense<0.000000e+00> : vector<8x512xf32>
    %378 = tpu.matmul %370, %294, %cst_126 {dimension_numbers = #tpu.dot_dimension_numbers<[1], [0], [0], [1], [0, 0, 1, 1], [], []>} : vector<8x128xf32>, vector<128x512xf32>, vector<8x512xf32> -> vector<8x512xf32>
    %379 = arith.addf %377, %378 : vector<8x512xf32>
    %380 = vector.extract_strided_slice %379 {offsets = [0, 0], sizes = [8, 128], strides = [1, 1]} : vector<8x512xf32> to vector<8x128xf32>
    %381 = arith.negf %380 : vector<8x128xf32>
    %382 = math.exp %381 : vector<8x128xf32>
    %cst_127 = arith.constant 1.000000e+00 : f32
    %383 = vector.broadcast %cst_127 : f32 to vector<8x128xf32>
    %384 = arith.addf %383, %382 : vector<8x128xf32>
    %385 = arith.divf %383, %384 : vector<8x128xf32>
    %386 = vector.extract_strided_slice %379 {offsets = [0, 128], sizes = [8, 128], strides = [1, 1]} : vector<8x512xf32> to vector<8x128xf32>
    %387 = arith.negf %386 : vector<8x128xf32>
    %388 = math.exp %387 : vector<8x128xf32>
    %cst_128 = arith.constant 1.000000e+00 : f32
    %389 = vector.broadcast %cst_128 : f32 to vector<8x128xf32>
    %390 = arith.addf %389, %388 : vector<8x128xf32>
    %391 = arith.divf %389, %390 : vector<8x128xf32>
    %392 = vector.extract_strided_slice %379 {offsets = [0, 256], sizes = [8, 128], strides = [1, 1]} : vector<8x512xf32> to vector<8x128xf32>
    %393 = math.tanh %392 : vector<8x128xf32>
    %394 = vector.extract_strided_slice %379 {offsets = [0, 384], sizes = [8, 128], strides = [1, 1]} : vector<8x512xf32> to vector<8x128xf32>
    %395 = arith.negf %394 : vector<8x128xf32>
    %396 = math.exp %395 : vector<8x128xf32>
    %cst_129 = arith.constant 1.000000e+00 : f32
    %397 = vector.broadcast %cst_129 : f32 to vector<8x128xf32>
    %398 = arith.addf %397, %396 : vector<8x128xf32>
    %399 = arith.divf %397, %398 : vector<8x128xf32>
    %400 = arith.mulf %391, %368 : vector<8x128xf32>
    %401 = arith.mulf %385, %393 : vector<8x128xf32>
    %402 = arith.addf %400, %401 : vector<8x128xf32>
    %403 = math.tanh %402 : vector<8x128xf32>
    %404 = arith.mulf %399, %403 : vector<8x128xf32>
    %405 = arith.index_cast %c2_i32_123 : i32 to index
    %c0_130 = arith.constant 0 : index
    %c0_131 = arith.constant 0 : index
    %406 = vector.load %arg17[%405, %c0_130, %c0_131] : memref<8x8x128xf32, #tpu.memory_space<vmem>>, vector<1x8x128xf32>
    %407 = vector.shape_cast %406 : vector<1x8x128xf32> to vector<8x128xf32>
    %408 = vector.shape_cast %404 : vector<8x128xf32> to vector<1x8x128xf32>
    tpu.vector_store %arg17[%405, %c0_130, %c0_131], %408 {strides = array<i32>} : memref<8x8x128xf32, #tpu.memory_space<vmem>>, vector<1x8x128xf32>,
    %c3_i32_132 = arith.constant 3 : i32
    %409 = arith.index_cast %c3_i32_132 : i32 to index
    %c0_133 = arith.constant 0 : index
    %c0_134 = arith.constant 0 : index
    %410 = vector.load %arg16[%409, %c0_133, %c0_134] : memref<8x8x512xf32, #tpu.memory_space<vmem>>, vector<1x8x512xf32>
    %411 = vector.shape_cast %410 : vector<1x8x512xf32> to vector<8x512xf32>
    %cst_135 = arith.constant dense<0.000000e+00> : vector<8x512xf32>
    %412 = tpu.matmul %404, %294, %cst_135 {dimension_numbers = #tpu.dot_dimension_numbers<[1], [0], [0], [1], [0, 0, 1, 1], [], []>} : vector<8x128xf32>, vector<128x512xf32>, vector<8x512xf32> -> vector<8x512xf32>
    %413 = arith.addf %411, %412 : vector<8x512xf32>
    %414 = vector.extract_strided_slice %413 {offsets = [0, 0], sizes = [8, 128], strides = [1, 1]} : vector<8x512xf32> to vector<8x128xf32>
    %415 = arith.negf %414 : vector<8x128xf32>
    %416 = math.exp %415 : vector<8x128xf32>
    %cst_136 = arith.constant 1.000000e+00 : f32
    %417 = vector.broadcast %cst_136 : f32 to vector<8x128xf32>
    %418 = arith.addf %417, %416 : vector<8x128xf32>
    %419 = arith.divf %417, %418 : vector<8x128xf32>
    %420 = vector.extract_strided_slice %413 {offsets = [0, 128], sizes = [8, 128], strides = [1, 1]} : vector<8x512xf32> to vector<8x128xf32>
    %421 = arith.negf %420 : vector<8x128xf32>
    %422 = math.exp %421 : vector<8x128xf32>
    %cst_137 = arith.constant 1.000000e+00 : f32
    %423 = vector.broadcast %cst_137 : f32 to vector<8x128xf32>
    %424 = arith.addf %423, %422 : vector<8x128xf32>
    %425 = arith.divf %423, %424 : vector<8x128xf32>
    %426 = vector.extract_strided_slice %413 {offsets = [0, 256], sizes = [8, 128], strides = [1, 1]} : vector<8x512xf32> to vector<8x128xf32>
    %427 = math.tanh %426 : vector<8x128xf32>
    %428 = vector.extract_strided_slice %413 {offsets = [0, 384], sizes = [8, 128], strides = [1, 1]} : vector<8x512xf32> to vector<8x128xf32>
    %429 = arith.negf %428 : vector<8x128xf32>
    %430 = math.exp %429 : vector<8x128xf32>
    %cst_138 = arith.constant 1.000000e+00 : f32
    %431 = vector.broadcast %cst_138 : f32 to vector<8x128xf32>
    %432 = arith.addf %431, %430 : vector<8x128xf32>
    %433 = arith.divf %431, %432 : vector<8x128xf32>
    %434 = arith.mulf %425, %402 : vector<8x128xf32>
    %435 = arith.mulf %419, %427 : vector<8x128xf32>
    %436 = arith.addf %434, %435 : vector<8x128xf32>
    %437 = math.tanh %436 : vector<8x128xf32>
    %438 = arith.mulf %433, %437 : vector<8x128xf32>
    %439 = arith.index_cast %c3_i32_132 : i32 to index
    %c0_139 = arith.constant 0 : index
    %c0_140 = arith.constant 0 : index
    %440 = vector.load %arg17[%439, %c0_139, %c0_140] : memref<8x8x128xf32, #tpu.memory_space<vmem>>, vector<1x8x128xf32>
    %441 = vector.shape_cast %440 : vector<1x8x128xf32> to vector<8x128xf32>
    %442 = vector.shape_cast %438 : vector<8x128xf32> to vector<1x8x128xf32>
    tpu.vector_store %arg17[%439, %c0_139, %c0_140], %442 {strides = array<i32>} : memref<8x8x128xf32, #tpu.memory_space<vmem>>, vector<1x8x128xf32>,
    %c4_i32_141 = arith.constant 4 : i32
    %443 = arith.index_cast %c4_i32_141 : i32 to index
    %c0_142 = arith.constant 0 : index
    %c0_143 = arith.constant 0 : index
    %444 = vector.load %arg16[%443, %c0_142, %c0_143] : memref<8x8x512xf32, #tpu.memory_space<vmem>>, vector<1x8x512xf32>
    %445 = vector.shape_cast %444 : vector<1x8x512xf32> to vector<8x512xf32>
    %cst_144 = arith.constant dense<0.000000e+00> : vector<8x512xf32>
    %446 = tpu.matmul %438, %294, %cst_144 {dimension_numbers = #tpu.dot_dimension_numbers<[1], [0], [0], [1], [0, 0, 1, 1], [], []>} : vector<8x128xf32>, vector<128x512xf32>, vector<8x512xf32> -> vector<8x512xf32>
    %447 = arith.addf %445, %446 : vector<8x512xf32>
    %448 = vector.extract_strided_slice %447 {offsets = [0, 0], sizes = [8, 128], strides = [1, 1]} : vector<8x512xf32> to vector<8x128xf32>
    %449 = arith.negf %448 : vector<8x128xf32>
    %450 = math.exp %449 : vector<8x128xf32>
    %cst_145 = arith.constant 1.000000e+00 : f32
    %451 = vector.broadcast %cst_145 : f32 to vector<8x128xf32>
    %452 = arith.addf %451, %450 : vector<8x128xf32>
    %453 = arith.divf %451, %452 : vector<8x128xf32>
    %454 = vector.extract_strided_slice %447 {offsets = [0, 128], sizes = [8, 128], strides = [1, 1]} : vector<8x512xf32> to vector<8x128xf32>
    %455 = arith.negf %454 : vector<8x128xf32>
    %456 = math.exp %455 : vector<8x128xf32>
    %cst_146 = arith.constant 1.000000e+00 : f32
    %457 = vector.broadcast %cst_146 : f32 to vector<8x128xf32>
    %458 = arith.addf %457, %456 : vector<8x128xf32>
    %459 = arith.divf %457, %458 : vector<8x128xf32>
    %460 = vector.extract_strided_slice %447 {offsets = [0, 256], sizes = [8, 128], strides = [1, 1]} : vector<8x512xf32> to vector<8x128xf32>
    %461 = math.tanh %460 : vector<8x128xf32>
    %462 = vector.extract_strided_slice %447 {offsets = [0, 384], sizes = [8, 128], strides = [1, 1]} : vector<8x512xf32> to vector<8x128xf32>
    %463 = arith.negf %462 : vector<8x128xf32>
    %464 = math.exp %463 : vector<8x128xf32>
    %cst_147 = arith.constant 1.000000e+00 : f32
    %465 = vector.broadcast %cst_147 : f32 to vector<8x128xf32>
    %466 = arith.addf %465, %464 : vector<8x128xf32>
    %467 = arith.divf %465, %466 : vector<8x128xf32>
    %468 = arith.mulf %459, %436 : vector<8x128xf32>
    %469 = arith.mulf %453, %461 : vector<8x128xf32>
    %470 = arith.addf %468, %469 : vector<8x128xf32>
    %471 = math.tanh %470 : vector<8x128xf32>
    %472 = arith.mulf %467, %471 : vector<8x128xf32>
    %473 = arith.index_cast %c4_i32_141 : i32 to index
    %c0_148 = arith.constant 0 : index
    %c0_149 = arith.constant 0 : index
    %474 = vector.load %arg17[%473, %c0_148, %c0_149] : memref<8x8x128xf32, #tpu.memory_space<vmem>>, vector<1x8x128xf32>
    %475 = vector.shape_cast %474 : vector<1x8x128xf32> to vector<8x128xf32>
    %476 = vector.shape_cast %472 : vector<8x128xf32> to vector<1x8x128xf32>
    tpu.vector_store %arg17[%473, %c0_148, %c0_149], %476 {strides = array<i32>} : memref<8x8x128xf32, #tpu.memory_space<vmem>>, vector<1x8x128xf32>,
    %c5_i32_150 = arith.constant 5 : i32
    %477 = arith.index_cast %c5_i32_150 : i32 to index
    %c0_151 = arith.constant 0 : index
    %c0_152 = arith.constant 0 : index
    %478 = vector.load %arg16[%477, %c0_151, %c0_152] : memref<8x8x512xf32, #tpu.memory_space<vmem>>, vector<1x8x512xf32>
    %479 = vector.shape_cast %478 : vector<1x8x512xf32> to vector<8x512xf32>
    %cst_153 = arith.constant dense<0.000000e+00> : vector<8x512xf32>
    %480 = tpu.matmul %472, %294, %cst_153 {dimension_numbers = #tpu.dot_dimension_numbers<[1], [0], [0], [1], [0, 0, 1, 1], [], []>} : vector<8x128xf32>, vector<128x512xf32>, vector<8x512xf32> -> vector<8x512xf32>
    %481 = arith.addf %479, %480 : vector<8x512xf32>
    %482 = vector.extract_strided_slice %481 {offsets = [0, 0], sizes = [8, 128], strides = [1, 1]} : vector<8x512xf32> to vector<8x128xf32>
    %483 = arith.negf %482 : vector<8x128xf32>
    %484 = math.exp %483 : vector<8x128xf32>
    %cst_154 = arith.constant 1.000000e+00 : f32
    %485 = vector.broadcast %cst_154 : f32 to vector<8x128xf32>
    %486 = arith.addf %485, %484 : vector<8x128xf32>
    %487 = arith.divf %485, %486 : vector<8x128xf32>
    %488 = vector.extract_strided_slice %481 {offsets = [0, 128], sizes = [8, 128], strides = [1, 1]} : vector<8x512xf32> to vector<8x128xf32>
    %489 = arith.negf %488 : vector<8x128xf32>
    %490 = math.exp %489 : vector<8x128xf32>
    %cst_155 = arith.constant 1.000000e+00 : f32
    %491 = vector.broadcast %cst_155 : f32 to vector<8x128xf32>
    %492 = arith.addf %491, %490 : vector<8x128xf32>
    %493 = arith.divf %491, %492 : vector<8x128xf32>
    %494 = vector.extract_strided_slice %481 {offsets = [0, 256], sizes = [8, 128], strides = [1, 1]} : vector<8x512xf32> to vector<8x128xf32>
    %495 = math.tanh %494 : vector<8x128xf32>
    %496 = vector.extract_strided_slice %481 {offsets = [0, 384], sizes = [8, 128], strides = [1, 1]} : vector<8x512xf32> to vector<8x128xf32>
    %497 = arith.negf %496 : vector<8x128xf32>
    %498 = math.exp %497 : vector<8x128xf32>
    %cst_156 = arith.constant 1.000000e+00 : f32
    %499 = vector.broadcast %cst_156 : f32 to vector<8x128xf32>
    %500 = arith.addf %499, %498 : vector<8x128xf32>
    %501 = arith.divf %499, %500 : vector<8x128xf32>
    %502 = arith.mulf %493, %470 : vector<8x128xf32>
    %503 = arith.mulf %487, %495 : vector<8x128xf32>
    %504 = arith.addf %502, %503 : vector<8x128xf32>
    %505 = math.tanh %504 : vector<8x128xf32>
    %506 = arith.mulf %501, %505 : vector<8x128xf32>
    %507 = arith.index_cast %c5_i32_150 : i32 to index
    %c0_157 = arith.constant 0 : index
    %c0_158 = arith.constant 0 : index
    %508 = vector.load %arg17[%507, %c0_157, %c0_158] : memref<8x8x128xf32, #tpu.memory_space<vmem>>, vector<1x8x128xf32>
    %509 = vector.shape_cast %508 : vector<1x8x128xf32> to vector<8x128xf32>
    %510 = vector.shape_cast %506 : vector<8x128xf32> to vector<1x8x128xf32>
    tpu.vector_store %arg17[%507, %c0_157, %c0_158], %510 {strides = array<i32>} : memref<8x8x128xf32, #tpu.memory_space<vmem>>, vector<1x8x128xf32>,
    %c6_i32_159 = arith.constant 6 : i32
    %511 = arith.index_cast %c6_i32_159 : i32 to index
    %c0_160 = arith.constant 0 : index
    %c0_161 = arith.constant 0 : index
    %512 = vector.load %arg16[%511, %c0_160, %c0_161] : memref<8x8x512xf32, #tpu.memory_space<vmem>>, vector<1x8x512xf32>
    %513 = vector.shape_cast %512 : vector<1x8x512xf32> to vector<8x512xf32>
    %cst_162 = arith.constant dense<0.000000e+00> : vector<8x512xf32>
    %514 = tpu.matmul %506, %294, %cst_162 {dimension_numbers = #tpu.dot_dimension_numbers<[1], [0], [0], [1], [0, 0, 1, 1], [], []>} : vector<8x128xf32>, vector<128x512xf32>, vector<8x512xf32> -> vector<8x512xf32>
    %515 = arith.addf %513, %514 : vector<8x512xf32>
    %516 = vector.extract_strided_slice %515 {offsets = [0, 0], sizes = [8, 128], strides = [1, 1]} : vector<8x512xf32> to vector<8x128xf32>
    %517 = arith.negf %516 : vector<8x128xf32>
    %518 = math.exp %517 : vector<8x128xf32>
    %cst_163 = arith.constant 1.000000e+00 : f32
    %519 = vector.broadcast %cst_163 : f32 to vector<8x128xf32>
    %520 = arith.addf %519, %518 : vector<8x128xf32>
    %521 = arith.divf %519, %520 : vector<8x128xf32>
    %522 = vector.extract_strided_slice %515 {offsets = [0, 128], sizes = [8, 128], strides = [1, 1]} : vector<8x512xf32> to vector<8x128xf32>
    %523 = arith.negf %522 : vector<8x128xf32>
    %524 = math.exp %523 : vector<8x128xf32>
    %cst_164 = arith.constant 1.000000e+00 : f32
    %525 = vector.broadcast %cst_164 : f32 to vector<8x128xf32>
    %526 = arith.addf %525, %524 : vector<8x128xf32>
    %527 = arith.divf %525, %526 : vector<8x128xf32>
    %528 = vector.extract_strided_slice %515 {offsets = [0, 256], sizes = [8, 128], strides = [1, 1]} : vector<8x512xf32> to vector<8x128xf32>
    %529 = math.tanh %528 : vector<8x128xf32>
    %530 = vector.extract_strided_slice %515 {offsets = [0, 384], sizes = [8, 128], strides = [1, 1]} : vector<8x512xf32> to vector<8x128xf32>
    %531 = arith.negf %530 : vector<8x128xf32>
    %532 = math.exp %531 : vector<8x128xf32>
    %cst_165 = arith.constant 1.000000e+00 : f32
    %533 = vector.broadcast %cst_165 : f32 to vector<8x128xf32>
    %534 = arith.addf %533, %532 : vector<8x128xf32>
    %535 = arith.divf %533, %534 : vector<8x128xf32>
    %536 = arith.mulf %527, %504 : vector<8x128xf32>
    %537 = arith.mulf %521, %529 : vector<8x128xf32>
    %538 = arith.addf %536, %537 : vector<8x128xf32>
    %539 = math.tanh %538 : vector<8x128xf32>
    %540 = arith.mulf %535, %539 : vector<8x128xf32>
    %541 = arith.index_cast %c6_i32_159 : i32 to index
    %c0_166 = arith.constant 0 : index
    %c0_167 = arith.constant 0 : index
    %542 = vector.load %arg17[%541, %c0_166, %c0_167] : memref<8x8x128xf32, #tpu.memory_space<vmem>>, vector<1x8x128xf32>
    %543 = vector.shape_cast %542 : vector<1x8x128xf32> to vector<8x128xf32>
    %544 = vector.shape_cast %540 : vector<8x128xf32> to vector<1x8x128xf32>
    tpu.vector_store %arg17[%541, %c0_166, %c0_167], %544 {strides = array<i32>} : memref<8x8x128xf32, #tpu.memory_space<vmem>>, vector<1x8x128xf32>,
    %c7_i32_168 = arith.constant 7 : i32
    %545 = arith.index_cast %c7_i32_168 : i32 to index
    %c0_169 = arith.constant 0 : index
    %c0_170 = arith.constant 0 : index
    %546 = vector.load %arg16[%545, %c0_169, %c0_170] : memref<8x8x512xf32, #tpu.memory_space<vmem>>, vector<1x8x512xf32>
    %547 = vector.shape_cast %546 : vector<1x8x512xf32> to vector<8x512xf32>
    %cst_171 = arith.constant dense<0.000000e+00> : vector<8x512xf32>
    %548 = tpu.matmul %540, %294, %cst_171 {dimension_numbers = #tpu.dot_dimension_numbers<[1], [0], [0], [1], [0, 0, 1, 1], [], []>} : vector<8x128xf32>, vector<128x512xf32>, vector<8x512xf32> -> vector<8x512xf32>
    %549 = arith.addf %547, %548 : vector<8x512xf32>
    %550 = vector.extract_strided_slice %549 {offsets = [0, 0], sizes = [8, 128], strides = [1, 1]} : vector<8x512xf32> to vector<8x128xf32>
    %551 = arith.negf %550 : vector<8x128xf32>
    %552 = math.exp %551 : vector<8x128xf32>
    %cst_172 = arith.constant 1.000000e+00 : f32
    %553 = vector.broadcast %cst_172 : f32 to vector<8x128xf32>
    %554 = arith.addf %553, %552 : vector<8x128xf32>
    %555 = arith.divf %553, %554 : vector<8x128xf32>
    %556 = vector.extract_strided_slice %549 {offsets = [0, 128], sizes = [8, 128], strides = [1, 1]} : vector<8x512xf32> to vector<8x128xf32>
    %557 = arith.negf %556 : vector<8x128xf32>
    %558 = math.exp %557 : vector<8x128xf32>
    %cst_173 = arith.constant 1.000000e+00 : f32
    %559 = vector.broadcast %cst_173 : f32 to vector<8x128xf32>
    %560 = arith.addf %559, %558 : vector<8x128xf32>
    %561 = arith.divf %559, %560 : vector<8x128xf32>
    %562 = vector.extract_strided_slice %549 {offsets = [0, 256], sizes = [8, 128], strides = [1, 1]} : vector<8x512xf32> to vector<8x128xf32>
    %563 = math.tanh %562 : vector<8x128xf32>
    %564 = vector.extract_strided_slice %549 {offsets = [0, 384], sizes = [8, 128], strides = [1, 1]} : vector<8x512xf32> to vector<8x128xf32>
    %565 = arith.negf %564 : vector<8x128xf32>
    %566 = math.exp %565 : vector<8x128xf32>
    %cst_174 = arith.constant 1.000000e+00 : f32
    %567 = vector.broadcast %cst_174 : f32 to vector<8x128xf32>
    %568 = arith.addf %567, %566 : vector<8x128xf32>
    %569 = arith.divf %567, %568 : vector<8x128xf32>
    %570 = arith.mulf %561, %538 : vector<8x128xf32>
    %571 = arith.mulf %555, %563 : vector<8x128xf32>
    %572 = arith.addf %570, %571 : vector<8x128xf32>
    %573 = math.tanh %572 : vector<8x128xf32>
    %574 = arith.mulf %569, %573 : vector<8x128xf32>
    %575 = arith.index_cast %c7_i32_168 : i32 to index
    %c0_175 = arith.constant 0 : index
    %c0_176 = arith.constant 0 : index
    %576 = vector.load %arg17[%575, %c0_175, %c0_176] : memref<8x8x128xf32, #tpu.memory_space<vmem>>, vector<1x8x128xf32>
    %577 = vector.shape_cast %576 : vector<1x8x128xf32> to vector<8x128xf32>
    %578 = vector.shape_cast %574 : vector<8x128xf32> to vector<1x8x128xf32>
    tpu.vector_store %arg17[%575, %c0_175, %c0_176], %578 {strides = array<i32>} : memref<8x8x128xf32, #tpu.memory_space<vmem>>, vector<1x8x128xf32>,
    %c8_i32_177 = arith.constant 8 : i32
    %c1_178 = arith.constant 1 : index
    %c0_179 = arith.constant 0 : index
    %c0_180 = arith.constant 0 : index
    %579 = vector.load %arg14[%c1_178, %c0_179, %c0_180] : memref<2x8x128xf32, #tpu.memory_space<vmem>>, vector<1x8x128xf32>
    %580 = vector.shape_cast %579 : vector<1x8x128xf32> to vector<8x128xf32>
    %581 = vector.shape_cast %574 : vector<8x128xf32> to vector<1x8x128xf32>
    tpu.vector_store %arg14[%c1_178, %c0_179, %c0_180], %581 {strides = array<i32>} : memref<2x8x128xf32, #tpu.memory_space<vmem>>, vector<1x8x128xf32>,
    %c1_181 = arith.constant 1 : index
    %c0_182 = arith.constant 0 : index
    %c0_183 = arith.constant 0 : index
    %582 = vector.load %arg15[%c1_181, %c0_182, %c0_183] : memref<2x8x128xf32, #tpu.memory_space<vmem>>, vector<1x8x128xf32>
    %583 = vector.shape_cast %582 : vector<1x8x128xf32> to vector<8x128xf32>
    %584 = vector.shape_cast %572 : vector<8x128xf32> to vector<1x8x128xf32>
    tpu.vector_store %arg15[%c1_181, %c0_182, %c0_183], %584 {strides = array<i32>} : memref<2x8x128xf32, #tpu.memory_space<vmem>>, vector<1x8x128xf32>,
    %c0_184 = arith.constant 0 : index
    %c0_185 = arith.constant 0 : index
    %c0_186 = arith.constant 0 : index
    %585 = vector.load %arg17[%c0_184, %c0_185, %c0_186] : memref<8x8x128xf32, #tpu.memory_space<vmem>>, vector<8x8x128xf32>
    %586 = vector.shape_cast %585 : vector<8x8x128xf32> to vector<64x128xf32>
    %c0_187 = arith.constant 0 : index
    %c0_188 = arith.constant 0 : index
    %587 = vector.load %arg8[%c0_187, %c0_188] : memref<128x128xf32, #tpu.memory_space<vmem>>, vector<128x128xf32>
    %cst_189 = arith.constant dense<0.000000e+00> : vector<64x128xf32>
    %588 = tpu.matmul %586, %587, %cst_189 {dimension_numbers = #tpu.dot_dimension_numbers<[1], [0], [0], [1], [0, 0, 1, 1], [], []>} : vector<64x128xf32>, vector<128x128xf32>, vector<64x128xf32> -> vector<64x128xf32>
    %c0_190 = arith.constant 0 : index
    %c0_191 = arith.constant 0 : index
    %589 = vector.load %arg9[%c0_190, %c0_191] : memref<1x128xf32, #tpu.memory_space<vmem>>, vector<1x128xf32>
    %590 = vector.broadcast %589 : vector<1x128xf32> to vector<64x128xf32>
    %591 = arith.addf %588, %590 : vector<64x128xf32>
    %cst_192 = arith.constant dense<0xFF800000> : vector<64xf32>
    %592 = vector.multi_reduction <maximumf>, %591, %cst_192 [1] : vector<64x128xf32> to vector<64xf32>
    %593 = vector.shape_cast %592 : vector<64xf32> to vector<64x1xf32>
    %594 = vector.broadcast %593 : vector<64x1xf32> to vector<64x128xf32>
    %595 = arith.subf %591, %594 : vector<64x128xf32>
    %596 = math.exp %595 : vector<64x128xf32>
    %cst_193 = arith.constant dense<0.000000e+00> : vector<64xf32>
    %597 = vector.multi_reduction <add>, %596, %cst_193 [1] : vector<64x128xf32> to vector<64xf32>
    %598 = vector.shape_cast %597 : vector<64xf32> to vector<64x1xf32>
    %599 = vector.broadcast %598 : vector<64x1xf32> to vector<64x128xf32>
    %600 = arith.divf %596, %599 : vector<64x128xf32>
    %601 = vector.shape_cast %591 : vector<64x128xf32> to vector<8x8x128xf32>
    %602 = tpu.transpose %601, [1, 0, 2] : vector<8x8x128xf32> -> vector<8x8x128xf32>
    %c0_194 = arith.constant 0 : index
    %c0_195 = arith.constant 0 : index
    %c0_196 = arith.constant 0 : index
    %603 = vector.load %arg12[%c0_194, %c0_195, %c0_196] : memref<8x8x128xf32, #tpu.memory_space<vmem>>, vector<8x8x128xf32>
    tpu.vector_store %arg12[%c0_194, %c0_195, %c0_196], %602 {strides = array<i32>} : memref<8x8x128xf32, #tpu.memory_space<vmem>>, vector<8x8x128xf32>,
    %604 = vector.shape_cast %600 : vector<64x128xf32> to vector<8x8x128xf32>
    %605 = tpu.transpose %604, [1, 0, 2] : vector<8x8x128xf32> -> vector<8x8x128xf32>
    %c0_197 = arith.constant 0 : index
    %c0_198 = arith.constant 0 : index
    %c0_199 = arith.constant 0 : index
    %606 = vector.load %arg13[%c0_197, %c0_198, %c0_199] : memref<8x8x128xf32, #tpu.memory_space<vmem>>, vector<8x8x128xf32>
    tpu.vector_store %arg13[%c0_197, %c0_198, %c0_199], %605 {strides = array<i32>} : memref<8x8x128xf32, #tpu.memory_space<vmem>>, vector<8x8x128xf32>,
    return
  }
  func.func @transform_0(%arg0: i32) -> (i32, i32, i32) {
    %c0_i32 = arith.constant 0 : i32
    %c0_i32_0 = arith.constant 0 : i32
    %c0_i32_1 = arith.constant 0 : i32
    return %arg0, %c0_i32, %c0_i32_0 : i32, i32, i32
  }
  func.func @transform_1(%arg0: i32) -> (i32, i32) {
    %c0_i32 = arith.constant 0 : i32
    %c0_i32_0 = arith.constant 0 : i32
    %c0_i32_1 = arith.constant 0 : i32
    return %c0_i32, %c0_i32_0 : i32, i32
  }
  func.func @transform_2(%arg0: i32) -> (i32, i32) {
    %c0_i32 = arith.constant 0 : i32
    %c0_i32_0 = arith.constant 0 : i32
    %c0_i32_1 = arith.constant 0 : i32
    return %c0_i32, %c0_i32_0 : i32, i32
  }
  func.func @transform_3(%arg0: i32) -> (i32, i32) {
    %c0_i32 = arith.constant 0 : i32
    %c0_i32_0 = arith.constant 0 : i32
    %c0_i32_1 = arith.constant 0 : i32
    return %c0_i32, %c0_i32_0 : i32, i32
  }
  func.func @transform_4(%arg0: i32) -> (i32, i32) {
    %c0_i32 = arith.constant 0 : i32
    %c0_i32_0 = arith.constant 0 : i32
    %c0_i32_1 = arith.constant 0 : i32
    return %c0_i32, %c0_i32_0 : i32, i32
  }
  func.func @transform_5(%arg0: i32) -> (i32, i32) {
    %c0_i32 = arith.constant 0 : i32
    %c0_i32_0 = arith.constant 0 : i32
    %c0_i32_1 = arith.constant 0 : i32
    return %c0_i32, %c0_i32_0 : i32, i32
  }
  func.func @transform_6(%arg0: i32) -> (i32, i32) {
    %c0_i32 = arith.constant 0 : i32
    %c0_i32_0 = arith.constant 0 : i32
    %c0_i32_1 = arith.constant 0 : i32
    return %c0_i32, %c0_i32_0 : i32, i32
  }
  func.func @transform_7(%arg0: i32) -> (i32, i32) {
    %c0_i32 = arith.constant 0 : i32
    %c0_i32_0 = arith.constant 0 : i32
    %c0_i32_1 = arith.constant 0 : i32
    return %c0_i32, %c0_i32_0 : i32, i32
  }
  func.func @transform_8(%arg0: i32) -> (i32, i32) {
    %c0_i32 = arith.constant 0 : i32
    %c0_i32_0 = arith.constant 0 : i32
    %c0_i32_1 = arith.constant 0 : i32
    return %c0_i32, %c0_i32_0 : i32, i32
  }
  func.func @transform_9(%arg0: i32) -> (i32, i32, i32) {
    %c0_i32 = arith.constant 0 : i32
    %c0_i32_0 = arith.constant 0 : i32
    %c0_i32_1 = arith.constant 0 : i32
    return %c0_i32, %arg0, %c0_i32_0 : i32, i32, i32
  }
  func.func @transform_10(%arg0: i32) -> (i32, i32, i32) {
    %c0_i32 = arith.constant 0 : i32
    %c0_i32_0 = arith.constant 0 : i32
    %c0_i32_1 = arith.constant 0 : i32
    return %c0_i32, %arg0, %c0_i32_0 : i32, i32, i32
  }
  func.func @transform_11(%arg0: i32) -> (i32, i32, i32) {
    %c0_i32 = arith.constant 0 : i32
    %c0_i32_0 = arith.constant 0 : i32
    %c0_i32_1 = arith.constant 0 : i32
    return %arg0, %c0_i32, %c0_i32_0 : i32, i32, i32
  }
  func.func @transform_12(%arg0: i32) -> (i32, i32, i32) {
    %c0_i32 = arith.constant 0 : i32
    %c0_i32_0 = arith.constant 0 : i32
    %c0_i32_1 = arith.constant 0 : i32
    return %arg0, %c0_i32, %c0_i32_0 : i32, i32, i32
  }
  func.func @transform_13(%arg0: i32) -> (i32, i32, i32) {
    %c0_i32 = arith.constant 0 : i32
    %c0_i32_0 = arith.constant 0 : i32
    %c0_i32_1 = arith.constant 0 : i32
    return %c0_i32, %arg0, %c0_i32_0 : i32, i32, i32
  }
  func.func @transform_14(%arg0: i32) -> (i32, i32, i32) {
    %c0_i32 = arith.constant 0 : i32
    %c0_i32_0 = arith.constant 0 : i32
    %c0_i32_1 = arith.constant 0 : i32
    return %c0_i32, %arg0, %c0_i32_0 : i32, i32, i32
  }
}

</mosaic_0001>

<bundles_post_ra>
// kernel: dkt_translation_forward.1
= control target key start
LH: loop header
LB: loop body
LE: loop exit
PB: predicated region body
PF: predicated region fallthrough
CT: control target
= control target key end

     0   :  { %20 = vsyncpa [#allocation5], 0  ;;  %s7464_s0 = inlined_call_operand.vmem [shape: f32[8,8,32], index: 0, kind: input, shape index: {}]   ;;  %s7465_s1 = inlined_call_operand.hbm [shape: f32[32,512], index: 1, kind: input, shape index: {}]   ;;  %s7466_s2 = inlined_call_operand.hbm [shape: f32[128,512], index: 2, kind: input, shape index: {}]   ;;  %s7467_s3 = inlined_call_operand.vmem [shape: f32[1,512], index: 3, kind: input, shape index: {}]   ;;  %s7468_s4 = inlined_call_operand.hbm [shape: f32[128,512], index: 4, kind: input, shape index: {}]   ;;  %s7469_s5 = inlined_call_operand.hbm [shape: f32[128,512], index: 5, kind: input, shape index: {}]   ;;  %s7470_s6 = inlined_call_operand.vmem [shape: f32[1,512], index: 6, kind: input, shape index: {}]   ;;  %s7471_s7 = inlined_call_operand.hbm [shape: f32[128,128], index: 7, kind: input, shape index: {}]   ;;  %s7472_s8 = inlined_call_operand.vmem [shape: f32[1,128], index: 8, kind: input, shape index: {}]   ;;  %s7473_s9 = inlined_call_operand.vmem [shape: f32[2,8,128], index: 9, kind: input, shape index: {}, may-alias: {9,10}]   ;;  %s7474_s10 = inlined_call_operand.vmem [shape: f32[2,8,128], index: 10, kind: input, shape index: {}, may-alias: {9,10}]   ;;  %s7475_s11 = inlined_call_operand.vmem [shape: f32[8,8,128], index: 11, kind: output, shape index: {0}]   ;;  %s7476_s12 = inlined_call_operand.vmem [shape: f32[8,8,128], index: 12, kind: output, shape index: {1}]   ;;  %s7477_s13 = inlined_call_operand.vmem [shape: f32[2,8,128], index: 13, kind: output, shape index: {2}]   ;;  %s7478_s14 = inlined_call_operand.vmem [shape: f32[2,8,128], index: 14, kind: output, shape index: {3}]  }
   0x1   :  { %21 = vsyncpa [#allocation7], 0 }
   0x2   :  { %22 = vsyncpa [#allocation10], 0  ;;  %s5079_s29 = smov [#allocation6]   ;;  %s5080_s15 = smov [#allocation9]  }
   0x3   :  { %s42_s30 = sshll.u32 %s5079_s29, 4  ;;  %s68_s16 = sshll.u32 %s5080_s15, 4  ;;  %s43_s30 = int_to_ptr.vmem [resolvable:$true] %s42_s30  ;;  %s69_s16 = int_to_ptr.vmem [resolvable:$true] %s68_s16 }
   0x4   :  { %s4981_s17 = scalar_lea.vmem %s43_s30, 8192  ;;  %p4986_p1 = scmp.lt.s32.totalorder %s43_s30, %s43_s30 }
   0x5   :  { %p4982_p0 = scmp.ne.s32.totalorder %s43_s30, %s4981_s17  ;;  %p4987_p2 = scmp.lt.s32.totalorder %s4981_s17, %s4981_s17 }
   0x7   :  { %p4988_p3 = por %p4987_p2, %p4986_p1 }
   0x9   :  { %p4989_p4 = pnand %p4988_p3, %p4982_p0 }
   0xb   :  { %4992 = shalt.err (!%p4989_p4)
}
   0xc   :  { %s5081_s18 = smov 512   ;;  %s5082_s19 = smov 32  }
   0xd   :  { %48 = dma.hbm_to_vmem [thread:$0]  %s7466_s2, 8192, %s43_s30, [#allocation7], %s5081_s18, %s5081_s18, %s5082_s19  }
   0xe   :  { %s5001_s22 = scalar_lea.vmem %s69_s16, 8192  ;;  %p5006_p6 = scmp.lt.s32.totalorder %s69_s16, %s69_s16 }
   0xf   :  { %p5002_p5 = scmp.ne.s32.totalorder %s69_s16, %s5001_s22  ;;  %p5007_p7 = scmp.lt.s32.totalorder %s5001_s22, %s5001_s22 }
  0x11   :  { %p5008_p8 = por %p5007_p7, %p5006_p6 }
  0x13   :  { %p5009_p9 = pnand %p5008_p8, %p5002_p5 }
  0x15   :  { %5012 = shalt.err (!%p5009_p9)
}
  0x16   :  { %74 = dma.hbm_to_vmem [thread:$0]  %s7469_s5, 8192, %s69_s16, [#allocation10], %s5081_s18, %s5081_s18, %s5082_s19  }
  0x17   :  { %s5083_s25 = smov [#allocation4]   ;;  %s5084_s27 = smov [#allocation8]  }
  0x18   :  { %s30_s26 = sshll.u32 %s5083_s25, 4  ;;  %s56_s28 = sshll.u32 %s5084_s27, 4  ;;  %s31_s26 = int_to_ptr.vmem [resolvable:$true] %s30_s26  ;;  %s57_s28 = int_to_ptr.vmem [resolvable:$true] %s56_s28 }
  0x19   :  { %s5021_s2 = scalar_lea.vmem %s31_s26, 2048  ;;  %p5026_p11 = scmp.lt.s32.totalorder %s31_s26, %s31_s26 }
  0x1a   :  { %p5022_p10 = scmp.ne.s32.totalorder %s31_s26, %s5021_s2  ;;  %p5027_p12 = scmp.lt.s32.totalorder %s5021_s2, %s5021_s2 }
  0x1c   :  { %p5028_p13 = por %p5027_p12, %p5026_p11 }
  0x1e   :  { %p5029_p0 = pnand %p5028_p13, %p5022_p10 }
  0x20   :  { %5032 = shalt.err (!%p5029_p0)
}
  0x21   :  { %36 = dma.hbm_to_vmem [thread:$0]  %s7465_s1, 2048, %s31_s26, [#allocation5], %s5081_s18, %s5081_s18, %s5082_s19  }
  0x22   :  { %s5041_s5 = scalar_lea.vmem %s57_s28, 8192  ;;  %p5046_p2 = scmp.lt.s32.totalorder %s57_s28, %s57_s28 }
  0x23   :  { %p5042_p1 = scmp.ne.s32.totalorder %s57_s28, %s5041_s5  ;;  %p5047_p3 = scmp.lt.s32.totalorder %s5041_s5, %s5041_s5 }
  0x25   :  { %p5048_p4 = por %p5047_p3, %p5046_p2 }
  0x27   :  { %p5049_p5 = pnand %p5048_p4, %p5042_p1 }
  0x29   :  { %5052 = shalt.err (!%p5049_p5)
}
  0x2a   :  { %62 = dma.hbm_to_vmem [thread:$0]  %s7468_s4, 8192, %s57_s28, [#allocation7], %s5081_s18, %s5081_s18, %s5082_s19  }
  0x2b   :  { %s5085_s17 = smov [#allocation11]  }
  0x2c   :  { %s82_s20 = sshll.u32 %s5085_s17, 4  ;;  %s83_s20 = int_to_ptr.vmem [resolvable:$true] %s82_s20 }
  0x2d   :  { %s5061_s21 = scalar_lea.vmem %s83_s20, 2048  ;;  %p5066_p7 = scmp.lt.s32.totalorder %s83_s20, %s83_s20 }
  0x2e   :  { %p5062_p6 = scmp.ne.s32.totalorder %s83_s20, %s5061_s21  ;;  %p5067_p8 = scmp.lt.s32.totalorder %s5061_s21, %s5061_s21 }
  0x30   :  { %p5068_p9 = por %p5067_p8, %p5066_p7 }
  0x32   :  { %p5069_p10 = pnand %p5068_p9, %p5062_p6 }
  0x34   :  { %5072 = shalt.err (!%p5069_p10)
}
  0x35   :  { %s5086_s1 = smov 128   ;;  %s5087_s22 = smov 8  }
  0x36   :  { %88 = dma.hbm_to_vmem [thread:$0]  %s7471_s7, 2048, %s83_s20, [#allocation10], %s5086_s1, %s5086_s1, %s5087_s22  }
  0x37   :  { %5073 = dma.done.wait [#allocation5], 2048  }
  0x38   :  { %5074 = vsyncadd [#allocation5], 4294965248 }
  0x39   :  { %5075 = dma.done.wait [#allocation7], 16384  }
  0x3a   :  { %5076 = vsyncadd [#allocation7], 4294950912 }
  0x3b   :  { %5077 = dma.done.wait [#allocation10], 10240  }
  0x3c   :  { %5078 = vsyncadd [#allocation10], 4294957056  ;;  %v7485_v0 = vmov 0.0   ;;  %v5089_v1 = vmov 1983009808   ;;  %v123_v3 = vlaneseq  ;;  %v269_v6 = vld [vmem:[#allocation4 + $0x78] sm:$0xff] }
  0x3d   :  { %558 = vmatprep.mubr.f32.mxu1 %v7485_v0  ;;  %445 = vmatprep.mubr.f32.mxu0 %v7485_v0  ;;  %v121_v2 = vunpack.c.l.s4 %v5089_v1  ;;  %v268_v7 = vld [vmem:[#allocation4 + $0x70] sm:$0xff]  ;;  %v265_v8 = vld [vmem:[#allocation4 + $0x58] sm:$0xff]  ;;  %v5090_v9 = vmov 1934713408   ;;  %v5200_v17 = vld [vmem:[#allocation6 + $0x1e8] sm:$0xff]  ;;  %vm356_vm0 = vcmask 261120  }
  0x3e   :  { %v5195_v5 = vshrl.u32 %v123_v3, 7  ;;  %v185_v10 = vunpack.c.l.s4 %v5090_v9  ;;  %518 = vmatprep.subr.mxu1 %v269_v6  ;;  %v264_v11 = vld [vmem:[#allocation4 + $0x50] sm:$0xff]  ;;  %v261_v12 = vld [vmem:[#allocation4 + $0x38] sm:$0xff]  ;;  %7696 = vst [vmem:[#allocation17_spill] sm:$0xff] %v5200_v17  ;;  %v5238_v39 = vld [vmem:[#allocation6 + $0x1e0] sm:$0xff] }
  0x3f   :  { %v122_v4 = vunpack.c.0.s8 %v121_v2  ;;  %519 = vmatpush1.msra.mxu1 %v268_v7  ;;  %v260_v13 = vld [vmem:[#allocation4 + $0x30] sm:$0xff]  ;;  %v257_v14 = vld [vmem:[#allocation4 + $0x18] sm:$0xff]  ;;  %v5240_v40 = vld [vmem:[#allocation6 + $0x1c8] sm:$0xff] }
  0x40   :  { %7694 = vst [vmem:[#allocation15_spill] sm:$0xff] %v5195_v5  ;;  %520 = vmatprep.subr.mxu1 %v265_v8  ;;  %v256_v15 = vld [vmem:[#allocation4 + $0x10] sm:$0xff]  ;;  %v186_v18 = vunpack.c.0.s8 %v185_v10  ;;  %v4547_v20 = vld [vmem:[%s7464_s0 + $0x8] ss:$16 sps:$4 sm:$0xff]   ;;  %v4554_v35 = vld [vmem:[%s7464_s0 + $0xc] ss:$16 sps:$4 sm:$0xff]  }
  0x41   :  { %v5198_v16 = vsub.s32 %v122_v4, %v5195_v5  ;;  %521 = vmatpush1.msra.mxu1 %v264_v11  ;;  %v4545_v19 = vld [vmem:[%s7464_s0] ss:$16 sps:$4 sm:$0xff]   ;;  %v4551_v22 = vld [vmem:[%s7464_s0 + $0x28] ss:$16 sps:$4 sm:$0xff]   ;;  %v4553_v34 = vld [vmem:[%s7464_s0 + $0x4] ss:$16 sps:$4 sm:$0xff]  }
  0x42   :  { %522 = vmatprep.subr.mxu1 %v261_v12  ;;  %v4549_v21 = vld [vmem:[%s7464_s0 + $0x20] ss:$16 sps:$4 sm:$0xff]   ;;  %v5219_v27 = vsub.s32 %v186_v18, %v5195_v5  ;;  %v4555_v36 = vld [vmem:[%s7464_s0 + $0x24] ss:$16 sps:$4 sm:$0xff]   ;;  %v4556_v37 = vld [vmem:[%s7464_s0 + $0x2c] ss:$16 sps:$4 sm:$0xff]  }
  0x43   :  { %7695 = vst [vmem:[#allocation16_spill] sm:$0xff] %v5198_v16  ;;  %523 = vmatpush1.msra.mxu1 %v260_v13  ;;  %v126_v23 = vrot.slane %v4545_v19, %v5198_v16  ;;  %v142_v24 = vrot.slane %v4547_v20, %v5198_v16  ;;  %v158_v25 = vrot.slane %v4549_v21, %v5198_v16  ;;  %v267_v45 = vld [vmem:[#allocation4 + $0x68] sm:$0xff]  ;;  %v5251_v46 = vld [vmem:[#allocation6 + $0x1c0] sm:$0xff] }
  0x44   :  { %524 = vmatprep.subr.mxu1 %v257_v14  ;;  %v174_v26 = vrot.slane %v4551_v22, %v5198_v16  ;;  %7697 = vst [vmem:[#allocation18_spill] sm:$0xff] %v5219_v27  ;;  %v5247_v44 = vrot.slane %v4553_v34, %v5198_v16  ;;  %v5254_v47 = vrot.slane %v4554_v35, %v5198_v16  ;;  %v266_v50 = vld [vmem:[#allocation4 + $0x60] sm:$0xff]  ;;  %v5264_v51 = vld [vmem:[#allocation6 + $0x1a8] sm:$0xff] }
  0x45   :  { %525 = vmatpush1.msra.mxu1 %v256_v15  ;;  %v182_v28 = vcombine.low %v126_v23, %v142_v24  ;;  %v183_v30 = vcombine.high %v126_v23, %v142_v24  ;;  %v5257_v48 = vrot.slane %v4555_v36, %v5198_v16  ;;  %v5260_v49 = vrot.slane %v4556_v37, %v5198_v16  ;;  %v263_v52 = vld [vmem:[#allocation4 + $0x48] sm:$0xff]  ;;  %v5267_v53 = vld [vmem:[#allocation6 + $0x1a0] sm:$0xff]  ;;  %v5509_v16 = vld [vmem:[#allocation6 + $0x70] sm:$0xff] }
  0x46   :  { %645 = vmatprep.subr.mxu1 %v5200_v17  ;;  %v214_v29 = vcombine.low %v158_v25, %v174_v26  ;;  %v215_v31 = vcombine.high %v158_v25, %v174_v26  ;;  %405 = vmatprep.subr.mxu0 %v267_v45  ;;  %v5270_v54 = vld [vmem:[#allocation6 + $0x188] sm:$0xff]  ;;  %v262_v55 = vld [vmem:[#allocation4 + $0x40] sm:$0xff]  ;;  %v198_v58 = vcombine.low %v5247_v44, %v5254_v47  ;;  %v5414_v45 = vld [vmem:[#allocation6 + $0x1d8] sm:$0xff] }
  0x47   :  { %v190_v32 = vrot.slane %v182_v28, %v5219_v27  ;;  %v197_v42 = vrot.slane %v183_v30, %v5219_v27  ;;  %406 = vmatpush1.msra.mxu0 %v266_v50  ;;  %v5275_v56 = vld [vmem:[#allocation6 + $0x180] sm:$0xff]  ;;  %v230_v59 = vcombine.low %v5257_v48, %v5260_v49  ;;  %v259_v60 = vld [vmem:[#allocation4 + $0x28] sm:$0xff]  ;;  %v199_v14 = vcombine.high %v5247_v44, %v5254_v47  ;;  %v5410_v44 = vld [vmem:[#allocation6 + $0x1f0] sm:$0xff] }
  0x48   :  { %v222_v33 = vrot.slane %v214_v29, %v5219_v27  ;;  %v229_v43 = vrot.slane %v215_v31, %v5219_v27  ;;  %407 = vmatprep.subr.mxu0 %v263_v52  ;;  %v5285_v61 = vld [vmem:[#allocation6 + $0x168] sm:$0xff]  ;;  %v5288_v62 = vld [vmem:[#allocation6 + $0x160] sm:$0xff]  ;;  %v206_v4 = vrot.slane %v198_v58, %v5219_v27  ;;  %v231_v15 = vcombine.high %v5257_v48, %v5260_v49  ;;  %v5419_v47 = vld [vmem:[#allocation6 + $0x1d0] sm:$0xff] }
  0x49   :  { %408 = vmatpush1.msra.mxu0 %v262_v55  ;;  %v5291_v63 = vld [vmem:[#allocation6 + $0x148] sm:$0xff]  ;;  %v258_v1 = vld [vmem:[#allocation4 + $0x20] sm:$0xff]  ;;  %v238_v6 = vrot.slane %v230_v59, %v5219_v27  ;;  %v213_v23 = vrot.slane %v199_v14, %v5219_v27  ;;  %v5422_v48 = vld [vmem:[#allocation6 + $0x1b8] sm:$0xff]  ;;  %7716 = vst [vmem:[#allocation37_spill] sm:$0xff] %v5509_v16 }
  0x4a   :  { %v5236_v38 = vcombine.low %v190_v32, %v222_v33  ;;  %v5242_v41 = vcombine.high %v190_v32, %v222_v33  ;;  %v5277_v57 = vcombine.low %v197_v42, %v229_v43  ;;  %409 = vmatprep.subr.mxu0 %v259_v60  ;;  %v5296_v2 = vld [vmem:[#allocation6 + $0x140] sm:$0xff]  ;;  %v5298_v3 = vcombine.high %v197_v42, %v229_v43  ;;  %v255_v7 = vld [vmem:[#allocation4 + $0x8] sm:$0xff]  ;;  %v5402_v43 = vld [vmem:[#allocation6 + $0x1f8] sm:$0xff] }
  0x4b   :  { %v5304_v8 = vld [vmem:[#allocation6 + $0x128] sm:$0xff]  ;;  %v5307_v9 = vld [vmem:[#allocation6 + $0x120] sm:$0xff]  ;;  %410 = vmatpush1.msra.mxu0 %v258_v1  ;;  %v5317_v13 = vcombine.low %v206_v4, %v238_v6  ;;  %v5340_v22 = vcombine.high %v206_v4, %v238_v6  ;;  %v245_v24 = vrot.slane %v231_v15, %v5219_v27  ;;  %7712 = vst [vmem:[#allocation33_spill] sm:$0xff] %v5402_v43  ;;  %v5426_v49 = vld [vmem:[#allocation6 + $0x1b0] sm:$0xff] }
  0x4c   :  { %4404 = vmatmul.mubr.msk.f32.vlgmr.msra.gmra.mxu1 %vm356_vm0, %v5236_v38  ;;  %v5310_v10 = vld [vmem:[#allocation6 + $0x108] sm:$0xff]  ;;  %411 = vmatprep.subr.mxu0 %v255_v7  ;;  %v254_v11 = vld [vmem:[#allocation4] sm:$0xff]  ;;  %v5430_v50 = vld [vmem:[#allocation6 + $0x198] sm:$0xff] }
  0x4d   :  { %646 = vmatpush1.msra.mxu1 %v5238_v39  ;;  %564 = vmatprep.mubr.f32.mxu1 %v7485_v0  ;;  %v5315_v12 = vld [vmem:[#allocation6 + $0x100] sm:$0xff]  ;;  %v5325_v18 = vld [vmem:[#allocation6 + $0xe8] sm:$0xff]  ;;  %v5361_v30 = vcombine.low %v213_v23, %v245_v24  ;;  %v5380_v35 = vcombine.high %v213_v23, %v245_v24  ;;  %v5434_v52 = vld [vmem:[#allocation6 + $0x190] sm:$0xff] }
  0x4e   :  { %647 = vmatprep.subr.mxu1 %v5240_v40  ;;  %7698 = vst [vmem:[#allocation19_spill] sm:$0xff] %v5325_v18  ;;  %v5328_v19 = vld [vmem:[#allocation6 + $0xe0] sm:$0xff]  ;;  %412 = vmatpush1.msra.mxu0 %v254_v11  ;;  %v5331_v20 = vld [vmem:[#allocation6 + $0xc8] sm:$0xff]  ;;  %v5439_v55 = vld [vmem:[#allocation6 + $0x178] sm:$0xff] }
  0x4f   :  { %648 = vmatpush1.msra.mxu1 %v5251_v46  ;;  %7699 = vst [vmem:[#allocation20_spill] sm:$0xff] %v5328_v19  ;;  %7700 = vst [vmem:[#allocation21_spill] sm:$0xff] %v5331_v20  ;;  %4396 = vmatmul.mubr.msk.f32.vlgmr.msra.gmra.mxu0 %vm356_vm0, %v5236_v38  ;;  %v5338_v21 = vld [vmem:[#allocation6 + $0xc0] sm:$0xff]  ;;  %v5346_v25 = vld [vmem:[#allocation6 + $0xa8] sm:$0xff] }
  0x50   :  { %649 = vmatprep.subr.mxu1 %v5264_v51  ;;  %4405 = vmatmul.mubr.msk.f32.gmra.mxu1 %vm356_vm0, %v5242_v41  ;;  %7701 = vst [vmem:[#allocation22_spill] sm:$0xff] %v5338_v21  ;;  %7702 = vst [vmem:[#allocation23_spill] sm:$0xff] %v5346_v25  ;;  %v5349_v26 = vld [vmem:[#allocation6 + $0xa0] sm:$0xff]  ;;  %v5353_v28 = vld [vmem:[#allocation6 + $0x88] sm:$0xff] }
  0x51   :  { %650 = vmatpush1.msra.mxu1 %v5267_v53  ;;  %570 = vmatprep.mubr.f32.mxu1 %v7485_v0  ;;  %v5359_v29 = vld [vmem:[#allocation6 + $0x80] sm:$0xff]  ;;  %v5365_v31 = vld [vmem:[#allocation6 + $0x68] sm:$0xff]  ;;  %v5443_v58 = vld [vmem:[#allocation6 + $0x170] sm:$0xff] }
  0x52   :  { %651 = vmatprep.subr.mxu1 %v5270_v54  ;;  %821 = vmatprep.subr.mxu0 %v5200_v17  ;;  %7703 = vst [vmem:[#allocation24_spill] sm:$0xff] %v5359_v29  ;;  %7704 = vst [vmem:[#allocation25_spill] sm:$0xff] %v5365_v31  ;;  %v5368_v32 = vld [vmem:[#allocation6 + $0x60] sm:$0xff]  ;;  %v5372_v33 = vld [vmem:[#allocation6 + $0x48] sm:$0xff] }
  0x53   :  { %652 = vmatpush1.msra.mxu1 %v5275_v56  ;;  %822 = vmatpush1.msra.mxu0 %v5238_v39  ;;  %7705 = vst [vmem:[#allocation26_spill] sm:$0xff] %v5368_v32  ;;  %7706 = vst [vmem:[#allocation27_spill] sm:$0xff] %v5372_v33  ;;  %v5378_v34 = vld [vmem:[#allocation6 + $0x40] sm:$0xff]  ;;  %v5384_v36 = vld [vmem:[#allocation6 + $0x28] sm:$0xff] }
  0x54   :  { %653 = vmatprep.subr.mxu1 %v5285_v61  ;;  %4406 = vmatmul.mubr.msk.f32.gmra.mxu1 %vm356_vm0, %v5277_v57  ;;  %7707 = vst [vmem:[#allocation28_spill] sm:$0xff] %v5378_v34  ;;  %7708 = vst [vmem:[#allocation29_spill] sm:$0xff] %v5384_v36  ;;  %v5387_v37 = vld [vmem:[#allocation6 + $0x20] sm:$0xff]  ;;  %v5392_v38 = vld [vmem:[#allocation6 + $0x8] sm:$0xff] }
  0x55   :  { %654 = vmatpush1.msra.mxu1 %v5288_v62  ;;  %576 = vmatprep.mubr.f32.mxu1 %v7485_v0  ;;  %7709 = vst [vmem:[#allocation30_spill] sm:$0xff] %v5387_v37  ;;  %7710 = vst [vmem:[#allocation31_spill] sm:$0xff] %v5392_v38  ;;  %v5398_v42 = vld [vmem:[#allocation6] sm:$0xff]  ;;  %v5447_v59 = vld [vmem:[#allocation6 + $0x158] sm:$0xff] }
  0x56   :  { %655 = vmatprep.subr.mxu1 %v5291_v63  ;;  %451 = vmatprep.mubr.f32.mxu0 %v7485_v0  ;;  %7711 = vst [vmem:[#allocation32_spill] sm:$0xff] %v5398_v42  ;;  %v5455_v60 = vld [vmem:[#allocation6 + $0x138] sm:$0xff]  ;;  %v5459_v1 = vld [vmem:[#allocation6 + $0x130] sm:$0xff] }
  0x57   :  { %656 = vmatpush1.msra.mxu1 %v5296_v2  ;;  %823 = vmatprep.subr.mxu0 %v5240_v40  ;;  %v5464_v4 = vld [vmem:[#allocation6 + $0x118] sm:$0xff]  ;;  %v5468_v6 = vld [vmem:[#allocation6 + $0x110] sm:$0xff] }
  0x58   :  { %657 = vmatprep.subr.mxu1 %v5304_v8  ;;  %4407 = vmatmul.mubr.msk.f32.gmra.mxu1 %vm356_vm0, %v5298_v3  ;;  %v5472_v7 = vld [vmem:[#allocation6 + $0xf8] sm:$0xff]  ;;  %v5484_v14 = vld [vmem:[#allocation6 + $0xd0] sm:$0xff] }
  0x59   :  { %658 = vmatpush1.msra.mxu1 %v5307_v9  ;;  %582 = vmatprep.mubr.f32.mxu1 %v7485_v0  ;;  %v5480_v11 = vld [vmem:[#allocation6 + $0xd8] sm:$0xff]  ;;  %v5493_v23 = vld [vmem:[#allocation6 + $0xb0] sm:$0xff] }
  0x5a   :  { %659 = vmatprep.subr.mxu1 %v5310_v10  ;;  %4397 = vmatmul.mubr.msk.f32.gmra.mxu0 %vm356_vm0, %v5242_v41  ;;  %v5407_v41 = vld [vmem:[%s7473_s9] sm:$0xff]  ;;  %v5489_v15 = vld [vmem:[#allocation6 + $0xb8] sm:$0xff] }
  0x5b   :  { %660 = vmatpush1.msra.mxu1 %v5315_v12  ;;  %824 = vmatpush1.msra.mxu0 %v5251_v46  ;;  %v5497_v24 = vld [vmem:[#allocation6 + $0x98] sm:$0xff] }
  0x5c   :  { %661 = vmatprep.subr.mxu1 %v5325_v18  ;;  %4408 = vmatmul.mubr.msk.f32.gmra.mxu1 %vm356_vm0, %v5317_v13  ;;  %7713 = vst [vmem:[#allocation34_spill] sm:$0xff] %v5497_v24  ;;  %v5505_v27 = vld [vmem:[#allocation6 + $0x78] sm:$0xff] }
  0x5d   :  { %662 = vmatpush1.msra.mxu1 %v5328_v19  ;;  %588 = vmatprep.mubr.f32.mxu1 %v7485_v0  ;;  %7715 = vst [vmem:[#allocation36_spill] sm:$0xff] %v5505_v27 }
  0x5e   :  { %663 = vmatprep.subr.mxu1 %v5331_v20  ;;  %825 = vmatprep.subr.mxu0 %v5264_v51 }
  0x5f   :  { %664 = vmatpush1.msra.mxu1 %v5338_v21  ;;  %826 = vmatpush1.msra.mxu0 %v5267_v53 }
  0x60   :  { %665 = vmatprep.subr.mxu1 %v5346_v25  ;;  %4409 = vmatmul.mubr.msk.f32.gmra.mxu1 %vm356_vm0, %v5340_v22 }
  0x61   :  { %666 = vmatpush1.msra.mxu1 %v5349_v26  ;;  %594 = vmatprep.mubr.f32.mxu1 %v7485_v0 }
  0x62   :  { %667 = vmatprep.subr.mxu1 %v5353_v28  ;;  %457 = vmatprep.mubr.f32.mxu0 %v7485_v0 }
  0x63   :  { %668 = vmatpush1.msra.mxu1 %v5359_v29  ;;  %827 = vmatprep.subr.mxu0 %v5270_v54 }
  0x64   :  { %669 = vmatprep.subr.mxu1 %v5365_v31  ;;  %4410 = vmatmul.mubr.msk.f32.gmra.mxu1 %vm356_vm0, %v5361_v30 }
  0x65   :  { %670 = vmatpush1.msra.mxu1 %v5368_v32  ;;  %600 = vmatprep.mubr.f32.mxu1 %v7485_v0 }
  0x66   :  { %671 = vmatprep.subr.mxu1 %v5372_v33  ;;  %4398 = vmatmul.mubr.msk.f32.gmra.mxu0 %vm356_vm0, %v5277_v57  ;;  %v5451_v57 = vld [vmem:[#allocation6 + $0x150] sm:$0xff] }
  0x67   :  { %672 = vmatpush1.msra.mxu1 %v5378_v34  ;;  %828 = vmatpush1.msra.mxu0 %v5275_v56 }
  0x68   :  { %673 = vmatprep.subr.mxu1 %v5384_v36  ;;  %4411 = vmatmul.mubr.msk.f32.gmra.mxu1 %vm356_vm0, %v5380_v35 }
  0x69   :  { %674 = vmatpush1.msra.mxu1 %v5387_v37  ;;  %709 = vmatprep.mubr.f32.mxu1 %v7485_v0 }
  0x6a   :  { %675 = vmatprep.subr.mxu1 %v5392_v38  ;;  %829 = vmatprep.subr.mxu0 %v5285_v61 }
  0x6b   :  { %676 = vmatpush1.msra.mxu1 %v5398_v42  ;;  %830 = vmatpush1.msra.mxu0 %v5288_v62 }
  0x6c   :  { %716 = vmatprep.subr.mxu1 %v5402_v43  ;;  %710 = vmatmul.mubr.f32.vlgmr.msra.gmra.mxu1 %v5407_v41 }
  0x6d   :  { %717 = vmatpush1.msra.mxu1 %v5410_v44  ;;  %780 = vmatprep.mubr.f32.mxu1 %v7485_v0 }
  0x6e   :  { %718 = vmatprep.subr.mxu1 %v5414_v45  ;;  %463 = vmatprep.mubr.f32.mxu0 %v7485_v0 }
  0x6f   :  { %719 = vmatpush1.msra.mxu1 %v5419_v47  ;;  %831 = vmatprep.subr.mxu0 %v5291_v63 }
  0x70   :  { %720 = vmatprep.subr.mxu1 %v5422_v48  ;;  %4399 = vmatmul.mubr.msk.f32.gmra.mxu0 %vm356_vm0, %v5298_v3  ;;  %v5476_v3 = vld [vmem:[#allocation6 + $0xf0] sm:$0xff] }
  0x71   :  { %721 = vmatpush1.msra.mxu1 %v5426_v49  ;;  %832 = vmatpush1.msra.mxu0 %v5296_v2 }
  0x72   :  { %722 = vmatprep.subr.mxu1 %v5430_v50  ;;  %833 = vmatprep.subr.mxu0 %v5304_v8 }
  0x73   :  { %723 = vmatpush1.msra.mxu1 %v5434_v52  ;;  %834 = vmatpush1.msra.mxu0 %v5307_v9 }
  0x74   :  { %724 = vmatprep.subr.mxu1 %v5439_v55  ;;  %469 = vmatprep.mubr.f32.mxu0 %v7485_v0 }
  0x75   :  { %725 = vmatpush1.msra.mxu1 %v5443_v58  ;;  %835 = vmatprep.subr.mxu0 %v5310_v10 }
  0x76   :  { %726 = vmatprep.subr.mxu1 %v5447_v59  ;;  %4400 = vmatmul.mubr.msk.f32.gmra.mxu0 %vm356_vm0, %v5317_v13  ;;  %v5501_v13 = vld [vmem:[#allocation6 + $0x90] sm:$0xff] }
  0x77   :  { %727 = vmatpush1.msra.mxu1 %v5451_v57  ;;  %836 = vmatpush1.msra.mxu0 %v5315_v12  ;;  %7714 = vst [vmem:[#allocation35_spill] sm:$0xff] %v5501_v13 }
  0x78   :  { %728 = vmatprep.subr.mxu1 %v5455_v60  ;;  %837 = vmatprep.subr.mxu0 %v5325_v18  ;;  %v7721_v18 = vmov 0.0  }
  0x79   :  { %729 = vmatpush1.msra.mxu1 %v5459_v1  ;;  %838 = vmatpush1.msra.mxu0 %v5328_v19  ;;  %v5514_v19 = vld [vmem:[#allocation6 + $0x58] sm:$0xff] }
  0x7a   :  { %730 = vmatprep.subr.mxu1 %v5464_v4  ;;  %475 = vmatprep.mubr.f32.mxu0 %v7485_v0  ;;  %7717 = vst [vmem:[#allocation38_spill] sm:$0xff] %v5514_v19  ;;  %v5518_v0 = vld [vmem:[#allocation6 + $0x50] sm:$0xff] }
  0x7b   :  { %731 = vmatpush1.msra.mxu1 %v5468_v6  ;;  %839 = vmatprep.subr.mxu0 %v5331_v20  ;;  %7718 = vst [vmem:[#allocation39_spill] sm:$0xff] %v5518_v0  ;;  %v5522_v20 = vld [vmem:[#allocation6 + $0x38] sm:$0xff] }
  0x7c   :  { %732 = vmatprep.subr.mxu1 %v5472_v7  ;;  %4401 = vmatmul.mubr.msk.f32.gmra.mxu0 %vm356_vm0, %v5340_v22  ;;  %7719 = vst [vmem:[#allocation40_spill] sm:$0xff] %v5522_v20  ;;  %v5526_v22 = vld [vmem:[#allocation6 + $0x30] sm:$0xff] }
  0x7d   :  { %733 = vmatpush1.msra.mxu1 %v5476_v3  ;;  %840 = vmatpush1.msra.mxu0 %v5338_v21  ;;  %7720 = vst [vmem:[#allocation41_spill] sm:$0xff] %v5526_v22  ;;  %v5530_v21 = vld [vmem:[#allocation6 + $0x18] sm:$0xff] }
  0x7e   :  { %734 = vmatprep.subr.mxu1 %v5480_v11  ;;  %841 = vmatprep.subr.mxu0 %v5346_v25  ;;  %7722 = vst [vmem:[#allocation42_spill] sm:$0xff] %v5530_v21  ;;  %v5534_v25 = vld [vmem:[#allocation6 + $0x10] sm:$0xff] }
  0x7f   :  { %735 = vmatpush1.msra.mxu1 %v5484_v14  ;;  %842 = vmatpush1.msra.mxu0 %v5349_v26  ;;  %7723 = vst [vmem:[#allocation43_spill] sm:$0xff] %v5534_v25 }
  0x80   :  { %736 = vmatprep.subr.mxu1 %v5489_v15  ;;  %481 = vmatprep.mubr.f32.mxu0 %v7721_v18 }
  0x81   :  { %737 = vmatpush1.msra.mxu1 %v5493_v23  ;;  %843 = vmatprep.subr.mxu0 %v5353_v28 }
  0x82   :  { %738 = vmatprep.subr.mxu1 %v5497_v24  ;;  %4402 = vmatmul.mubr.msk.f32.gmra.mxu0 %vm356_vm0, %v5361_v30  ;;  %v7515_v30 = vsub.s32 2, %v5195_v5 }
  0x83   :  { %739 = vmatpush1.msra.mxu1 %v5501_v13  ;;  %844 = vmatpush1.msra.mxu0 %v5359_v29 }
  0x84   :  { %740 = vmatprep.subr.mxu1 %v5505_v27  ;;  %845 = vmatprep.subr.mxu0 %v5365_v31 }
  0x85   :  { %741 = vmatpush1.msra.mxu1 %v5509_v16  ;;  %846 = vmatpush1.msra.mxu0 %v5368_v32 }
  0x86   :  { %742 = vmatprep.subr.mxu1 %v5514_v19  ;;  %487 = vmatprep.mubr.f32.mxu0 %v7721_v18 }
  0x87   :  { %743 = vmatpush1.msra.mxu1 %v5518_v0  ;;  %847 = vmatprep.subr.mxu0 %v5372_v33 }
  0x88   :  { %744 = vmatprep.subr.mxu1 %v5522_v20  ;;  %4403 = vmatmul.mubr.msk.f32.gmra.mxu0 %vm356_vm0, %v5380_v35  ;;  %v334_v35 = vld [vmem:[%s7467_s3] sm:$0xf] }
  0x89   :  { %745 = vmatpush1.msra.mxu1 %v5526_v22  ;;  %848 = vmatpush1.msra.mxu0 %v5378_v34 }
  0x8a   :  { %746 = vmatprep.subr.mxu1 %v5530_v21  ;;  %849 = vmatprep.subr.mxu0 %v5384_v36 }
  0x8b   :  { %747 = vmatpush1.msra.mxu1 %v5534_v25  ;;  %850 = vmatpush1.msra.mxu0 %v5387_v37 }
  0x8c   :  { %781 = vmatmul.mubr.f32.vlgmr.msra.gmra.mxu1 %v5407_v41  ;;  %892 = vmatprep.subr.mxu1 %v5402_v43 }
  0x8d   :  { %893 = vmatpush1.msra.mxu1 %v5410_v44  ;;  %851 = vmatprep.subr.mxu0 %v5392_v38 }
  0x8e   :  { %894 = vmatprep.subr.mxu1 %v5414_v45  ;;  %852 = vmatpush1.msra.mxu0 %v5398_v42  ;;  %v5601_v42 = vrot.slane %v334_v35, %v7515_v30 }
  0x8f   :  { %895 = vmatpush1.msra.mxu1 %v5419_v47  ;;  %885 = vmatprep.mubr.f32.mxu0 %v7721_v18 }
  0x90   :  { %896 = vmatprep.subr.mxu1 %v5422_v48  ;;  %956 = vmatprep.mubr.f32.mxu1 %v7721_v18 }
  0x91   :  { %897 = vmatpush1.msra.mxu1 %v5426_v49  ;;  %998 = vmatprep.subr.mxu0 %v5200_v17  ;;  %v7520_v17 = vsub.s32 3, %v5195_v5 }
  0x92   :  { %898 = vmatprep.subr.mxu1 %v5430_v50 }
  0x93   :  { %899 = vmatpush1.msra.mxu1 %v5434_v52 }
  0x94   :  { %900 = vmatprep.subr.mxu1 %v5439_v55 }
  0x95   :  { %901 = vmatpush1.msra.mxu1 %v5443_v58 }
  0x96   :  { %902 = vmatprep.subr.mxu1 %v5447_v59 }
  0x97   :  { %903 = vmatpush1.msra.mxu1 %v5451_v57 }
  0x98   :  { %904 = vmatprep.subr.mxu1 %v5455_v60 }
  0x99   :  { %905 = vmatpush1.msra.mxu1 %v5459_v1 }
  0x9a   :  { %906 = vmatprep.subr.mxu1 %v5464_v4 }
  0x9b   :  { %907 = vmatpush1.msra.mxu1 %v5468_v6 }
  0x9c   :  { %908 = vmatprep.subr.mxu1 %v5472_v7 }
  0x9d   :  { %909 = vmatpush1.msra.mxu1 %v5476_v3 }
  0x9e   :  { %910 = vmatprep.subr.mxu1 %v5480_v11 }
  0x9f   :  { %911 = vmatpush1.msra.mxu1 %v5484_v14 }
  0xa0   :  { %912 = vmatprep.subr.mxu1 %v5489_v15 }
  0xa1   :  { %913 = vmatpush1.msra.mxu1 %v5493_v23 }
  0xa2   :  { %914 = vmatprep.subr.mxu1 %v5497_v24 }
  0xa3   :  { %915 = vmatpush1.msra.mxu1 %v5501_v13 }
  0xa4   :  { %916 = vmatprep.subr.mxu1 %v5505_v27 }
  0xa5   :  { %917 = vmatpush1.msra.mxu1 %v5509_v16 }
  0xa6   :  { %918 = vmatprep.subr.mxu1 %v5514_v19 }
  0xa7   :  { %919 = vmatpush1.msra.mxu1 %v5518_v0 }
  0xa8   :  { %920 = vmatprep.subr.mxu1 %v5522_v20 }
  0xa9   :  { %921 = vmatpush1.msra.mxu1 %v5526_v22 }
  0xaa   :  { %922 = vmatprep.subr.mxu1 %v5530_v21 }
  0xab   :  { %923 = vmatpush1.msra.mxu1 %v5534_v25 }
  0xac   :  { %1069 = vmatprep.subr.mxu1 %v5402_v43  ;;  %v5605_v43 = vrot.slane %v334_v35, %v7520_v17 }
 0x10c   :  { %v5594_v41 = vpop.f32.mrf.mxu1 }
 0x10e   :  { %v5597_v18 = vpop.f32.mrf.mxu1 }
 0x10f   :  { %v447_v19 = vpop.f32.mrf.mxu0 }
 0x110   :  { %v566_v21 = vpop.f32.mrf.mxu1 }
 0x111   :  { %v5608_v25 = vadd.f32 %v566_v21, %v5601_v42 }
 0x112   :  { %v568_v38 = vpop.f32.mrf.mxu1 }
 0x113   :  { %7724 = vst [vmem:[#allocation44_spill] sm:$0xff] %v5608_v25  ;;  %v5611_v22 = vadd.f32 %v568_v38, %v5605_v43 }
 0x114   :  { %v572_v37 = vpop.f32.mrf.mxu1 }
 0x115   :  { %7725 = vst [vmem:[#allocation45_spill] sm:$0xff] %v5611_v22  ;;  %v5614_v20 = vadd.f32 %v572_v37, %v5601_v42 }
 0x116   :  { %v574_v36 = vpop.f32.mrf.mxu1 }
 0x117   :  { %7726 = vst [vmem:[#allocation46_spill] sm:$0xff] %v5614_v20  ;;  %v5617_v30 = vadd.f32 %v574_v36, %v5605_v43 }
 0x118   :  { %v578_v0 = vpop.f32.mrf.mxu1 }
 0x119   :  { %7727 = vst [vmem:[#allocation47_spill] sm:$0xff] %v5617_v30  ;;  %v5620_v34 = vadd.f32 %v578_v0, %v5601_v42 }
 0x11a   :  { %v580_v17 = vpop.f32.mrf.mxu1 }
 0x11b   :  { %7728 = vst [vmem:[#allocation48_spill] sm:$0xff] %v5620_v34  ;;  %v5623_v21 = vadd.f32 %v580_v17, %v5605_v43 }
 0x11c   :  { %v584_v25 = vpop.f32.mrf.mxu1 }
 0x11d   :  { %7729 = vst [vmem:[#allocation49_spill] sm:$0xff] %v5623_v21  ;;  %v5626_v38 = vadd.f32 %v584_v25, %v5601_v42  ;;  %v7529_v25 = vsub.s32 1, %v5195_v5  ;;  %v7532_v21 = vsub.s32 0, %v5195_v5 }
 0x11e   :  { %v586_v22 = vpop.f32.mrf.mxu1 }
 0x11f   :  { %7730 = vst [vmem:[#allocation50_spill] sm:$0xff] %v5626_v38  ;;  %v5629_v37 = vadd.f32 %v586_v22, %v5605_v43  ;;  %v449_v22 = vpop.f32.mrf.mxu0 }
 0x120   :  { %v590_v20 = vpop.f32.mrf.mxu1 }
 0x121   :  { %7731 = vst [vmem:[#allocation51_spill] sm:$0xff] %v5629_v37  ;;  %v5632_v36 = vadd.f32 %v590_v20, %v5601_v42 }
 0x122   :  { %v592_v30 = vpop.f32.mrf.mxu1 }
 0x123   :  { %7732 = vst [vmem:[#allocation52_spill] sm:$0xff] %v5632_v36  ;;  %v5635_v0 = vadd.f32 %v592_v30, %v5605_v43  ;;  %v5645_v36 = vpop.f32.mrf.mxu0  ;;  %v5652_v30 = vrot.slane %v334_v35, %v7529_v25 }
 0x124   :  { %v596_v34 = vpop.f32.mrf.mxu1  ;;  %7736 = vst [vmem:[#allocation56_spill] sm:$0xff] %v5645_v36 }
 0x125   :  { %7733 = vst [vmem:[#allocation53_spill] sm:$0xff] %v5635_v0  ;;  %v5638_v17 = vadd.f32 %v596_v34, %v5601_v42  ;;  %7738 = vst [vmem:[#allocation58_spill] sm:$0xff] %v5652_v30  ;;  %v5656_v34 = vrot.slane %v334_v35, %v7532_v21  ;;  %v450_v36 = vadd.f32 %v449_v22, %v5652_v30 }
 0x126   :  { %v598_v38 = vpop.f32.mrf.mxu1 }
 0x127   :  { %7734 = vst [vmem:[#allocation54_spill] sm:$0xff] %v5638_v17  ;;  %v5643_v37 = vadd.f32 %v598_v38, %v5605_v43 }
 0x128   :  { %v602_v20 = vpop.f32.mrf.mxu1 }
 0x129   :  { %7735 = vst [vmem:[#allocation55_spill] sm:$0xff] %v5643_v37  ;;  %v5648_v33 = vadd.f32 %v602_v20, %v5601_v42  ;;  %v5661_v37 = vpop.f32.mrf.mxu0  ;;  %v448_v20 = vadd.f32 %v447_v19, %v5656_v34 }
 0x12a   :  { %v604_v17 = vpop.f32.mrf.mxu1  ;;  %7740 = vst [vmem:[#allocation60_spill] sm:$0xff] %v5661_v37 }
 0x12b   :  { %7737 = vst [vmem:[#allocation57_spill] sm:$0xff] %v5648_v33  ;;  %v5659_v0 = vadd.f32 %v604_v17, %v5605_v43  ;;  %v459_v16 = vpop.f32.mrf.mxu0 }
 0x12c   :  { %v711_v38 = vpop.f32.mrf.mxu1  ;;  %v5666_v25 = vadd.f32 %v459_v16, %v5656_v34 }
 0x12d   :  { %7739 = vst [vmem:[#allocation59_spill] sm:$0xff] %v5659_v0  ;;  %v787_v5 = vadd.f32 %v711_v38, %v448_v20  ;;  %v461_v35 = vpop.f32.mrf.mxu0 }
 0x12e   :  { %v713_v33 = vpop.f32.mrf.mxu1  ;;  %7741 = vst [vmem:[#allocation61_spill] sm:$0xff] %v5666_v25  ;;  %v5669_v21 = vadd.f32 %v461_v35, %v5652_v30  ;;  %v7771_v25 = vld [vmem:[#allocation32_spill] sm:$0xff] }
 0x12f   :  { %v788_v32 = vadd.f32 %v713_v33, %v450_v36  ;;  %v4412_v0 = vmul.f32 -1.442695, %v787_v5 }
 0x130   :  { %7742 = vst [vmem:[#allocation62_spill] sm:$0xff] %v5669_v21  ;;  %v465_v27 = vpop.f32.mrf.mxu0  ;;  %v7770_v21 = vld [vmem:[#allocation42_spill] sm:$0xff] }
 0x131   :  { %v4413_v17 = vmul.f32 -1.442695, %v788_v32  ;;  %v5672_v37 = vadd.f32 %v465_v27, %v5656_v34 }
 0x132   :  { %v467_v22 = vpop.f32.mrf.mxu0 }
 0x133   :  { %7743 = vst [vmem:[#allocation63_spill] sm:$0xff] %v5672_v37  ;;  %4557 = vpow2.f32 %v4413_v17  ;;  %v5675_v19 = vadd.f32 %v467_v22, %v5652_v30  ;;  %v7769_v37 = vld [vmem:[#allocation31_spill] sm:$0xff] }
 0x134   :  { %4559 = vpow2.f32 %v4412_v0 }
 0x135   :  { %7744 = vst [vmem:[#allocation64_spill] sm:$0xff] %v5675_v19 }
 0x136   :  { %v471_v33 = vpop.f32.mrf.mxu0 }
 0x137   :  { %v5678_v16 = vadd.f32 %v471_v33, %v5656_v34 }
 0x138   :  { %v473_v36 = vpop.f32.mrf.mxu0 }
 0x139   :  { %7745 = vst [vmem:[#allocation65_spill] sm:$0xff] %v5678_v16  ;;  %v5681_v38 = vadd.f32 %v473_v36, %v5652_v30  ;;  %v561_v36 = vadd.f32 %v5594_v41, %v5601_v42  ;;  %v640_v41 = vld [vmem:[%s7474_s10] sm:$0xff] }
 0x13b   :  { %7746 = vst [vmem:[#allocation66_spill] sm:$0xff] %v5681_v38 }
 0x13c   :  { %v477_v32 = vpop.f32.mrf.mxu0 }
 0x13d   :  { %v5684_v5 = vadd.f32 %v477_v32, %v5656_v34 }
 0x13e   :  { %v479_v27 = vpop.f32.mrf.mxu0 }
 0x13f   :  { %7747 = vst [vmem:[#allocation67_spill] sm:$0xff] %v5684_v5  ;;  %v5687_v20 = vadd.f32 %v479_v27, %v5652_v30  ;;  %v563_v27 = vadd.f32 %v5597_v18, %v5605_v43 }
 0x140   :  { %v4558_v35 = vpop.eup %4557 }
 0x141   :  { %7748 = vst [vmem:[#allocation68_spill] sm:$0xff] %v5687_v20  ;;  %v4560_v17 = vpop.eup %4559  ;;  %v800_v0 = vadd.f32 1.0, %v4558_v35 }
 0x142   :  { %v483_v22 = vpop.f32.mrf.mxu0  ;;  %v794_v33 = vadd.f32 1.0, %v4560_v17 }
 0x143   :  { %v5690_v19 = vadd.f32 %v483_v22, %v5656_v34  ;;  %4561 = vrcp.f32 %v800_v0 }
 0x144   :  { %v485_v16 = vpop.f32.mrf.mxu0  ;;  %4563 = vrcp.f32 %v794_v33 }
 0x145   :  { %7749 = vst [vmem:[#allocation69_spill] sm:$0xff] %v5690_v19  ;;  %v5695_v38 = vadd.f32 %v485_v16, %v5652_v30 }
 0x147   :  { %7750 = vst [vmem:[#allocation70_spill] sm:$0xff] %v5695_v38 }
 0x148   :  { %v489_v22 = vpop.f32.mrf.mxu0 }
 0x149   :  { %v5700_v17 = vadd.f32 %v489_v22, %v5656_v34  ;;  %v7757_v22 = vld [vmem:[#allocation23_spill] sm:$0xff] }
 0x14b   :  { %7751 = vst [vmem:[#allocation71_spill] sm:$0xff] %v5700_v17  ;;  %v7767_v17 = vld [vmem:[#allocation30_spill] sm:$0xff] }
 0x14c   :  { %v782_v32 = vpop.f32.mrf.mxu1 }
 0x14d   :  { %v789_v20 = vadd.f32 %v782_v32, %v561_v36 }
 0x14e   :  { %v784_v5 = vpop.f32.mrf.mxu1 }
 0x14f   :  { %4565 = vtanh.f32 %v789_v20  ;;  %v790_v35 = vadd.f32 %v784_v5, %v563_v27  ;;  %v7755_v27 = vld [vmem:[#allocation21_spill] sm:$0xff] }
 0x150   :  { %v4562_v42 = vpop.eup %4561 }
 0x151   :  { %v4414_v19 = vmul.f32 -1.442695, %v790_v35  ;;  %v4564_v16 = vpop.eup %4563  ;;  %v810_v18 = vmul.f32 %v4562_v42, %v640_v41  ;;  %v7756_v35 = vld [vmem:[#allocation22_spill] sm:$0xff]  ;;  %v7758_v42 = vld [vmem:[#allocation36_spill] sm:$0xff] }
 0x152   :  { %v7759_v41 = vld [vmem:[#allocation26_spill] sm:$0xff] }
 0x153   :  { %4567 = vpow2.f32 %v4414_v19  ;;  %v7753_v19 = vld [vmem:[#allocation19_spill] sm:$0xff] }
 0x15c   :  { %v4566_v38 = vpop.eup %4565 }
 0x15d   :  { %v811_v43 = vmul.f32 %v4566_v38, %v4564_v16  ;;  %v7754_v38 = vld [vmem:[#allocation20_spill] sm:$0xff]  ;;  %v7760_v16 = vld [vmem:[#allocation37_spill] sm:$0xff] }
 0x15f   :  { %v5705_v0 = vadd.f32 %v811_v43, %v810_v18  ;;  %v7761_v18 = vld [vmem:[#allocation27_spill] sm:$0xff]  ;;  %v7762_v43 = vld [vmem:[#allocation38_spill] sm:$0xff] }
 0x160   :  { %v4568_v33 = vpop.eup %4567 }
 0x161   :  { %v807_v20 = vadd.f32 1.0, %v4568_v33  ;;  %4569 = vtanh.f32 %v5705_v0  ;;  %v7763_v33 = vld [vmem:[#allocation28_spill] sm:$0xff] }
 0x163   :  { %4571 = vrcp.f32 %v807_v20  ;;  %v7764_v20 = vld [vmem:[#allocation39_spill] sm:$0xff] }
 0x16e   :  { %v4570_v5 = vpop.eup %4569 }
 0x170   :  { %v4572_v36 = vpop.eup %4571 }
 0x171   :  { %v5708_v32 = vmul.f32 %v4572_v36, %v4570_v5  ;;  %v7765_v5 = vld [vmem:[#allocation29_spill] sm:$0xff]  ;;  %v7766_v36 = vld [vmem:[#allocation40_spill] sm:$0xff] }
 0x173   :  { %7752 = vst [vmem:[#allocation72_spill] sm:$0xff] %v5708_v32  ;;  %886 = vmatmul.mubr.f32.vlgmr.msra.gmra.mxu0 %v5708_v32  ;;  %957 = vmatmul.mubr.f32.vlgmr.msra.gmra.mxu1 %v5708_v32  ;;  %v7768_v32 = vld [vmem:[#allocation41_spill] sm:$0xff] }
 0x174   :  { %999 = vmatpush1.msra.mxu0 %v5238_v39  ;;  %1070 = vmatpush1.msra.mxu1 %v5410_v44 }
 0x175   :  { %1000 = vmatprep.subr.mxu0 %v5240_v40  ;;  %1071 = vmatprep.subr.mxu1 %v5414_v45 }
 0x176   :  { %1001 = vmatpush1.msra.mxu0 %v5251_v46  ;;  %1072 = vmatpush1.msra.mxu1 %v5419_v47 }
 0x177   :  { %1002 = vmatprep.subr.mxu0 %v5264_v51  ;;  %1073 = vmatprep.subr.mxu1 %v5422_v48 }
 0x178   :  { %1003 = vmatpush1.msra.mxu0 %v5267_v53  ;;  %1074 = vmatpush1.msra.mxu1 %v5426_v49 }
 0x179   :  { %1004 = vmatprep.subr.mxu0 %v5270_v54  ;;  %1075 = vmatprep.subr.mxu1 %v5430_v50 }
 0x17a   :  { %1005 = vmatpush1.msra.mxu0 %v5275_v56  ;;  %1076 = vmatpush1.msra.mxu1 %v5434_v52 }
 0x17b   :  { %1006 = vmatprep.subr.mxu0 %v5285_v61  ;;  %1077 = vmatprep.subr.mxu1 %v5439_v55 }
 0x17c   :  { %1007 = vmatpush1.msra.mxu0 %v5288_v62  ;;  %1078 = vmatpush1.msra.mxu1 %v5443_v58 }
 0x17d   :  { %1008 = vmatprep.subr.mxu0 %v5291_v63  ;;  %1079 = vmatprep.subr.mxu1 %v5447_v59 }
 0x17e   :  { %1009 = vmatpush1.msra.mxu0 %v5296_v2  ;;  %1080 = vmatpush1.msra.mxu1 %v5451_v57 }
 0x17f   :  { %1010 = vmatprep.subr.mxu0 %v5304_v8  ;;  %1081 = vmatprep.subr.mxu1 %v5455_v60 }
 0x180   :  { %1011 = vmatpush1.msra.mxu0 %v5307_v9  ;;  %1082 = vmatpush1.msra.mxu1 %v5459_v1 }
 0x181   :  { %1012 = vmatprep.subr.mxu0 %v5310_v10  ;;  %1083 = vmatprep.subr.mxu1 %v5464_v4 }
 0x182   :  { %1013 = vmatpush1.msra.mxu0 %v5315_v12  ;;  %1084 = vmatpush1.msra.mxu1 %v5468_v6 }
 0x183   :  { %1014 = vmatprep.subr.mxu0 %v7753_v19  ;;  %1085 = vmatprep.subr.mxu1 %v5472_v7 }
 0x184   :  { %1015 = vmatpush1.msra.mxu0 %v7754_v38  ;;  %1086 = vmatpush1.msra.mxu1 %v5476_v3 }
 0x185   :  { %1016 = vmatprep.subr.mxu0 %v7755_v27  ;;  %1087 = vmatprep.subr.mxu1 %v5480_v11 }
 0x186   :  { %1017 = vmatpush1.msra.mxu0 %v7756_v35  ;;  %1088 = vmatpush1.msra.mxu1 %v5484_v14 }
 0x187   :  { %1018 = vmatprep.subr.mxu0 %v7757_v22  ;;  %1089 = vmatprep.subr.mxu1 %v5489_v15 }
 0x188   :  { %1019 = vmatpush1.msra.mxu0 %v5349_v26  ;;  %1090 = vmatpush1.msra.mxu1 %v5493_v23 }
 0x189   :  { %1020 = vmatprep.subr.mxu0 %v5353_v28  ;;  %1091 = vmatprep.subr.mxu1 %v5497_v24 }
 0x18a   :  { %1021 = vmatpush1.msra.mxu0 %v5359_v29  ;;  %1092 = vmatpush1.msra.mxu1 %v5501_v13  ;;  %v7780_v13 = vld [vmem:[#allocation44_spill] sm:$0xff] }
 0x18b   :  { %1022 = vmatprep.subr.mxu0 %v5365_v31  ;;  %1093 = vmatprep.subr.mxu1 %v7758_v42  ;;  %v7779_v31 = vld [vmem:[#allocation45_spill] sm:$0xff] }
 0x18c   :  { %1023 = vmatpush1.msra.mxu0 %v7759_v41  ;;  %1094 = vmatpush1.msra.mxu1 %v7760_v16 }
 0x18d   :  { %1024 = vmatprep.subr.mxu0 %v7761_v18  ;;  %1095 = vmatprep.subr.mxu1 %v7762_v43  ;;  %v7772_v18 = vmov 0.0   ;;  %v7773_v43 = vld [vmem:[#allocation43_spill] sm:$0xff] }
 0x18e   :  { %1025 = vmatpush1.msra.mxu0 %v7763_v33  ;;  %1096 = vmatpush1.msra.mxu1 %v7764_v20  ;;  %v7774_v20 = vld [vmem:[#allocation17_spill] sm:$0xff] }
 0x18f   :  { %1026 = vmatprep.subr.mxu0 %v7765_v5  ;;  %1097 = vmatprep.subr.mxu1 %v7766_v36  ;;  %v7775_v5 = vld [vmem:[#allocation33_spill] sm:$0xff]  ;;  %v5778_v36 = vpop.f32.mrf.mxu0 }
 0x190   :  { %1027 = vmatpush1.msra.mxu0 %v7767_v17  ;;  %1098 = vmatpush1.msra.mxu1 %v7768_v32  ;;  %7776 = vst [vmem:[#allocation19_spill] sm:$0xff] %v5778_v36  ;;  %v7777_v32 = vld [vmem:[#allocation56_spill] sm:$0xff] }
 0x191   :  { %1028 = vmatprep.subr.mxu0 %v7769_v37  ;;  %1099 = vmatprep.subr.mxu1 %v7770_v21  ;;  %v454_v17 = vadd.f32 %v7777_v32, %v5656_v34  ;;  %v7778_v21 = vld [vmem:[#allocation60_spill] sm:$0xff] }
 0x192   :  { %1029 = vmatpush1.msra.mxu0 %v7771_v25  ;;  %1062 = vmatprep.mubr.f32.mxu0 %v7772_v18  ;;  %v456_v33 = vadd.f32 %v7778_v21, %v5652_v30  ;;  %v6117_v30 = vld [vmem:[#allocation6 + $0x58] sm:$0xff] }
 0x193   :  { %1100 = vmatpush1.msra.mxu1 %v7773_v43  ;;  %1133 = vmatprep.mubr.f32.mxu1 %v7772_v18 }
 0x194   :  { %1175 = vmatprep.subr.mxu0 %v7774_v20  ;;  %1246 = vmatprep.subr.mxu1 %v7775_v5 }
 0x233   :  { %v887_v37 = vpop.f32.mrf.mxu0  ;;  %v958_v43 = vpop.f32.mrf.mxu1 }
 0x234   :  { %v963_v25 = vadd.f32 %v887_v37, %v454_v17  ;;  %v965_v36 = vadd.f32 %v958_v43, %v7780_v13 }
 0x235   :  { %v889_v16 = vpop.f32.mrf.mxu0  ;;  %v960_v20 = vpop.f32.mrf.mxu1 }
 0x236   :  { %v4415_v41 = vmul.f32 -1.442695, %v963_v25  ;;  %v964_v42 = vadd.f32 %v889_v16, %v456_v33  ;;  %v966_v5 = vadd.f32 %v960_v20, %v7779_v31  ;;  %v7805_v20 = vld [vmem:[#allocation62_spill] sm:$0xff] }
 0x238   :  { %4573 = vpow2.f32 %v4415_v41  ;;  %v4416_v18 = vmul.f32 -1.442695, %v964_v42  ;;  %v4417_v29 = vmul.f32 -1.442695, %v966_v5 }
 0x23a   :  { %4575 = vpow2.f32 %v4416_v18 }
 0x23b   :  { %4577 = vtanh.f32 %v965_v36 }
 0x23c   :  { %4579 = vpow2.f32 %v4417_v29  ;;  %v7799_v29 = vld [vmem:[#allocation32_spill] sm:$0xff] }
 0x245   :  { %v4574_v24 = vpop.eup %4573 }
 0x246   :  { %v970_v34 = vadd.f32 1.0, %v4574_v24 }
 0x247   :  { %v4576_v32 = vpop.eup %4575 }
 0x248   :  { %4581 = vrcp.f32 %v970_v34  ;;  %v976_v21 = vadd.f32 1.0, %v4576_v32  ;;  %v4578_v37 = vpop.eup %4577 }
 0x249   :  { %v4580_v25 = vpop.eup %4579 }
 0x24a   :  { %4583 = vrcp.f32 %v976_v21  ;;  %v983_v16 = vadd.f32 1.0, %v4580_v25  ;;  %v7806_v25 = vld [vmem:[#allocation47_spill] sm:$0xff] }
 0x24c   :  { %4585 = vrcp.f32 %v983_v16 }
 0x255   :  { %v4582_v17 = vpop.eup %4581 }
 0x256   :  { %v987_v41 = vmul.f32 %v4582_v17, %v4578_v37 }
 0x257   :  { %v4584_v42 = vpop.eup %4583 }
 0x258   :  { %v986_v18 = vmul.f32 %v4584_v42, %v5705_v0  ;;  %v7800_v0 = vmov 0.0  }
 0x259   :  { %v4586_v24 = vpop.eup %4585 }
 0x25a   :  { %v5787_v31 = vadd.f32 %v987_v41, %v986_v18  ;;  %v7807_v41 = vld [vmem:[#allocation46_spill] sm:$0xff] }
 0x25c   :  { %4587 = vtanh.f32 %v5787_v31 }
 0x269   :  { %v4588_v13 = vpop.eup %4587 }
 0x26a   :  { %v5790_v43 = vmul.f32 %v4588_v13, %v4586_v24 }
 0x26c   :  { %7781 = vst [vmem:[#allocation20_spill] sm:$0xff] %v5790_v43  ;;  %1063 = vmatmul.mubr.f32.vlgmr.msra.gmra.mxu0 %v5790_v43  ;;  %1134 = vmatmul.mubr.f32.vlgmr.msra.gmra.mxu1 %v5790_v43  ;;  %v6129_v43 = vld [vmem:[#allocation6 + $0x30] sm:$0xff] }
 0x26d   :  { %1176 = vmatpush1.msra.mxu0 %v5238_v39  ;;  %1247 = vmatpush1.msra.mxu1 %v5410_v44  ;;  %v7782_v39 = vld [vmem:[#allocation34_spill] sm:$0xff] }
 0x26e   :  { %1177 = vmatprep.subr.mxu0 %v5240_v40  ;;  %1248 = vmatprep.subr.mxu1 %v5414_v45  ;;  %v7783_v40 = vld [vmem:[#allocation24_spill] sm:$0xff] }
 0x26f   :  { %1178 = vmatpush1.msra.mxu0 %v5251_v46  ;;  %1249 = vmatpush1.msra.mxu1 %v5419_v47  ;;  %v7784_v46 = vld [vmem:[#allocation35_spill] sm:$0xff] }
 0x270   :  { %1179 = vmatprep.subr.mxu0 %v5264_v51  ;;  %1250 = vmatprep.subr.mxu1 %v5422_v48  ;;  %v7785_v51 = vld [vmem:[#allocation25_spill] sm:$0xff] }
 0x271   :  { %1180 = vmatpush1.msra.mxu0 %v5267_v53  ;;  %1251 = vmatpush1.msra.mxu1 %v5426_v49  ;;  %v7786_v53 = vld [vmem:[#allocation36_spill] sm:$0xff] }
 0x272   :  { %1181 = vmatprep.subr.mxu0 %v5270_v54  ;;  %1252 = vmatprep.subr.mxu1 %v5430_v50  ;;  %v7787_v54 = vld [vmem:[#allocation26_spill] sm:$0xff] }
 0x273   :  { %1182 = vmatpush1.msra.mxu0 %v5275_v56  ;;  %1253 = vmatpush1.msra.mxu1 %v5434_v52  ;;  %v7788_v56 = vld [vmem:[#allocation37_spill] sm:$0xff] }
 0x274   :  { %1183 = vmatprep.subr.mxu0 %v5285_v61  ;;  %1254 = vmatprep.subr.mxu1 %v5439_v55  ;;  %v7789_v61 = vld [vmem:[#allocation27_spill] sm:$0xff] }
 0x275   :  { %1184 = vmatpush1.msra.mxu0 %v5288_v62  ;;  %1255 = vmatpush1.msra.mxu1 %v5443_v58  ;;  %v7790_v62 = vld [vmem:[#allocation38_spill] sm:$0xff]  ;;  %7826 = vst [vmem:[#allocation27_spill] sm:$0xff] %v6117_v30 }
 0x276   :  { %1185 = vmatprep.subr.mxu0 %v5291_v63  ;;  %1256 = vmatprep.subr.mxu1 %v5447_v59  ;;  %v7791_v63 = vld [vmem:[#allocation28_spill] sm:$0xff] }
 0x277   :  { %1186 = vmatpush1.msra.mxu0 %v5296_v2  ;;  %1257 = vmatpush1.msra.mxu1 %v5451_v57  ;;  %v7792_v2 = vld [vmem:[#allocation39_spill] sm:$0xff] }
 0x278   :  { %1187 = vmatprep.subr.mxu0 %v5304_v8  ;;  %1258 = vmatprep.subr.mxu1 %v5455_v60  ;;  %v7793_v8 = vld [vmem:[#allocation29_spill] sm:$0xff]  ;;  %7829 = vst [vmem:[#allocation39_spill] sm:$0xff] %v6129_v43 }
 0x279   :  { %1188 = vmatpush1.msra.mxu0 %v5307_v9  ;;  %1259 = vmatpush1.msra.mxu1 %v5459_v1  ;;  %v7794_v9 = vld [vmem:[#allocation40_spill] sm:$0xff] }
 0x27a   :  { %1189 = vmatprep.subr.mxu0 %v5310_v10  ;;  %1260 = vmatprep.subr.mxu1 %v5464_v4  ;;  %v7795_v10 = vld [vmem:[#allocation30_spill] sm:$0xff] }
 0x27b   :  { %1190 = vmatpush1.msra.mxu0 %v5315_v12  ;;  %1261 = vmatpush1.msra.mxu1 %v5468_v6  ;;  %v7796_v12 = vld [vmem:[#allocation41_spill] sm:$0xff] }
 0x27c   :  { %1191 = vmatprep.subr.mxu0 %v7753_v19  ;;  %1262 = vmatprep.subr.mxu1 %v5472_v7  ;;  %v7801_v19 = vld [vmem:[#allocation43_spill] sm:$0xff] }
 0x27d   :  { %1192 = vmatpush1.msra.mxu0 %v7754_v38  ;;  %1263 = vmatpush1.msra.mxu1 %v5476_v3  ;;  %v5858_v38 = vld [vmem:[#allocation6 + $0x1e8] sm:$0xff] }
 0x27e   :  { %1193 = vmatprep.subr.mxu0 %v7755_v27  ;;  %1264 = vmatprep.subr.mxu1 %v5480_v11  ;;  %7802 = vst [vmem:[#allocation21_spill] sm:$0xff] %v5858_v38  ;;  %v7803_v27 = vld [vmem:[#allocation33_spill] sm:$0xff] }
 0x27f   :  { %1194 = vmatpush1.msra.mxu0 %v7756_v35  ;;  %1265 = vmatpush1.msra.mxu1 %v5484_v14 }
 0x280   :  { %1195 = vmatprep.subr.mxu0 %v7757_v22  ;;  %1266 = vmatprep.subr.mxu1 %v5489_v15  ;;  %v7804_v22 = vld [vmem:[#allocation61_spill] sm:$0xff] }
 0x281   :  { %1196 = vmatpush1.msra.mxu0 %v5349_v26  ;;  %1267 = vmatpush1.msra.mxu1 %v5493_v23  ;;  %v7797_v26 = vld [vmem:[#allocation31_spill] sm:$0xff] }
 0x282   :  { %1197 = vmatprep.subr.mxu0 %v5353_v28  ;;  %1268 = vmatprep.subr.mxu1 %v7782_v39  ;;  %v7798_v28 = vld [vmem:[#allocation42_spill] sm:$0xff] }
 0x283   :  { %1198 = vmatpush1.msra.mxu0 %v7783_v40  ;;  %1269 = vmatpush1.msra.mxu1 %v7784_v46 }
 0x284   :  { %1199 = vmatprep.subr.mxu0 %v7785_v51  ;;  %1270 = vmatprep.subr.mxu1 %v7786_v53 }
 0x285   :  { %1200 = vmatpush1.msra.mxu0 %v7787_v54  ;;  %1271 = vmatpush1.msra.mxu1 %v7788_v56 }
 0x286   :  { %1201 = vmatprep.subr.mxu0 %v7789_v61  ;;  %1272 = vmatprep.subr.mxu1 %v7790_v62 }
 0x287   :  { %1202 = vmatpush1.msra.mxu0 %v7791_v63  ;;  %1273 = vmatpush1.msra.mxu1 %v7792_v2 }
 0x288   :  { %1203 = vmatprep.subr.mxu0 %v7793_v8  ;;  %1274 = vmatprep.subr.mxu1 %v7794_v9 }
 0x289   :  { %1204 = vmatpush1.msra.mxu0 %v7795_v10  ;;  %1275 = vmatpush1.msra.mxu1 %v7796_v12 }
 0x28a   :  { %1205 = vmatprep.subr.mxu0 %v7797_v26  ;;  %1276 = vmatprep.subr.mxu1 %v7798_v28 }
 0x28b   :  { %1206 = vmatpush1.msra.mxu0 %v7799_v29  ;;  %1239 = vmatprep.mubr.f32.mxu0 %v7800_v0 }
 0x28c   :  { %1277 = vmatpush1.msra.mxu1 %v7801_v19  ;;  %1310 = vmatprep.mubr.f32.mxu1 %v7800_v0 }
 0x28d   :  { %1352 = vmatprep.subr.mxu0 %v5858_v38  ;;  %1423 = vmatprep.subr.mxu1 %v7803_v27 }
 0x32c   :  { %v1064_v35 = vpop.f32.mrf.mxu0  ;;  %v1135_v32 = vpop.f32.mrf.mxu1 }
 0x32d   :  { %v1140_v33 = vadd.f32 %v1064_v35, %v7804_v22  ;;  %v1142_v42 = vadd.f32 %v1135_v32, %v7807_v41  ;;  %v7820_v41 = vld [vmem:[#allocation49_spill] sm:$0xff] }
 0x32e   :  { %v1066_v5 = vpop.f32.mrf.mxu0  ;;  %v1137_v37 = vpop.f32.mrf.mxu1 }
 0x32f   :  { %v4418_v36 = vmul.f32 -1.442695, %v1140_v33  ;;  %v1141_v34 = vadd.f32 %v1066_v5, %v7805_v20  ;;  %v1143_v17 = vadd.f32 %v1137_v37, %v7806_v25  ;;  %v5874_v33 = vld [vmem:[#allocation6 + $0x1e0] sm:$0xff] }
 0x330   :  { %v5882_v5 = vld [vmem:[#allocation6 + $0x1c0] sm:$0xff] }
 0x331   :  { %4589 = vpow2.f32 %v4418_v36  ;;  %v4419_v21 = vmul.f32 -1.442695, %v1141_v34  ;;  %v4420_v16 = vmul.f32 -1.442695, %v1143_v17  ;;  %v5886_v36 = vld [vmem:[#allocation6 + $0x1a8] sm:$0xff]  ;;  %v5890_v20 = vld [vmem:[#allocation6 + $0x1a0] sm:$0xff] }
 0x333   :  { %4591 = vpow2.f32 %v4419_v21  ;;  %v7819_v21 = vld [vmem:[#allocation64_spill] sm:$0xff] }
 0x334   :  { %4593 = vtanh.f32 %v1142_v42 }
 0x335   :  { %4595 = vpow2.f32 %v4420_v16  ;;  %v7821_v16 = vld [vmem:[#allocation48_spill] sm:$0xff] }
 0x33e   :  { %v4590_v18 = vpop.eup %4589 }
 0x33f   :  { %v1147_v24 = vadd.f32 1.0, %v4590_v18 }
 0x340   :  { %v4592_v13 = vpop.eup %4591 }
 0x341   :  { %4597 = vrcp.f32 %v1147_v24  ;;  %v1153_v40 = vadd.f32 1.0, %v4592_v13  ;;  %v4594_v51 = vpop.eup %4593 }
 0x342   :  { %v4596_v54 = vpop.eup %4595 }
 0x343   :  { %4599 = vrcp.f32 %v1153_v40  ;;  %v1160_v10 = vadd.f32 1.0, %v4596_v54 }
 0x345   :  { %4601 = vrcp.f32 %v1160_v10 }
 0x34e   :  { %v4598_v61 = vpop.eup %4597 }
 0x34f   :  { %v1164_v63 = vmul.f32 %v4598_v61, %v4594_v51 }
 0x350   :  { %v4600_v8 = vpop.eup %4599 }
 0x351   :  { %v1163_v26 = vmul.f32 %v4600_v8, %v5787_v31  ;;  %v5878_v31 = vld [vmem:[#allocation6 + $0x1c8] sm:$0xff] }
 0x352   :  { %v4602_v27 = vpop.eup %4601 }
 0x353   :  { %v5867_v29 = vadd.f32 %v1164_v63, %v1163_v26 }
 0x355   :  { %4603 = vtanh.f32 %v5867_v29 }
 0x362   :  { %v4604_v35 = vpop.eup %4603 }
 0x363   :  { %v5870_v22 = vmul.f32 %v4604_v35, %v4602_v27 }
 0x365   :  { %7808 = vst [vmem:[#allocation22_spill] sm:$0xff] %v5870_v22  ;;  %1240 = vmatmul.mubr.f32.vlgmr.msra.gmra.mxu0 %v5870_v22  ;;  %1311 = vmatmul.mubr.f32.vlgmr.msra.gmra.mxu1 %v5870_v22  ;;  %v6125_v22 = vld [vmem:[#allocation6 + $0x38] sm:$0xff] }
 0x366   :  { %1353 = vmatpush1.msra.mxu0 %v5874_v33  ;;  %1424 = vmatpush1.msra.mxu1 %v5410_v44  ;;  %v5894_v44 = vld [vmem:[#allocation6 + $0x188] sm:$0xff]  ;;  %7828 = vst [vmem:[#allocation28_spill] sm:$0xff] %v6125_v22 }
 0x367   :  { %1354 = vmatprep.subr.mxu0 %v5878_v31  ;;  %1425 = vmatprep.subr.mxu1 %v5414_v45  ;;  %v5898_v45 = vld [vmem:[#allocation6 + $0x180] sm:$0xff] }
 0x368   :  { %1355 = vmatpush1.msra.mxu0 %v5882_v5  ;;  %1426 = vmatpush1.msra.mxu1 %v5419_v47  ;;  %v5902_v47 = vld [vmem:[#allocation6 + $0x168] sm:$0xff] }
 0x369   :  { %1356 = vmatprep.subr.mxu0 %v5886_v36  ;;  %1427 = vmatprep.subr.mxu1 %v5422_v48  ;;  %v5906_v48 = vld [vmem:[#allocation6 + $0x160] sm:$0xff] }
 0x36a   :  { %1357 = vmatpush1.msra.mxu0 %v5890_v20  ;;  %1428 = vmatpush1.msra.mxu1 %v5426_v49  ;;  %v5910_v49 = vld [vmem:[#allocation6 + $0x148] sm:$0xff] }
 0x36b   :  { %1358 = vmatprep.subr.mxu0 %v5894_v44  ;;  %1429 = vmatprep.subr.mxu1 %v5430_v50  ;;  %v5914_v50 = vld [vmem:[#allocation6 + $0x140] sm:$0xff] }
 0x36c   :  { %1359 = vmatpush1.msra.mxu0 %v5898_v45  ;;  %1430 = vmatpush1.msra.mxu1 %v5434_v52  ;;  %v5918_v52 = vld [vmem:[#allocation6 + $0x128] sm:$0xff] }
 0x36d   :  { %1360 = vmatprep.subr.mxu0 %v5902_v47  ;;  %1431 = vmatprep.subr.mxu1 %v5439_v55  ;;  %v5922_v55 = vld [vmem:[#allocation6 + $0x120] sm:$0xff] }
 0x36e   :  { %1361 = vmatpush1.msra.mxu0 %v5906_v48  ;;  %1432 = vmatpush1.msra.mxu1 %v5443_v58  ;;  %v5926_v58 = vld [vmem:[#allocation6 + $0x108] sm:$0xff] }
 0x36f   :  { %1362 = vmatprep.subr.mxu0 %v5910_v49  ;;  %1433 = vmatprep.subr.mxu1 %v5447_v59  ;;  %v5930_v59 = vld [vmem:[#allocation6 + $0x100] sm:$0xff] }
 0x370   :  { %1363 = vmatpush1.msra.mxu0 %v5914_v50  ;;  %1434 = vmatpush1.msra.mxu1 %v5451_v57  ;;  %v5934_v57 = vld [vmem:[#allocation6 + $0xe8] sm:$0xff] }
 0x371   :  { %1364 = vmatprep.subr.mxu0 %v5918_v52  ;;  %1435 = vmatprep.subr.mxu1 %v5455_v60  ;;  %v5938_v60 = vld [vmem:[#allocation6 + $0xe0] sm:$0xff] }
 0x372   :  { %1365 = vmatpush1.msra.mxu0 %v5922_v55  ;;  %1436 = vmatpush1.msra.mxu1 %v5459_v1  ;;  %v5942_v1 = vld [vmem:[#allocation6 + $0xc8] sm:$0xff] }
 0x373   :  { %1366 = vmatprep.subr.mxu0 %v5926_v58  ;;  %1437 = vmatprep.subr.mxu1 %v5464_v4  ;;  %v5946_v4 = vld [vmem:[#allocation6 + $0xc0] sm:$0xff] }
 0x374   :  { %1367 = vmatpush1.msra.mxu0 %v5930_v59  ;;  %1438 = vmatpush1.msra.mxu1 %v5468_v6  ;;  %v5950_v6 = vld [vmem:[#allocation6 + $0xa8] sm:$0xff] }
 0x375   :  { %1368 = vmatprep.subr.mxu0 %v5934_v57  ;;  %1439 = vmatprep.subr.mxu1 %v5472_v7  ;;  %v5954_v7 = vld [vmem:[#allocation6 + $0xa0] sm:$0xff] }
 0x376   :  { %1369 = vmatpush1.msra.mxu0 %v5938_v60  ;;  %1440 = vmatpush1.msra.mxu1 %v5476_v3  ;;  %v5958_v3 = vld [vmem:[#allocation6 + $0x88] sm:$0xff] }
 0x377   :  { %1370 = vmatprep.subr.mxu0 %v5942_v1  ;;  %1441 = vmatprep.subr.mxu1 %v5480_v11  ;;  %v5962_v11 = vld [vmem:[#allocation6 + $0x80] sm:$0xff] }
 0x378   :  { %1371 = vmatpush1.msra.mxu0 %v5946_v4  ;;  %1442 = vmatpush1.msra.mxu1 %v5484_v14  ;;  %v5966_v14 = vld [vmem:[#allocation6 + $0x68] sm:$0xff] }
 0x379   :  { %1372 = vmatprep.subr.mxu0 %v5950_v6  ;;  %1443 = vmatprep.subr.mxu1 %v5489_v15  ;;  %7809 = vst [vmem:[#allocation23_spill] sm:$0xff] %v5966_v14  ;;  %v5970_v15 = vld [vmem:[#allocation6 + $0x60] sm:$0xff] }
 0x37a   :  { %1373 = vmatpush1.msra.mxu0 %v5954_v7  ;;  %1444 = vmatpush1.msra.mxu1 %v5493_v23  ;;  %7810 = vst [vmem:[#allocation17_spill] sm:$0xff] %v5970_v15  ;;  %v5974_v23 = vld [vmem:[#allocation6 + $0x48] sm:$0xff] }
 0x37b   :  { %1374 = vmatprep.subr.mxu0 %v5958_v3  ;;  %1445 = vmatprep.subr.mxu1 %v7782_v39  ;;  %7811 = vst [vmem:[#allocation56_spill] sm:$0xff] %v5974_v23  ;;  %v5978_v39 = vld [vmem:[#allocation6 + $0x40] sm:$0xff] }
 0x37c   :  { %1375 = vmatpush1.msra.mxu0 %v5962_v11  ;;  %1446 = vmatpush1.msra.mxu1 %v7784_v46  ;;  %7812 = vst [vmem:[#allocation60_spill] sm:$0xff] %v5978_v39  ;;  %v5982_v46 = vld [vmem:[#allocation6 + $0x28] sm:$0xff] }
 0x37d   :  { %1376 = vmatprep.subr.mxu0 %v5966_v14  ;;  %1447 = vmatprep.subr.mxu1 %v7786_v53  ;;  %7813 = vst [vmem:[#allocation45_spill] sm:$0xff] %v5982_v46  ;;  %v5986_v53 = vld [vmem:[#allocation6 + $0x20] sm:$0xff] }
 0x37e   :  { %1377 = vmatpush1.msra.mxu0 %v5970_v15  ;;  %1448 = vmatpush1.msra.mxu1 %v7788_v56  ;;  %7814 = vst [vmem:[#allocation44_spill] sm:$0xff] %v5986_v53  ;;  %v5990_v56 = vld [vmem:[#allocation6 + $0x8] sm:$0xff] }
 0x37f   :  { %1378 = vmatprep.subr.mxu0 %v5974_v23  ;;  %1449 = vmatprep.subr.mxu1 %v7790_v62  ;;  %7815 = vst [vmem:[#allocation34_spill] sm:$0xff] %v5990_v56  ;;  %v5994_v62 = vld [vmem:[#allocation6] sm:$0xff] }
 0x380   :  { %1379 = vmatpush1.msra.mxu0 %v5978_v39  ;;  %1450 = vmatpush1.msra.mxu1 %v7792_v2  ;;  %7816 = vst [vmem:[#allocation24_spill] sm:$0xff] %v5994_v62  ;;  %v6001_v2 = vld [vmem:[#allocation6 + $0x1f8] sm:$0xff] }
 0x381   :  { %1380 = vmatprep.subr.mxu0 %v5982_v46  ;;  %1451 = vmatprep.subr.mxu1 %v7794_v9  ;;  %7817 = vst [vmem:[#allocation35_spill] sm:$0xff] %v6001_v2 }
 0x382   :  { %1381 = vmatpush1.msra.mxu0 %v5986_v53  ;;  %1452 = vmatpush1.msra.mxu1 %v7796_v12  ;;  %v7818_v12 = vld [vmem:[#allocation63_spill] sm:$0xff] }
 0x383   :  { %1382 = vmatprep.subr.mxu0 %v5990_v56  ;;  %1453 = vmatprep.subr.mxu1 %v7798_v28 }
 0x384   :  { %1383 = vmatpush1.msra.mxu0 %v5994_v62  ;;  %1416 = vmatprep.mubr.f32.mxu0 %v7800_v0 }
 0x385   :  { %1454 = vmatpush1.msra.mxu1 %v7801_v19  ;;  %1487 = vmatprep.mubr.f32.mxu1 %v7800_v0 }
 0x386   :  { %1529 = vmatprep.subr.mxu0 %v5858_v38  ;;  %1600 = vmatprep.subr.mxu1 %v6001_v2 }
 0x425   :  { %v1241_v9 = vpop.f32.mrf.mxu0  ;;  %v1312_v25 = vpop.f32.mrf.mxu1 }
 0x426   :  { %v1317_v34 = vadd.f32 %v1241_v9, %v7818_v12  ;;  %v1319_v18 = vadd.f32 %v1312_v25, %v7821_v16  ;;  %v6033_v25 = vld [vmem:[#allocation6 + $0x1b0] sm:$0xff]  ;;  %v6053_v16 = vld [vmem:[#allocation6 + $0x158] sm:$0xff] }
 0x427   :  { %v1243_v28 = vpop.f32.mrf.mxu0  ;;  %v1314_v19 = vpop.f32.mrf.mxu1 }
 0x428   :  { %v4421_v32 = vmul.f32 -1.442695, %v1317_v34  ;;  %v1318_v37 = vadd.f32 %v1243_v28, %v7819_v21  ;;  %v1320_v42 = vadd.f32 %v1314_v19, %v7820_v41  ;;  %v6025_v21 = vld [vmem:[#allocation6 + $0x1d0] sm:$0xff]  ;;  %v6045_v41 = vld [vmem:[#allocation6 + $0x178] sm:$0xff] }
 0x429   :  { %v6041_v19 = vld [vmem:[#allocation6 + $0x190] sm:$0xff] }
 0x42a   :  { %4605 = vpow2.f32 %v4421_v32  ;;  %v4422_v17 = vmul.f32 -1.442695, %v1318_v37  ;;  %v4423_v24 = vmul.f32 -1.442695, %v1320_v42  ;;  %v6017_v32 = vld [vmem:[#allocation6 + $0x1f0] sm:$0xff]  ;;  %v6029_v37 = vld [vmem:[#allocation6 + $0x1b8] sm:$0xff] }
 0x42b   :  { %v6049_v42 = vld [vmem:[#allocation6 + $0x170] sm:$0xff] }
 0x42c   :  { %4607 = vpow2.f32 %v4422_v17  ;;  %v6037_v17 = vld [vmem:[#allocation6 + $0x198] sm:$0xff] }
 0x42d   :  { %4609 = vtanh.f32 %v1319_v18  ;;  %v6057_v18 = vld [vmem:[#allocation6 + $0x150] sm:$0xff] }
 0x42e   :  { %4611 = vpow2.f32 %v4423_v24  ;;  %v6061_v24 = vld [vmem:[#allocation6 + $0x138] sm:$0xff] }
 0x437   :  { %v4606_v13 = vpop.eup %4605 }
 0x438   :  { %v1324_v40 = vadd.f32 1.0, %v4606_v13  ;;  %v6065_v13 = vld [vmem:[#allocation6 + $0x130] sm:$0xff] }
 0x439   :  { %v4608_v51 = vpop.eup %4607 }
 0x43a   :  { %4613 = vrcp.f32 %v1324_v40  ;;  %v1330_v54 = vadd.f32 1.0, %v4608_v51  ;;  %v4610_v61 = vpop.eup %4609  ;;  %v6069_v40 = vld [vmem:[#allocation6 + $0x118] sm:$0xff]  ;;  %v6073_v51 = vld [vmem:[#allocation6 + $0x110] sm:$0xff] }
 0x43b   :  { %v4612_v63 = vpop.eup %4611 }
 0x43c   :  { %4615 = vrcp.f32 %v1330_v54  ;;  %v1337_v27 = vadd.f32 1.0, %v4612_v63  ;;  %v6077_v54 = vld [vmem:[#allocation6 + $0xf8] sm:$0xff] }
 0x43d   :  { %v6085_v63 = vld [vmem:[#allocation6 + $0xd8] sm:$0xff] }
 0x43e   :  { %4617 = vrcp.f32 %v1337_v27  ;;  %v6101_v27 = vld [vmem:[#allocation6 + $0x98] sm:$0xff] }
 0x447   :  { %v4614_v8 = vpop.eup %4613 }
 0x448   :  { %v1341_v10 = vmul.f32 %v4614_v8, %v4610_v61  ;;  %v6081_v61 = vld [vmem:[#allocation6 + $0xf0] sm:$0xff] }
 0x449   :  { %v4616_v26 = vpop.eup %4615  ;;  %v6089_v8 = vld [vmem:[#allocation6 + $0xd0] sm:$0xff] }
 0x44a   :  { %v1340_v35 = vmul.f32 %v4616_v26, %v5867_v29  ;;  %v6021_v29 = vld [vmem:[#allocation6 + $0x1d8] sm:$0xff]  ;;  %v6097_v26 = vld [vmem:[#allocation6 + $0xb0] sm:$0xff] }
 0x44b   :  { %v4618_v12 = vpop.eup %4617 }
 0x44c   :  { %v6009_v9 = vadd.f32 %v1341_v10, %v1340_v35  ;;  %v6093_v10 = vld [vmem:[#allocation6 + $0xb8] sm:$0xff]  ;;  %v6105_v35 = vld [vmem:[#allocation6 + $0x90] sm:$0xff] }
 0x44d   :  { %7823 = vst [vmem:[#allocation36_spill] sm:$0xff] %v6105_v35 }
 0x44e   :  { %4619 = vtanh.f32 %v6009_v9 }
 0x45b   :  { %v4620_v34 = vpop.eup %4619 }
 0x45c   :  { %v6012_v28 = vmul.f32 %v4620_v34, %v4618_v12  ;;  %v6109_v12 = vld [vmem:[#allocation6 + $0x78] sm:$0xff]  ;;  %v6113_v34 = vld [vmem:[#allocation6 + $0x70] sm:$0xff] }
 0x45d   :  { %7824 = vst [vmem:[#allocation26_spill] sm:$0xff] %v6109_v12  ;;  %7825 = vst [vmem:[#allocation37_spill] sm:$0xff] %v6113_v34 }
 0x45e   :  { %7822 = vst [vmem:[#allocation25_spill] sm:$0xff] %v6012_v28  ;;  %1417 = vmatmul.mubr.f32.vlgmr.msra.gmra.mxu0 %v6012_v28  ;;  %1488 = vmatmul.mubr.f32.vlgmr.msra.gmra.mxu1 %v6012_v28  ;;  %v6121_v28 = vld [vmem:[#allocation6 + $0x50] sm:$0xff] }
 0x45f   :  { %1530 = vmatpush1.msra.mxu0 %v5874_v33  ;;  %1601 = vmatpush1.msra.mxu1 %v6017_v32  ;;  %7827 = vst [vmem:[#allocation38_spill] sm:$0xff] %v6121_v28 }
 0x460   :  { %1531 = vmatprep.subr.mxu0 %v5878_v31  ;;  %1602 = vmatprep.subr.mxu1 %v6021_v29 }
 0x461   :  { %1532 = vmatpush1.msra.mxu0 %v5882_v5  ;;  %1603 = vmatpush1.msra.mxu1 %v6025_v21 }
 0x462   :  { %1533 = vmatprep.subr.mxu0 %v5886_v36  ;;  %1604 = vmatprep.subr.mxu1 %v6029_v37 }
 0x463   :  { %1534 = vmatpush1.msra.mxu0 %v5890_v20  ;;  %1605 = vmatpush1.msra.mxu1 %v6033_v25 }
 0x464   :  { %1535 = vmatprep.subr.mxu0 %v5894_v44  ;;  %1606 = vmatprep.subr.mxu1 %v6037_v17 }
 0x465   :  { %1536 = vmatpush1.msra.mxu0 %v5898_v45  ;;  %1607 = vmatpush1.msra.mxu1 %v6041_v19 }
 0x466   :  { %1537 = vmatprep.subr.mxu0 %v5902_v47  ;;  %1608 = vmatprep.subr.mxu1 %v6045_v41 }
 0x467   :  { %1538 = vmatpush1.msra.mxu0 %v5906_v48  ;;  %1609 = vmatpush1.msra.mxu1 %v6049_v42 }
 0x468   :  { %1539 = vmatprep.subr.mxu0 %v5910_v49  ;;  %1610 = vmatprep.subr.mxu1 %v6053_v16 }
 0x469   :  { %1540 = vmatpush1.msra.mxu0 %v5914_v50  ;;  %1611 = vmatpush1.msra.mxu1 %v6057_v18 }
 0x46a   :  { %1541 = vmatprep.subr.mxu0 %v5918_v52  ;;  %1612 = vmatprep.subr.mxu1 %v6061_v24 }
 0x46b   :  { %1542 = vmatpush1.msra.mxu0 %v5922_v55  ;;  %1613 = vmatpush1.msra.mxu1 %v6065_v13 }
 0x46c   :  { %1543 = vmatprep.subr.mxu0 %v5926_v58  ;;  %1614 = vmatprep.subr.mxu1 %v6069_v40 }
 0x46d   :  { %1544 = vmatpush1.msra.mxu0 %v5930_v59  ;;  %1615 = vmatpush1.msra.mxu1 %v6073_v51 }
 0x46e   :  { %1545 = vmatprep.subr.mxu0 %v5934_v57  ;;  %1616 = vmatprep.subr.mxu1 %v6077_v54 }
 0x46f   :  { %1546 = vmatpush1.msra.mxu0 %v5938_v60  ;;  %1617 = vmatpush1.msra.mxu1 %v6081_v61 }
 0x470   :  { %1547 = vmatprep.subr.mxu0 %v5942_v1  ;;  %1618 = vmatprep.subr.mxu1 %v6085_v63 }
 0x471   :  { %1548 = vmatpush1.msra.mxu0 %v5946_v4  ;;  %1619 = vmatpush1.msra.mxu1 %v6089_v8 }
 0x472   :  { %1549 = vmatprep.subr.mxu0 %v5950_v6  ;;  %1620 = vmatprep.subr.mxu1 %v6093_v10 }
 0x473   :  { %1550 = vmatpush1.msra.mxu0 %v5954_v7  ;;  %1621 = vmatpush1.msra.mxu1 %v6097_v26 }
 0x474   :  { %1551 = vmatprep.subr.mxu0 %v5958_v3  ;;  %1622 = vmatprep.subr.mxu1 %v6101_v27 }
 0x475   :  { %1552 = vmatpush1.msra.mxu0 %v5962_v11  ;;  %1623 = vmatpush1.msra.mxu1 %v6105_v35 }
 0x476   :  { %1553 = vmatprep.subr.mxu0 %v5966_v14  ;;  %1624 = vmatprep.subr.mxu1 %v6109_v12  ;;  %v7835_v12 = vld [vmem:[#allocation50_spill] sm:$0xff] }
 0x477   :  { %1554 = vmatpush1.msra.mxu0 %v5970_v15  ;;  %1625 = vmatpush1.msra.mxu1 %v6113_v34  ;;  %v7834_v15 = vld [vmem:[#allocation51_spill] sm:$0xff] }
 0x478   :  { %1555 = vmatprep.subr.mxu0 %v5974_v23  ;;  %1626 = vmatprep.subr.mxu1 %v6117_v30  ;;  %v6133_v30 = vld [vmem:[#allocation6 + $0x18] sm:$0xff] }
 0x479   :  { %1556 = vmatpush1.msra.mxu0 %v5978_v39  ;;  %1627 = vmatpush1.msra.mxu1 %v6121_v28  ;;  %7830 = vst [vmem:[#allocation29_spill] sm:$0xff] %v6133_v30 }
 0x47a   :  { %1557 = vmatprep.subr.mxu0 %v5982_v46  ;;  %1628 = vmatprep.subr.mxu1 %v6125_v22  ;;  %v6138_v46 = vld [vmem:[#allocation6 + $0x10] sm:$0xff] }
 0x47b   :  { %1558 = vmatpush1.msra.mxu0 %v5986_v53  ;;  %1629 = vmatpush1.msra.mxu1 %v6129_v43  ;;  %7831 = vst [vmem:[#allocation40_spill] sm:$0xff] %v6138_v46 }
 0x47c   :  { %1559 = vmatprep.subr.mxu0 %v5990_v56  ;;  %1630 = vmatprep.subr.mxu1 %v6133_v30  ;;  %v7832_v56 = vld [vmem:[#allocation65_spill] sm:$0xff]  ;;  %v7833_v30 = vld [vmem:[#allocation66_spill] sm:$0xff] }
 0x47d   :  { %1560 = vmatpush1.msra.mxu0 %v5994_v62  ;;  %1593 = vmatprep.mubr.f32.mxu0 %v7800_v0 }
 0x47e   :  { %1631 = vmatpush1.msra.mxu1 %v6138_v46  ;;  %1664 = vmatprep.mubr.f32.mxu1 %v7800_v0 }
 0x47f   :  { %1706 = vmatprep.subr.mxu0 %v5858_v38  ;;  %1777 = vmatprep.subr.mxu1 %v6001_v2 }
 0x51e   :  { %v1418_v43 = vpop.f32.mrf.mxu0  ;;  %v1489_v62 = vpop.f32.mrf.mxu1 }
 0x51f   :  { %v1494_v53 = vadd.f32 %v1418_v43, %v7832_v56  ;;  %v1496_v0 = vadd.f32 %v1489_v62, %v7835_v12  ;;  %v7838_v62 = vld [vmem:[#allocation23_spill] sm:$0xff]  ;;  %v7842_v12 = vld [vmem:[#allocation56_spill] sm:$0xff] }
 0x520   :  { %v1420_v22 = vpop.f32.mrf.mxu0  ;;  %v1491_v34 = vpop.f32.mrf.mxu1 }
 0x521   :  { %v4424_v28 = vmul.f32 -1.442695, %v1494_v53  ;;  %v1495_v39 = vadd.f32 %v1420_v22, %v7833_v30  ;;  %v1497_v46 = vadd.f32 %v1491_v34, %v7834_v15  ;;  %v7843_v34 = vld [vmem:[#allocation27_spill] sm:$0xff] }
 0x523   :  { %4621 = vpow2.f32 %v4424_v28  ;;  %v4425_v23 = vmul.f32 -1.442695, %v1495_v39  ;;  %v4426_v14 = vmul.f32 -1.442695, %v1497_v46 }
 0x525   :  { %4623 = vpow2.f32 %v4425_v23 }
 0x526   :  { %4625 = vtanh.f32 %v1496_v0 }
 0x527   :  { %4627 = vpow2.f32 %v4426_v14  ;;  %v7837_v14 = vld [vmem:[#allocation36_spill] sm:$0xff] }
 0x530   :  { %v4622_v38 = vpop.eup %4621 }
 0x531   :  { %v1501_v35 = vadd.f32 1.0, %v4622_v38 }
 0x532   :  { %v4624_v2 = vpop.eup %4623 }
 0x533   :  { %4629 = vrcp.f32 %v1501_v35  ;;  %v1507_v43 = vadd.f32 1.0, %v4624_v2  ;;  %v4626_v53 = vpop.eup %4625  ;;  %v7839_v2 = vld [vmem:[#allocation26_spill] sm:$0xff]  ;;  %v7841_v35 = vld [vmem:[#allocation37_spill] sm:$0xff] }
 0x534   :  { %v4628_v30 = vpop.eup %4627 }
 0x535   :  { %4631 = vrcp.f32 %v1507_v43  ;;  %v1514_v23 = vadd.f32 1.0, %v4628_v30  ;;  %v7844_v43 = vld [vmem:[#allocation60_spill] sm:$0xff]  ;;  %v7846_v30 = vld [vmem:[#allocation45_spill] sm:$0xff] }
 0x537   :  { %4633 = vrcp.f32 %v1514_v23  ;;  %v7850_v23 = vld [vmem:[#allocation34_spill] sm:$0xff] }
 0x540   :  { %v4630_v22 = vpop.eup %4629 }
 0x541   :  { %v1518_v56 = vmul.f32 %v4630_v22, %v4626_v53  ;;  %v7845_v53 = vld [vmem:[#allocation38_spill] sm:$0xff]  ;;  %v7847_v22 = vld [vmem:[#allocation28_spill] sm:$0xff] }
 0x542   :  { %v4632_v39 = vpop.eup %4631 }
 0x543   :  { %v1517_v28 = vmul.f32 %v4632_v39, %v6009_v9  ;;  %v7840_v9 = vld [vmem:[#allocation17_spill] sm:$0xff]  ;;  %v7849_v39 = vld [vmem:[#allocation39_spill] sm:$0xff] }
 0x544   :  { %v4634_v38 = vpop.eup %4633 }
 0x545   :  { %v6149_v15 = vadd.f32 %v1518_v56, %v1517_v28  ;;  %v7848_v56 = vld [vmem:[#allocation44_spill] sm:$0xff]  ;;  %v7851_v28 = vld [vmem:[#allocation29_spill] sm:$0xff] }
 0x547   :  { %4635 = vtanh.f32 %v6149_v15 }
 0x554   :  { %v4636_v0 = vpop.eup %4635 }
 0x555   :  { %v6152_v46 = vmul.f32 %v4636_v0, %v4634_v38  ;;  %v7852_v38 = vld [vmem:[#allocation24_spill] sm:$0xff]  ;;  %v7853_v0 = vmov 0.0  }
 0x557   :  { %7836 = vst [vmem:[#allocation30_spill] sm:$0xff] %v6152_v46  ;;  %1594 = vmatmul.mubr.f32.vlgmr.msra.gmra.mxu0 %v6152_v46  ;;  %1665 = vmatmul.mubr.f32.vlgmr.msra.gmra.mxu1 %v6152_v46  ;;  %v7854_v46 = vld [vmem:[#allocation40_spill] sm:$0xff] }
 0x558   :  { %1707 = vmatpush1.msra.mxu0 %v5874_v33  ;;  %1778 = vmatpush1.msra.mxu1 %v6017_v32 }
 0x559   :  { %1708 = vmatprep.subr.mxu0 %v5878_v31  ;;  %1779 = vmatprep.subr.mxu1 %v6021_v29 }
 0x55a   :  { %1709 = vmatpush1.msra.mxu0 %v5882_v5  ;;  %1780 = vmatpush1.msra.mxu1 %v6025_v21 }
 0x55b   :  { %1710 = vmatprep.subr.mxu0 %v5886_v36  ;;  %1781 = vmatprep.subr.mxu1 %v6029_v37 }
 0x55c   :  { %1711 = vmatpush1.msra.mxu0 %v5890_v20  ;;  %1782 = vmatpush1.msra.mxu1 %v6033_v25 }
 0x55d   :  { %1712 = vmatprep.subr.mxu0 %v5894_v44  ;;  %1783 = vmatprep.subr.mxu1 %v6037_v17 }
 0x55e   :  { %1713 = vmatpush1.msra.mxu0 %v5898_v45  ;;  %1784 = vmatpush1.msra.mxu1 %v6041_v19 }
 0x55f   :  { %1714 = vmatprep.subr.mxu0 %v5902_v47  ;;  %1785 = vmatprep.subr.mxu1 %v6045_v41 }
 0x560   :  { %1715 = vmatpush1.msra.mxu0 %v5906_v48  ;;  %1786 = vmatpush1.msra.mxu1 %v6049_v42 }
 0x561   :  { %1716 = vmatprep.subr.mxu0 %v5910_v49  ;;  %1787 = vmatprep.subr.mxu1 %v6053_v16 }
 0x562   :  { %1717 = vmatpush1.msra.mxu0 %v5914_v50  ;;  %1788 = vmatpush1.msra.mxu1 %v6057_v18 }
 0x563   :  { %1718 = vmatprep.subr.mxu0 %v5918_v52  ;;  %1789 = vmatprep.subr.mxu1 %v6061_v24 }
 0x564   :  { %1719 = vmatpush1.msra.mxu0 %v5922_v55  ;;  %1790 = vmatpush1.msra.mxu1 %v6065_v13 }
 0x565   :  { %1720 = vmatprep.subr.mxu0 %v5926_v58  ;;  %1791 = vmatprep.subr.mxu1 %v6069_v40 }
 0x566   :  { %1721 = vmatpush1.msra.mxu0 %v5930_v59  ;;  %1792 = vmatpush1.msra.mxu1 %v6073_v51 }
 0x567   :  { %1722 = vmatprep.subr.mxu0 %v5934_v57  ;;  %1793 = vmatprep.subr.mxu1 %v6077_v54 }
 0x568   :  { %1723 = vmatpush1.msra.mxu0 %v5938_v60  ;;  %1794 = vmatpush1.msra.mxu1 %v6081_v61 }
 0x569   :  { %1724 = vmatprep.subr.mxu0 %v5942_v1  ;;  %1795 = vmatprep.subr.mxu1 %v6085_v63 }
 0x56a   :  { %1725 = vmatpush1.msra.mxu0 %v5946_v4  ;;  %1796 = vmatpush1.msra.mxu1 %v6089_v8 }
 0x56b   :  { %1726 = vmatprep.subr.mxu0 %v5950_v6  ;;  %1797 = vmatprep.subr.mxu1 %v6093_v10 }
 0x56c   :  { %1727 = vmatpush1.msra.mxu0 %v5954_v7  ;;  %1798 = vmatpush1.msra.mxu1 %v6097_v26 }
 0x56d   :  { %1728 = vmatprep.subr.mxu0 %v5958_v3  ;;  %1799 = vmatprep.subr.mxu1 %v6101_v27 }
 0x56e   :  { %1729 = vmatpush1.msra.mxu0 %v5962_v11  ;;  %1800 = vmatpush1.msra.mxu1 %v7837_v14 }
 0x56f   :  { %1730 = vmatprep.subr.mxu0 %v7838_v62  ;;  %1801 = vmatprep.subr.mxu1 %v7839_v2  ;;  %v7860_v2 = vld [vmem:[#allocation52_spill] sm:$0xff] }
 0x570   :  { %1731 = vmatpush1.msra.mxu0 %v7840_v9  ;;  %1802 = vmatpush1.msra.mxu1 %v7841_v35  ;;  %v7859_v9 = vld [vmem:[#allocation53_spill] sm:$0xff] }
 0x571   :  { %1732 = vmatprep.subr.mxu0 %v7842_v12  ;;  %1803 = vmatprep.subr.mxu1 %v7843_v34 }
 0x572   :  { %1733 = vmatpush1.msra.mxu0 %v7844_v43  ;;  %1804 = vmatpush1.msra.mxu1 %v7845_v53  ;;  %v7855_v53 = vld [vmem:[#allocation21_spill] sm:$0xff] }
 0x573   :  { %1734 = vmatprep.subr.mxu0 %v7846_v30  ;;  %1805 = vmatprep.subr.mxu1 %v7847_v22  ;;  %v7856_v30 = vld [vmem:[#allocation35_spill] sm:$0xff] }
 0x574   :  { %1735 = vmatpush1.msra.mxu0 %v7848_v56  ;;  %1806 = vmatpush1.msra.mxu1 %v7849_v39  ;;  %v7857_v56 = vld [vmem:[#allocation67_spill] sm:$0xff] }
 0x575   :  { %1736 = vmatprep.subr.mxu0 %v7850_v23  ;;  %1807 = vmatprep.subr.mxu1 %v7851_v28  ;;  %v7858_v23 = vld [vmem:[#allocation68_spill] sm:$0xff] }
 0x576   :  { %1737 = vmatpush1.msra.mxu0 %v7852_v38  ;;  %1770 = vmatprep.mubr.f32.mxu0 %v7853_v0 }
 0x577   :  { %1808 = vmatpush1.msra.mxu1 %v7854_v46  ;;  %1841 = vmatprep.mubr.f32.mxu1 %v7853_v0 }
 0x578   :  { %1883 = vmatprep.subr.mxu0 %v7855_v53  ;;  %1954 = vmatprep.subr.mxu1 %v7856_v30 }
 0x617   :  { %v1595_v22 = vpop.f32.mrf.mxu0  ;;  %v1666_v28 = vpop.f32.mrf.mxu1 }
 0x618   :  { %v1671_v43 = vadd.f32 %v1595_v22, %v7857_v56  ;;  %v1673_v0 = vadd.f32 %v1666_v28, %v7860_v2 }
 0x619   :  { %v1597_v39 = vpop.f32.mrf.mxu0  ;;  %v1668_v35 = vpop.f32.mrf.mxu1 }
 0x61a   :  { %v4427_v34 = vmul.f32 -1.442695, %v1671_v43  ;;  %v1672_v12 = vadd.f32 %v1597_v39, %v7858_v23  ;;  %v1674_v46 = vadd.f32 %v1668_v35, %v7859_v9 }
 0x61c   :  { %4637 = vpow2.f32 %v4427_v34  ;;  %v4428_v38 = vmul.f32 -1.442695, %v1672_v12  ;;  %v4429_v62 = vmul.f32 -1.442695, %v1674_v46 }
 0x61e   :  { %4639 = vpow2.f32 %v4428_v38 }
 0x61f   :  { %4641 = vtanh.f32 %v1673_v0 }
 0x620   :  { %4643 = vpow2.f32 %v4429_v62 }
 0x629   :  { %v4638_v53 = vpop.eup %4637 }
 0x62a   :  { %v1678_v14 = vadd.f32 1.0, %v4638_v53  ;;  %v2117_v53 = vld [vmem:[#allocation8 + $0x1e0] sm:$0xff] }
 0x62b   :  { %v4640_v30 = vpop.eup %4639 }
 0x62c   :  { %4645 = vrcp.f32 %v1678_v14  ;;  %v1684_v22 = vadd.f32 1.0, %v4640_v30  ;;  %v4642_v43 = vpop.eup %4641  ;;  %v2119_v30 = vld [vmem:[#allocation8 + $0x1f0] sm:$0xff] }
 0x62d   :  { %v4644_v56 = vpop.eup %4643 }
 0x62e   :  { %4647 = vrcp.f32 %v1684_v22  ;;  %v1691_v23 = vadd.f32 1.0, %v4644_v56  ;;  %v2114_v22 = vld [vmem:[#allocation8 + $0x1c8] sm:$0xff]  ;;  %v2113_v56 = vld [vmem:[#allocation8 + $0x1c0] sm:$0xff] }
 0x630   :  { %4649 = vrcp.f32 %v1691_v23  ;;  %v2109_v23 = vld [vmem:[#allocation8 + $0x1a0] sm:$0xff] }
 0x639   :  { %v4646_v34 = vpop.eup %4645 }
 0x63a   :  { %v1695_v39 = vmul.f32 %v4646_v34, %v4642_v43  ;;  %v2116_v43 = vld [vmem:[#allocation8 + $0x1d8] sm:$0xff]  ;;  %v2115_v34 = vld [vmem:[#allocation8 + $0x1d0] sm:$0xff] }
 0x63b   :  { %v4648_v12 = vpop.eup %4647 }
 0x63c   :  { %v1694_v38 = vmul.f32 %v4648_v12, %v6149_v15  ;;  %v2112_v12 = vld [vmem:[#allocation8 + $0x1b8] sm:$0xff] }
 0x63d   :  { %v4650_v46 = vpop.eup %4649 }
 0x63e   :  { %v6227_v9 = vadd.f32 %v1695_v39, %v1694_v38  ;;  %v2110_v39 = vld [vmem:[#allocation8 + $0x1a8] sm:$0xff]  ;;  %v2111_v38 = vld [vmem:[#allocation8 + $0x1b0] sm:$0xff] }
 0x640   :  { %4651 = vtanh.f32 %v6227_v9 }
 0x64d   :  { %v4652_v2 = vpop.eup %4651 }
 0x64e   :  { %v6230_v35 = vmul.f32 %v4652_v2, %v4650_v46  ;;  %v2108_v46 = vld [vmem:[#allocation8 + $0x198] sm:$0xff]  ;;  %v2105_v2 = vld [vmem:[#allocation8 + $0x180] sm:$0xff] }
 0x650   :  { %1771 = vmatmul.mubr.f32.vlgmr.msra.gmra.mxu0 %v6230_v35  ;;  %1842 = vmatmul.mubr.f32.vlgmr.msra.gmra.mxu1 %v6230_v35 }
 0x651   :  { %1884 = vmatpush1.msra.mxu0 %v5874_v33  ;;  %1955 = vmatpush1.msra.mxu1 %v6017_v32  ;;  %v7861_v33 = vld [vmem:[#allocation36_spill] sm:$0xff] }
 0x652   :  { %1885 = vmatprep.subr.mxu0 %v5878_v31  ;;  %1956 = vmatprep.subr.mxu1 %v6021_v29  ;;  %v7862_v31 = vld [vmem:[#allocation23_spill] sm:$0xff] }
 0x653   :  { %1886 = vmatpush1.msra.mxu0 %v5882_v5  ;;  %1957 = vmatpush1.msra.mxu1 %v6025_v21  ;;  %v7863_v5 = vld [vmem:[#allocation26_spill] sm:$0xff] }
 0x654   :  { %1887 = vmatprep.subr.mxu0 %v5886_v36  ;;  %1958 = vmatprep.subr.mxu1 %v6029_v37  ;;  %v7864_v36 = vld [vmem:[#allocation17_spill] sm:$0xff]  ;;  %v7880_v21 = vld [vmem:[#allocation70_spill] sm:$0xff] }
 0x655   :  { %1888 = vmatpush1.msra.mxu0 %v5890_v20  ;;  %1959 = vmatpush1.msra.mxu1 %v6033_v25  ;;  %v7865_v20 = vld [vmem:[#allocation37_spill] sm:$0xff] }
 0x656   :  { %1889 = vmatprep.subr.mxu0 %v5894_v44  ;;  %1960 = vmatprep.subr.mxu1 %v6037_v17  ;;  %v7866_v44 = vld [vmem:[#allocation56_spill] sm:$0xff] }
 0x657   :  { %1890 = vmatpush1.msra.mxu0 %v5898_v45  ;;  %1961 = vmatpush1.msra.mxu1 %v6041_v19  ;;  %v7867_v45 = vld [vmem:[#allocation27_spill] sm:$0xff] }
 0x658   :  { %1891 = vmatprep.subr.mxu0 %v5902_v47  ;;  %1962 = vmatprep.subr.mxu1 %v6045_v41  ;;  %v7868_v47 = vld [vmem:[#allocation60_spill] sm:$0xff]  ;;  %v7881_v41 = vld [vmem:[#allocation55_spill] sm:$0xff] }
 0x659   :  { %1892 = vmatpush1.msra.mxu0 %v5906_v48  ;;  %1963 = vmatpush1.msra.mxu1 %v6049_v42  ;;  %v7869_v48 = vld [vmem:[#allocation38_spill] sm:$0xff] }
 0x65a   :  { %1893 = vmatprep.subr.mxu0 %v5910_v49  ;;  %1964 = vmatprep.subr.mxu1 %v6053_v16  ;;  %v7870_v49 = vld [vmem:[#allocation45_spill] sm:$0xff]  ;;  %v7882_v16 = vld [vmem:[#allocation54_spill] sm:$0xff] }
 0x65b   :  { %1894 = vmatpush1.msra.mxu0 %v5914_v50  ;;  %1965 = vmatpush1.msra.mxu1 %v6057_v18  ;;  %v7871_v50 = vld [vmem:[#allocation28_spill] sm:$0xff] }
 0x65c   :  { %1895 = vmatprep.subr.mxu0 %v5918_v52  ;;  %1966 = vmatprep.subr.mxu1 %v6061_v24  ;;  %v7872_v52 = vld [vmem:[#allocation44_spill] sm:$0xff] }
 0x65d   :  { %1896 = vmatpush1.msra.mxu0 %v5922_v55  ;;  %1967 = vmatpush1.msra.mxu1 %v6065_v13  ;;  %v7873_v55 = vld [vmem:[#allocation39_spill] sm:$0xff] }
 0x65e   :  { %1897 = vmatprep.subr.mxu0 %v5926_v58  ;;  %1968 = vmatprep.subr.mxu1 %v6069_v40  ;;  %v7874_v58 = vld [vmem:[#allocation34_spill] sm:$0xff] }
 0x65f   :  { %1898 = vmatpush1.msra.mxu0 %v5930_v59  ;;  %1969 = vmatpush1.msra.mxu1 %v6073_v51  ;;  %v7875_v59 = vld [vmem:[#allocation29_spill] sm:$0xff] }
 0x660   :  { %1899 = vmatprep.subr.mxu0 %v5934_v57  ;;  %1970 = vmatprep.subr.mxu1 %v6077_v54  ;;  %v7876_v57 = vld [vmem:[#allocation24_spill] sm:$0xff] }
 0x661   :  { %1900 = vmatpush1.msra.mxu0 %v5938_v60  ;;  %1971 = vmatpush1.msra.mxu1 %v6081_v61  ;;  %v7877_v60 = vld [vmem:[#allocation40_spill] sm:$0xff] }
 0x662   :  { %1901 = vmatprep.subr.mxu0 %v5942_v1  ;;  %1972 = vmatprep.subr.mxu1 %v6085_v63  ;;  %v7878_v1 = vmov 0.0  }
 0x663   :  { %1902 = vmatpush1.msra.mxu0 %v5946_v4  ;;  %1973 = vmatpush1.msra.mxu1 %v6089_v8  ;;  %v2118_v4 = vld [vmem:[#allocation8 + $0x1e8] sm:$0xff] }
 0x664   :  { %1903 = vmatprep.subr.mxu0 %v5950_v6  ;;  %1974 = vmatprep.subr.mxu1 %v6093_v10  ;;  %v2120_v6 = vld [vmem:[#allocation8 + $0x1f8] sm:$0xff] }
 0x665   :  { %1904 = vmatpush1.msra.mxu0 %v5954_v7  ;;  %1975 = vmatpush1.msra.mxu1 %v6097_v26 }
 0x666   :  { %1905 = vmatprep.subr.mxu0 %v5958_v3  ;;  %1976 = vmatprep.subr.mxu1 %v6101_v27  ;;  %v7879_v3 = vld [vmem:[#allocation69_spill] sm:$0xff] }
 0x667   :  { %1906 = vmatpush1.msra.mxu0 %v5962_v11  ;;  %1977 = vmatpush1.msra.mxu1 %v7861_v33  ;;  %v2107_v33 = vld [vmem:[#allocation8 + $0x190] sm:$0xff] }
 0x668   :  { %1907 = vmatprep.subr.mxu0 %v7862_v31  ;;  %1978 = vmatprep.subr.mxu1 %v7863_v5  ;;  %v2102_v31 = vld [vmem:[#allocation8 + $0x168] sm:$0xff]  ;;  %v2104_v5 = vld [vmem:[#allocation8 + $0x178] sm:$0xff] }
 0x669   :  { %1908 = vmatpush1.msra.mxu0 %v7864_v36  ;;  %1979 = vmatpush1.msra.mxu1 %v7865_v20  ;;  %v2101_v36 = vld [vmem:[#allocation8 + $0x160] sm:$0xff]  ;;  %v2103_v20 = vld [vmem:[#allocation8 + $0x170] sm:$0xff] }
 0x66a   :  { %1909 = vmatprep.subr.mxu0 %v7866_v44  ;;  %1980 = vmatprep.subr.mxu1 %v7867_v45  ;;  %v2098_v44 = vld [vmem:[#allocation8 + $0x148] sm:$0xff]  ;;  %v2100_v45 = vld [vmem:[#allocation8 + $0x158] sm:$0xff] }
 0x66b   :  { %1910 = vmatpush1.msra.mxu0 %v7868_v47  ;;  %1981 = vmatpush1.msra.mxu1 %v7869_v48  ;;  %v2097_v47 = vld [vmem:[#allocation8 + $0x140] sm:$0xff]  ;;  %v2099_v48 = vld [vmem:[#allocation8 + $0x150] sm:$0xff] }
 0x66c   :  { %1911 = vmatprep.subr.mxu0 %v7870_v49  ;;  %1982 = vmatprep.subr.mxu1 %v7871_v50  ;;  %v2094_v49 = vld [vmem:[#allocation8 + $0x128] sm:$0xff]  ;;  %v2096_v50 = vld [vmem:[#allocation8 + $0x138] sm:$0xff] }
 0x66d   :  { %1912 = vmatpush1.msra.mxu0 %v7872_v52  ;;  %1983 = vmatpush1.msra.mxu1 %v7873_v55  ;;  %v2093_v52 = vld [vmem:[#allocation8 + $0x120] sm:$0xff]  ;;  %v2095_v55 = vld [vmem:[#allocation8 + $0x130] sm:$0xff] }
 0x66e   :  { %1913 = vmatprep.subr.mxu0 %v7874_v58  ;;  %1984 = vmatprep.subr.mxu1 %v7875_v59  ;;  %v2090_v58 = vld [vmem:[#allocation8 + $0x108] sm:$0xff]  ;;  %v2092_v59 = vld [vmem:[#allocation8 + $0x118] sm:$0xff] }
 0x66f   :  { %1914 = vmatpush1.msra.mxu0 %v7876_v57  ;;  %1985 = vmatpush1.msra.mxu1 %v7877_v60  ;;  %v2089_v57 = vld [vmem:[#allocation8 + $0x100] sm:$0xff]  ;;  %v2091_v60 = vld [vmem:[#allocation8 + $0x110] sm:$0xff] }
 0x670   :  { %1947 = vmatprep.mubr.f32.mxu0 %v7878_v1  ;;  %2018 = vmatprep.mubr.f32.mxu1 %v7878_v1 }
 0x671   :  { %2215 = vmatprep.subr.mxu0 %v2118_v4  ;;  %2328 = vmatprep.subr.mxu1 %v2120_v6  ;;  %v2086_v4 = vld [vmem:[#allocation8 + $0xe8] sm:$0xff]  ;;  %v2088_v6 = vld [vmem:[#allocation8 + $0xf8] sm:$0xff] }
 0x710   :  { %v1772_v7 = vpop.f32.mrf.mxu0  ;;  %v1843_v25 = vpop.f32.mrf.mxu1 }
 0x711   :  { %v1848_v11 = vadd.f32 %v1772_v7, %v7879_v3  ;;  %v1850_v18 = vadd.f32 %v1843_v25, %v7882_v16  ;;  %v2085_v7 = vld [vmem:[#allocation8 + $0xe0] sm:$0xff]  ;;  %v2087_v3 = vld [vmem:[#allocation8 + $0xf0] sm:$0xff]  ;;  %v2080_v25 = vld [vmem:[#allocation8 + $0xb8] sm:$0xff] }
 0x712   :  { %v1774_v32 = vpop.f32.mrf.mxu0  ;;  %v1845_v19 = vpop.f32.mrf.mxu1  ;;  %v2073_v16 = vld [vmem:[#allocation8 + $0x80] sm:$0xff] }
 0x713   :  { %v4430_v29 = vmul.f32 -1.442695, %v1848_v11  ;;  %v1849_v37 = vadd.f32 %v1774_v32, %v7880_v21  ;;  %v1851_v42 = vadd.f32 %v1845_v19, %v7881_v41  ;;  %v2082_v11 = vld [vmem:[#allocation8 + $0xc8] sm:$0xff]  ;;  %v2084_v32 = vld [vmem:[#allocation8 + $0xd8] sm:$0xff]  ;;  %v2083_v21 = vld [vmem:[#allocation8 + $0xd0] sm:$0xff] }
 0x714   :  { %v2079_v19 = vld [vmem:[#allocation8 + $0xb0] sm:$0xff]  ;;  %v2074_v41 = vld [vmem:[#allocation8 + $0x88] sm:$0xff] }
 0x715   :  { %4653 = vpow2.f32 %v4430_v29  ;;  %v4431_v17 = vmul.f32 -1.442695, %v1849_v37  ;;  %v4432_v24 = vmul.f32 -1.442695, %v1851_v42  ;;  %v2081_v29 = vld [vmem:[#allocation8 + $0xc0] sm:$0xff]  ;;  %v2078_v37 = vld [vmem:[#allocation8 + $0xa8] sm:$0xff] }
 0x716   :  { %v2076_v42 = vld [vmem:[#allocation8 + $0x98] sm:$0xff] }
 0x717   :  { %4655 = vpow2.f32 %v4431_v17  ;;  %v2077_v17 = vld [vmem:[#allocation8 + $0xa0] sm:$0xff] }
 0x718   :  { %4657 = vtanh.f32 %v1850_v18  ;;  %v2075_v18 = vld [vmem:[#allocation8 + $0x90] sm:$0xff] }
 0x719   :  { %4659 = vpow2.f32 %v4432_v24  ;;  %v2070_v24 = vld [vmem:[#allocation8 + $0x68] sm:$0xff] }
 0x722   :  { %v4654_v13 = vpop.eup %4653 }
 0x723   :  { %v1855_v40 = vadd.f32 1.0, %v4654_v13  ;;  %v2072_v13 = vld [vmem:[#allocation8 + $0x78] sm:$0xff] }
 0x724   :  { %v4656_v51 = vpop.eup %4655 }
 0x725   :  { %4661 = vrcp.f32 %v1855_v40  ;;  %v1861_v54 = vadd.f32 1.0, %v4656_v51  ;;  %v4658_v61 = vpop.eup %4657  ;;  %v2069_v40 = vld [vmem:[#allocation8 + $0x60] sm:$0xff]  ;;  %v2071_v51 = vld [vmem:[#allocation8 + $0x70] sm:$0xff] }
 0x726   :  { %v4660_v63 = vpop.eup %4659 }
 0x727   :  { %4663 = vrcp.f32 %v1861_v54  ;;  %v1868_v27 = vadd.f32 1.0, %v4660_v63  ;;  %v2066_v54 = vld [vmem:[#allocation8 + $0x48] sm:$0xff]  ;;  %v2065_v63 = vld [vmem:[#allocation8 + $0x40] sm:$0xff] }
 0x729   :  { %4665 = vrcp.f32 %v1868_v27  ;;  %v2061_v27 = vld [vmem:[#allocation8 + $0x20] sm:$0xff] }
 0x732   :  { %v4662_v8 = vpop.eup %4661 }
 0x733   :  { %v1872_v10 = vmul.f32 %v4662_v8, %v4658_v61  ;;  %v2068_v61 = vld [vmem:[#allocation8 + $0x58] sm:$0xff]  ;;  %v2067_v8 = vld [vmem:[#allocation8 + $0x50] sm:$0xff] }
 0x734   :  { %v4664_v26 = vpop.eup %4663 }
 0x735   :  { %v1871_v15 = vmul.f32 %v4664_v26, %v6227_v9  ;;  %v2106_v9 = vld [vmem:[#allocation8 + $0x188] sm:$0xff]  ;;  %v2064_v26 = vld [vmem:[#allocation8 + $0x38] sm:$0xff] }
 0x736   :  { %v4666_v62 = vpop.eup %4665 }
 0x737   :  { %v6303_v14 = vadd.f32 %v1872_v10, %v1871_v15  ;;  %v2062_v10 = vld [vmem:[#allocation8 + $0x28] sm:$0xff]  ;;  %v2063_v15 = vld [vmem:[#allocation8 + $0x30] sm:$0xff] }
 0x739   :  { %4667 = vtanh.f32 %v6303_v14 }
 0x746   :  { %v4668_v28 = vpop.eup %4667 }
 0x747   :  { %v6306_v0 = vmul.f32 %v4668_v28, %v4666_v62  ;;  %v2058_v62 = vld [vmem:[#allocation8 + $0x8] sm:$0xff]  ;;  %v2060_v28 = vld [vmem:[#allocation8 + $0x18] sm:$0xff] }
 0x749   :  { %1948 = vmatmul.mubr.f32.vlgmr.msra.gmra.mxu0 %v6306_v0  ;;  %2019 = vmatmul.mubr.f32.vlgmr.msra.gmra.mxu1 %v6306_v0 }
 0x74a   :  { %2216 = vmatpush1.msra.mxu0 %v2117_v53  ;;  %2329 = vmatpush1.msra.mxu1 %v2119_v30  ;;  %v2057_v53 = vld [vmem:[#allocation8] sm:$0xff]  ;;  %v2059_v30 = vld [vmem:[#allocation8 + $0x10] sm:$0xff] }
 0x74b   :  { %2217 = vmatprep.subr.mxu0 %v2114_v22  ;;  %2330 = vmatprep.subr.mxu1 %v2116_v43  ;;  %v7883_v22 = vld [vmem:[#allocation72_spill] sm:$0xff] }
 0x74c   :  { %2218 = vmatpush1.msra.mxu0 %v2113_v56  ;;  %2331 = vmatpush1.msra.mxu1 %v2115_v34  ;;  %v7884_v43 = vld [vmem:[#allocation20_spill] sm:$0xff]  ;;  %v7885_v56 = vld [vmem:[#allocation22_spill] sm:$0xff]  ;;  %v7886_v34 = vld [vmem:[#allocation25_spill] sm:$0xff] }
 0x74d   :  { %2219 = vmatprep.subr.mxu0 %v2110_v39  ;;  %2332 = vmatprep.subr.mxu1 %v2112_v12  ;;  %v7887_v39 = vld [vmem:[#allocation30_spill] sm:$0xff]  ;;  %v6340_v12 = vld [vmem:[#allocation9 + $0x1e8] sm:$0xff] }
 0x74e   :  { %2220 = vmatpush1.msra.mxu0 %v2109_v23  ;;  %2333 = vmatpush1.msra.mxu1 %v2111_v38  ;;  %7888 = vst [vmem:[#allocation41_spill] sm:$0xff] %v6340_v12  ;;  %v6342_v23 = vld [vmem:[#allocation9 + $0x1f8] sm:$0xff]  ;;  %v6345_v38 = vld [vmem:[#allocation9 + $0x1e0] sm:$0xff] }
 0x74f   :  { %2221 = vmatprep.subr.mxu0 %v2106_v9  ;;  %2334 = vmatprep.subr.mxu1 %v2108_v46  ;;  %7889 = vst [vmem:[#allocation31_spill] sm:$0xff] %v6342_v23  ;;  %v6351_v9 = vld [vmem:[#allocation9 + $0x1c8] sm:$0xff]  ;;  %v6357_v46 = vld [vmem:[#allocation9 + $0x1c0] sm:$0xff] }
 0x750   :  { %2222 = vmatpush1.msra.mxu0 %v2105_v2  ;;  %2335 = vmatpush1.msra.mxu1 %v2107_v33  ;;  %v6360_v2 = vld [vmem:[#allocation9 + $0x1d0] sm:$0xff]  ;;  %v6363_v33 = vld [vmem:[#allocation9 + $0x1a8] sm:$0xff] }
 0x751   :  { %2223 = vmatprep.subr.mxu0 %v2102_v31  ;;  %2336 = vmatprep.subr.mxu1 %v2104_v5  ;;  %v6366_v31 = vld [vmem:[#allocation9 + $0x1b8] sm:$0xff]  ;;  %v6369_v5 = vld [vmem:[#allocation9 + $0x1a0] sm:$0xff] }
 0x752   :  { %2224 = vmatpush1.msra.mxu0 %v2101_v36  ;;  %2337 = vmatpush1.msra.mxu1 %v2103_v20  ;;  %v6372_v36 = vld [vmem:[#allocation9 + $0x1b0] sm:$0xff]  ;;  %v6375_v20 = vld [vmem:[#allocation9 + $0x188] sm:$0xff] }
 0x753   :  { %2225 = vmatprep.subr.mxu0 %v2098_v44  ;;  %2338 = vmatprep.subr.mxu1 %v2100_v45  ;;  %v6378_v44 = vld [vmem:[#allocation9 + $0x198] sm:$0xff]  ;;  %v6381_v45 = vld [vmem:[#allocation9 + $0x180] sm:$0xff] }
 0x754   :  { %2226 = vmatpush1.msra.mxu0 %v2097_v47  ;;  %2339 = vmatpush1.msra.mxu1 %v2099_v48  ;;  %v6384_v47 = vld [vmem:[#allocation9 + $0x190] sm:$0xff]  ;;  %v6387_v48 = vld [vmem:[#allocation9 + $0x168] sm:$0xff] }
 0x755   :  { %2227 = vmatprep.subr.mxu0 %v2094_v49  ;;  %2340 = vmatprep.subr.mxu1 %v2096_v50  ;;  %v6390_v49 = vld [vmem:[#allocation9 + $0x178] sm:$0xff]  ;;  %v6393_v50 = vld [vmem:[#allocation9 + $0x160] sm:$0xff] }
 0x756   :  { %2228 = vmatpush1.msra.mxu0 %v2093_v52  ;;  %2341 = vmatpush1.msra.mxu1 %v2095_v55  ;;  %v6396_v52 = vld [vmem:[#allocation9 + $0x170] sm:$0xff]  ;;  %v6399_v55 = vld [vmem:[#allocation9 + $0x148] sm:$0xff] }
 0x757   :  { %2229 = vmatprep.subr.mxu0 %v2090_v58  ;;  %2342 = vmatprep.subr.mxu1 %v2092_v59  ;;  %v6402_v58 = vld [vmem:[#allocation9 + $0x158] sm:$0xff]  ;;  %v6405_v59 = vld [vmem:[#allocation9 + $0x140] sm:$0xff] }
 0x758   :  { %2230 = vmatpush1.msra.mxu0 %v2089_v57  ;;  %2343 = vmatpush1.msra.mxu1 %v2091_v60  ;;  %v6408_v57 = vld [vmem:[#allocation9 + $0x150] sm:$0xff]  ;;  %v6411_v60 = vld [vmem:[#allocation9 + $0x128] sm:$0xff] }
 0x759   :  { %2231 = vmatprep.subr.mxu0 %v2086_v4  ;;  %2344 = vmatprep.subr.mxu1 %v2088_v6  ;;  %v6414_v4 = vld [vmem:[#allocation9 + $0x138] sm:$0xff]  ;;  %v6417_v6 = vld [vmem:[#allocation9 + $0x120] sm:$0xff] }
 0x75a   :  { %2232 = vmatpush1.msra.mxu0 %v2085_v7  ;;  %2345 = vmatpush1.msra.mxu1 %v2087_v3  ;;  %v6420_v7 = vld [vmem:[#allocation9 + $0x130] sm:$0xff]  ;;  %v6423_v3 = vld [vmem:[#allocation9 + $0x108] sm:$0xff] }
 0x75b   :  { %2233 = vmatprep.subr.mxu0 %v2082_v11  ;;  %2346 = vmatprep.subr.mxu1 %v2084_v32  ;;  %v6426_v11 = vld [vmem:[#allocation9 + $0x118] sm:$0xff]  ;;  %v6429_v32 = vld [vmem:[#allocation9 + $0x100] sm:$0xff] }
 0x75c   :  { %2234 = vmatpush1.msra.mxu0 %v2081_v29  ;;  %2347 = vmatpush1.msra.mxu1 %v2083_v21  ;;  %v6432_v29 = vld [vmem:[#allocation9 + $0x110] sm:$0xff]  ;;  %v6435_v21 = vld [vmem:[#allocation9 + $0xe8] sm:$0xff] }
 0x75d   :  { %2235 = vmatprep.subr.mxu0 %v2078_v37  ;;  %2348 = vmatprep.subr.mxu1 %v2080_v25  ;;  %v6438_v37 = vld [vmem:[#allocation9 + $0xf8] sm:$0xff]  ;;  %v6441_v25 = vld [vmem:[#allocation9 + $0xe0] sm:$0xff] }
 0x75e   :  { %2236 = vmatpush1.msra.mxu0 %v2077_v17  ;;  %2349 = vmatpush1.msra.mxu1 %v2079_v19  ;;  %v6444_v17 = vld [vmem:[#allocation9 + $0xf0] sm:$0xff]  ;;  %v6447_v19 = vld [vmem:[#allocation9 + $0xc8] sm:$0xff] }
 0x75f   :  { %2237 = vmatprep.subr.mxu0 %v2074_v41  ;;  %2350 = vmatprep.subr.mxu1 %v2076_v42  ;;  %v6450_v41 = vld [vmem:[#allocation9 + $0xd8] sm:$0xff]  ;;  %v6453_v42 = vld [vmem:[#allocation9 + $0xc0] sm:$0xff] }
 0x760   :  { %2238 = vmatpush1.msra.mxu0 %v2073_v16  ;;  %2351 = vmatpush1.msra.mxu1 %v2075_v18  ;;  %v6456_v16 = vld [vmem:[#allocation9 + $0xd0] sm:$0xff]  ;;  %v6459_v18 = vld [vmem:[#allocation9 + $0xa8] sm:$0xff] }
 0x761   :  { %2239 = vmatprep.subr.mxu0 %v2070_v24  ;;  %2352 = vmatprep.subr.mxu1 %v2072_v13  ;;  %v6462_v24 = vld [vmem:[#allocation9 + $0xb8] sm:$0xff]  ;;  %v6465_v13 = vld [vmem:[#allocation9 + $0xa0] sm:$0xff] }
 0x762   :  { %2240 = vmatpush1.msra.mxu0 %v2069_v40  ;;  %2353 = vmatpush1.msra.mxu1 %v2071_v51  ;;  %v6468_v40 = vld [vmem:[#allocation9 + $0xb0] sm:$0xff]  ;;  %v6471_v51 = vld [vmem:[#allocation9 + $0x88] sm:$0xff] }
 0x763   :  { %2241 = vmatprep.subr.mxu0 %v2066_v54  ;;  %2354 = vmatprep.subr.mxu1 %v2068_v61  ;;  %7890 = vst [vmem:[#allocation42_spill] sm:$0xff] %v6468_v40  ;;  %7891 = vst [vmem:[#allocation32_spill] sm:$0xff] %v6471_v51  ;;  %v6474_v54 = vld [vmem:[#allocation9 + $0x98] sm:$0xff]  ;;  %v6477_v61 = vld [vmem:[#allocation9 + $0x80] sm:$0xff] }
 0x764   :  { %2242 = vmatpush1.msra.mxu0 %v2065_v63  ;;  %2355 = vmatpush1.msra.mxu1 %v2067_v8  ;;  %7892 = vst [vmem:[#allocation43_spill] sm:$0xff] %v6474_v54  ;;  %7893 = vst [vmem:[#allocation33_spill] sm:$0xff] %v6477_v61  ;;  %v6480_v63 = vld [vmem:[#allocation9 + $0x90] sm:$0xff]  ;;  %v6483_v8 = vld [vmem:[#allocation9 + $0x68] sm:$0xff] }
 0x765   :  { %2243 = vmatprep.subr.mxu0 %v2062_v10  ;;  %2356 = vmatprep.subr.mxu1 %v2064_v26  ;;  %7894 = vst [vmem:[#allocation61_spill] sm:$0xff] %v6480_v63  ;;  %7895 = vst [vmem:[#allocation62_spill] sm:$0xff] %v6483_v8  ;;  %v6486_v10 = vld [vmem:[#allocation9 + $0x78] sm:$0xff]  ;;  %v6489_v26 = vld [vmem:[#allocation9 + $0x60] sm:$0xff] }
 0x766   :  { %2244 = vmatpush1.msra.mxu0 %v2061_v27  ;;  %2357 = vmatpush1.msra.mxu1 %v2063_v15  ;;  %7896 = vst [vmem:[#allocation47_spill] sm:$0xff] %v6486_v10  ;;  %7897 = vst [vmem:[#allocation46_spill] sm:$0xff] %v6489_v26  ;;  %v6492_v27 = vld [vmem:[#allocation9 + $0x70] sm:$0xff]  ;;  %v6495_v15 = vld [vmem:[#allocation9 + $0x48] sm:$0xff] }
 0x767   :  { %2245 = vmatprep.subr.mxu0 %v2058_v62  ;;  %2358 = vmatprep.subr.mxu1 %v2060_v28  ;;  %7898 = vst [vmem:[#allocation63_spill] sm:$0xff] %v6492_v27  ;;  %7899 = vst [vmem:[#allocation64_spill] sm:$0xff] %v6495_v15  ;;  %v6498_v62 = vld [vmem:[#allocation9 + $0x58] sm:$0xff]  ;;  %v6501_v28 = vld [vmem:[#allocation9 + $0x40] sm:$0xff] }
 0x768   :  { %2246 = vmatpush1.msra.mxu0 %v2057_v53  ;;  %2279 = vmatprep.mubr.f32.mxu0 %v7878_v1  ;;  %7900 = vst [vmem:[#allocation49_spill] sm:$0xff] %v6498_v62  ;;  %7901 = vst [vmem:[#allocation48_spill] sm:$0xff] %v6501_v28  ;;  %v6504_v53 = vld [vmem:[#allocation9 + $0x50] sm:$0xff] }
 0x769   :  { %2359 = vmatpush1.msra.mxu1 %v2059_v30  ;;  %2392 = vmatprep.mubr.f32.mxu1 %v7878_v1  ;;  %7902 = vst [vmem:[#allocation65_spill] sm:$0xff] %v6504_v53  ;;  %v6507_v30 = vld [vmem:[#allocation9 + $0x28] sm:$0xff] }
 0x76a   :  { %2280 = vmatmul.mubr.f32.vlgmr.msra.gmra.mxu0 %v7883_v22  ;;  %2393 = vmatmul.mubr.f32.vlgmr.msra.gmra.mxu1 %v7883_v22  ;;  %7903 = vst [vmem:[#allocation66_spill] sm:$0xff] %v6507_v30  ;;  %v6510_v22 = vld [vmem:[#allocation9 + $0x38] sm:$0xff] }
 0x76b   :  { %2285 = vmatprep.mubr.f32.mxu0 %v7878_v1  ;;  %2398 = vmatprep.mubr.f32.mxu1 %v7878_v1  ;;  %7904 = vst [vmem:[#allocation51_spill] sm:$0xff] %v6510_v22 }
 0x76c   :  { %2481 = vmatprep.subr.mxu0 %v6340_v12  ;;  %2552 = vmatprep.subr.mxu1 %v6342_v23 }
 0x76d   :  { %2482 = vmatpush1.msra.mxu0 %v6345_v38 }
 0x76e   :  { %2286 = vmatmul.mubr.f32.gmra.mxu0 %v7884_v43  ;;  %2399 = vmatmul.mubr.f32.gmra.mxu1 %v7884_v43  ;;  %v6513_v43 = vld [vmem:[#allocation9 + $0x20] sm:$0xff] }
 0x76f   :  { %2291 = vmatprep.mubr.f32.mxu0 %v7878_v1  ;;  %2404 = vmatprep.mubr.f32.mxu1 %v7878_v1  ;;  %7905 = vst [vmem:[#allocation50_spill] sm:$0xff] %v6513_v43 }
 0x770   :  { %2483 = vmatprep.subr.mxu0 %v6351_v9 }
 0x771   :  { %2484 = vmatpush1.msra.mxu0 %v6357_v46 }
 0x772   :  { %2292 = vmatmul.mubr.f32.gmra.mxu0 %v7885_v56  ;;  %2405 = vmatmul.mubr.f32.gmra.mxu1 %v7885_v56  ;;  %v6516_v56 = vld [vmem:[#allocation9 + $0x30] sm:$0xff] }
 0x773   :  { %2297 = vmatprep.mubr.f32.mxu0 %v7878_v1  ;;  %2410 = vmatprep.mubr.f32.mxu1 %v7878_v1  ;;  %7906 = vst [vmem:[#allocation21_spill] sm:$0xff] %v6516_v56 }
 0x774   :  { %2485 = vmatprep.subr.mxu0 %v6363_v33 }
 0x775   :  { %2486 = vmatpush1.msra.mxu0 %v6369_v5 }
 0x776   :  { %2298 = vmatmul.mubr.f32.gmra.mxu0 %v7886_v34  ;;  %2411 = vmatmul.mubr.f32.gmra.mxu1 %v7886_v34  ;;  %v6519_v34 = vld [vmem:[#allocation9 + $0x8] sm:$0xff] }
 0x777   :  { %2303 = vmatprep.mubr.f32.mxu0 %v7878_v1  ;;  %2416 = vmatprep.mubr.f32.mxu1 %v7878_v1  ;;  %7907 = vst [vmem:[#allocation35_spill] sm:$0xff] %v6519_v34 }
 0x778   :  { %2487 = vmatprep.subr.mxu0 %v6375_v20 }
 0x779   :  { %2488 = vmatpush1.msra.mxu0 %v6381_v45 }
 0x77a   :  { %2304 = vmatmul.mubr.f32.gmra.mxu0 %v7887_v39  ;;  %2417 = vmatmul.mubr.f32.gmra.mxu1 %v7887_v39  ;;  %v6522_v39 = vld [vmem:[#allocation9] sm:$0xff] }
 0x77b   :  { %2309 = vmatprep.mubr.f32.mxu0 %v7878_v1  ;;  %2422 = vmatprep.mubr.f32.mxu1 %v7878_v1  ;;  %7908 = vst [vmem:[#allocation67_spill] sm:$0xff] %v6522_v39 }
 0x77c   :  { %2489 = vmatprep.subr.mxu0 %v6387_v48 }
 0x77d   :  { %2490 = vmatpush1.msra.mxu0 %v6393_v50 }
 0x77e   :  { %2310 = vmatmul.mubr.f32.gmra.mxu0 %v6230_v35  ;;  %2423 = vmatmul.mubr.f32.gmra.mxu1 %v6230_v35  ;;  %v6348_v35 = vld [vmem:[#allocation9 + $0x1f0] sm:$0xff] }
 0x77f   :  { %2315 = vmatprep.mubr.f32.mxu0 %v7878_v1  ;;  %2428 = vmatprep.mubr.f32.mxu1 %v7878_v1 }
 0x780   :  { %2553 = vmatpush1.msra.mxu1 %v6348_v35  ;;  %2491 = vmatprep.subr.mxu0 %v6399_v55 }
 0x781   :  { %2492 = vmatpush1.msra.mxu0 %v6405_v59 }
 0x782   :  { %2316 = vmatmul.mubr.f32.gmra.mxu0 %v6306_v0  ;;  %2429 = vmatmul.mubr.f32.gmra.mxu1 %v6306_v0  ;;  %v6354_v0 = vld [vmem:[#allocation9 + $0x1d8] sm:$0xff] }
 0x783   :  { %2321 = vmatprep.mubr.f32.mxu0 %v7878_v1  ;;  %2434 = vmatprep.mubr.f32.mxu1 %v7878_v1 }
 0x784   :  { %2554 = vmatprep.subr.mxu1 %v6354_v0  ;;  %2493 = vmatprep.subr.mxu0 %v6411_v60 }
 0x785   :  { %2555 = vmatpush1.msra.mxu1 %v6360_v2  ;;  %2494 = vmatpush1.msra.mxu0 %v6417_v6 }
 0x786   :  { %2556 = vmatprep.subr.mxu1 %v6366_v31  ;;  %2495 = vmatprep.subr.mxu0 %v6423_v3 }
 0x787   :  { %2557 = vmatpush1.msra.mxu1 %v6372_v36  ;;  %2496 = vmatpush1.msra.mxu0 %v6429_v32 }
 0x788   :  { %2558 = vmatprep.subr.mxu1 %v6378_v44  ;;  %2497 = vmatprep.subr.mxu0 %v6435_v21 }
 0x789   :  { %2559 = vmatpush1.msra.mxu1 %v6384_v47  ;;  %2498 = vmatpush1.msra.mxu0 %v6441_v25 }
 0x78a   :  { %2560 = vmatprep.subr.mxu1 %v6390_v49  ;;  %2499 = vmatprep.subr.mxu0 %v6447_v19 }
 0x78b   :  { %2561 = vmatpush1.msra.mxu1 %v6396_v52  ;;  %2500 = vmatpush1.msra.mxu0 %v6453_v42 }
 0x78c   :  { %2562 = vmatprep.subr.mxu1 %v6402_v58  ;;  %2501 = vmatprep.subr.mxu0 %v6459_v18 }
 0x78d   :  { %2563 = vmatpush1.msra.mxu1 %v6408_v57  ;;  %2502 = vmatpush1.msra.mxu0 %v6465_v13 }
 0x78e   :  { %2564 = vmatprep.subr.mxu1 %v6414_v4  ;;  %2503 = vmatprep.subr.mxu0 %v6471_v51 }
 0x78f   :  { %2565 = vmatpush1.msra.mxu1 %v6420_v7  ;;  %2504 = vmatpush1.msra.mxu0 %v6477_v61 }
 0x790   :  { %2566 = vmatprep.subr.mxu1 %v6426_v11  ;;  %2505 = vmatprep.subr.mxu0 %v6483_v8  ;;  %v7914_v8 = vld [vmem:[#allocation59_spill] sm:$0xff] }
 0x791   :  { %2567 = vmatpush1.msra.mxu1 %v6432_v29  ;;  %2506 = vmatpush1.msra.mxu0 %v6489_v26 }
 0x792   :  { %2568 = vmatprep.subr.mxu1 %v6438_v37  ;;  %2507 = vmatprep.subr.mxu0 %v6495_v15 }
 0x793   :  { %2569 = vmatpush1.msra.mxu1 %v6444_v17  ;;  %2508 = vmatpush1.msra.mxu0 %v6501_v28  ;;  %v6524_v28 = vld [vmem:[#allocation9 + $0x18] sm:$0xff] }
 0x794   :  { %2570 = vmatprep.subr.mxu1 %v6450_v41  ;;  %2509 = vmatprep.subr.mxu0 %v6507_v30  ;;  %7909 = vst [vmem:[#allocation68_spill] sm:$0xff] %v6524_v28  ;;  %v6528_v30 = vld [vmem:[#allocation9 + $0x10] sm:$0xff] }
 0x795   :  { %2571 = vmatpush1.msra.mxu1 %v6456_v16  ;;  %2510 = vmatpush1.msra.mxu0 %v6513_v43  ;;  %7910 = vst [vmem:[#allocation53_spill] sm:$0xff] %v6528_v30 }
 0x796   :  { %2572 = vmatprep.subr.mxu1 %v6462_v24  ;;  %2511 = vmatprep.subr.mxu0 %v6519_v34 }
 0x797   :  { %2573 = vmatpush1.msra.mxu1 %v6468_v40  ;;  %2512 = vmatpush1.msra.mxu0 %v6522_v39 }
 0x798   :  { %2574 = vmatprep.subr.mxu1 %v6474_v54  ;;  %2656 = vmatprep.subr.mxu0 %v6340_v12 }
 0x799   :  { %2575 = vmatpush1.msra.mxu1 %v6480_v63  ;;  %v7915_v63 = vld [vmem:[#allocation57_spill] sm:$0xff] }
 0x79a   :  { %2576 = vmatprep.subr.mxu1 %v6486_v10 }
 0x79b   :  { %2577 = vmatpush1.msra.mxu1 %v6492_v27 }
 0x79c   :  { %2578 = vmatprep.subr.mxu1 %v6498_v62  ;;  %v7913_v62 = vld [vmem:[#allocation71_spill] sm:$0xff] }
 0x79d   :  { %2579 = vmatpush1.msra.mxu1 %v6504_v53 }
 0x79e   :  { %2580 = vmatprep.subr.mxu1 %v6510_v22  ;;  %v7912_v22 = vld [vmem:[#allocation19_spill] sm:$0xff] }
 0x79f   :  { %2581 = vmatpush1.msra.mxu1 %v6516_v56  ;;  %v7911_v56 = vld [vmem:[#allocation58_spill] sm:$0xff] }
 0x7a0   :  { %2582 = vmatprep.subr.mxu1 %v6524_v28  ;;  %v492_v53 = vadd.f32 %v7912_v22, %v7911_v56  ;;  %v7921_v56 = vld [vmem:[#allocation47_spill] sm:$0xff] }
 0x7a1   :  { %2583 = vmatpush1.msra.mxu1 %v6528_v30 }
 0x7a2   :  { %2727 = vmatprep.subr.mxu1 %v6342_v23 }
 0x809   :  { %v1949_v43 = vpop.f32.mrf.mxu0  ;;  %v2020_v28 = vpop.f32.mrf.mxu1 }
 0x80a   :  { %v2025_v15 = vadd.f32 %v1949_v43, %v7913_v62  ;;  %v2027_v12 = vadd.f32 %v2020_v28, %v7915_v63  ;;  %v7918_v63 = vld [vmem:[#allocation33_spill] sm:$0xff] }
 0x80b   :  { %v1951_v27 = vpop.f32.mrf.mxu0  ;;  %v2022_v39 = vpop.f32.mrf.mxu1  ;;  %v7919_v28 = vld [vmem:[#allocation61_spill] sm:$0xff] }
 0x80c   :  { %v4433_v34 = vmul.f32 -1.442695, %v2025_v15  ;;  %v2026_v26 = vadd.f32 %v1951_v27, %v492_v53  ;;  %v2028_v30 = vadd.f32 %v2022_v39, %v7914_v8  ;;  %v7923_v39 = vld [vmem:[#allocation63_spill] sm:$0xff] }
 0x80e   :  { %4669 = vpow2.f32 %v4433_v34  ;;  %v4434_v10 = vmul.f32 -1.442695, %v2026_v26  ;;  %v4435_v61 = vmul.f32 -1.442695, %v2028_v30  ;;  %v7920_v30 = vld [vmem:[#allocation62_spill] sm:$0xff] }
 0x80f   :  { %v7922_v34 = vld [vmem:[#allocation46_spill] sm:$0xff] }
 0x810   :  { %4671 = vpow2.f32 %v4434_v10 }
 0x811   :  { %4673 = vtanh.f32 %v2027_v12 }
 0x812   :  { %4675 = vpow2.f32 %v4435_v61  ;;  %v7917_v61 = vld [vmem:[#allocation43_spill] sm:$0xff] }
 0x81b   :  { %v4670_v23 = vpop.eup %4669 }
 0x81c   :  { %v2032_v54 = vadd.f32 1.0, %v4670_v23 }
 0x81d   :  { %v4672_v51 = vpop.eup %4671 }
 0x81e   :  { %4677 = vrcp.f32 %v2032_v54  ;;  %v2038_v62 = vadd.f32 1.0, %v4672_v51  ;;  %v4674_v15 = vpop.eup %4673  ;;  %v7916_v51 = vld [vmem:[#allocation32_spill] sm:$0xff] }
 0x81f   :  { %v4676_v27 = vpop.eup %4675 }
 0x820   :  { %4679 = vrcp.f32 %v2038_v62  ;;  %v2045_v10 = vadd.f32 1.0, %v4676_v27  ;;  %v7924_v62 = vld [vmem:[#allocation64_spill] sm:$0xff] }
 0x821   :  { %v7926_v27 = vld [vmem:[#allocation48_spill] sm:$0xff] }
 0x822   :  { %4681 = vrcp.f32 %v2045_v10  ;;  %v7930_v10 = vld [vmem:[#allocation50_spill] sm:$0xff] }
 0x82b   :  { %v4678_v53 = vpop.eup %4677 }
 0x82c   :  { %v2049_v22 = vmul.f32 %v4678_v53, %v4674_v15  ;;  %v7925_v15 = vld [vmem:[#allocation49_spill] sm:$0xff] }
 0x82d   :  { %v4680_v26 = vpop.eup %4679  ;;  %v7927_v53 = vld [vmem:[#allocation65_spill] sm:$0xff] }
 0x82e   :  { %v2048_v43 = vmul.f32 %v4680_v26, %v6303_v14  ;;  %v4436_v14 = vld [vmem:[%s7473_s9 + $0x8] sm:$0xff]  ;;  %v7929_v26 = vld [vmem:[#allocation51_spill] sm:$0xff] }
 0x82f   :  { %v4682_v12 = vpop.eup %4681 }
 0x830   :  { %v2050_v8 = vadd.f32 %v2049_v22, %v2048_v43  ;;  %v7928_v22 = vld [vmem:[#allocation66_spill] sm:$0xff]  ;;  %v7931_v43 = vld [vmem:[#allocation21_spill] sm:$0xff] }
 0x832   :  { %4683 = vtanh.f32 %v2050_v8  ;;  %2056 = vst [vmem:[%s7478_s14] sm:$0xff] %v2050_v8  ;;  %v7932_v8 = vld [vmem:[#allocation35_spill] sm:$0xff] }
 0x83f   :  { %v4684_v23 = vpop.eup %4683 }
 0x840   :  { %v2052_v54 = vmul.f32 %v4684_v23, %v4682_v12  ;;  %v7933_v12 = vld [vmem:[#allocation68_spill] sm:$0xff]  ;;  %v7934_v23 = vld [vmem:[#allocation67_spill] sm:$0xff] }
 0x842   :  { %2055 = vst [vmem:[%s7477_s13] sm:$0xff] %v2052_v54  ;;  %2322 = vmatmul.mubr.f32.gmra.mxu0 %v2052_v54  ;;  %2435 = vmatmul.mubr.f32.gmra.mxu1 %v2052_v54  ;;  %v7935_v54 = vld [vmem:[#allocation53_spill] sm:$0xff] }
 0x843   :  { %2545 = vmatprep.mubr.f32.mxu0 %v7878_v1  ;;  %2616 = vmatprep.mubr.f32.mxu1 %v7878_v1 }
 0x846   :  { %2546 = vmatmul.mubr.f32.vlgmr.msra.gmra.mxu0 %v4436_v14  ;;  %2617 = vmatmul.mubr.f32.vlgmr.msra.gmra.mxu1 %v4436_v14  ;;  %v7936_v14 = vld [vmem:[#allocation41_spill] sm:$0xff] }
 0x847   :  { %2657 = vmatpush1.msra.mxu0 %v6345_v38  ;;  %2728 = vmatpush1.msra.mxu1 %v6348_v35 }
 0x848   :  { %2658 = vmatprep.subr.mxu0 %v6351_v9  ;;  %2729 = vmatprep.subr.mxu1 %v6354_v0 }
 0x849   :  { %2659 = vmatpush1.msra.mxu0 %v6357_v46  ;;  %2730 = vmatpush1.msra.mxu1 %v6360_v2 }
 0x84a   :  { %2660 = vmatprep.subr.mxu0 %v6363_v33  ;;  %2731 = vmatprep.subr.mxu1 %v6366_v31 }
 0x84b   :  { %2661 = vmatpush1.msra.mxu0 %v6369_v5  ;;  %2732 = vmatpush1.msra.mxu1 %v6372_v36 }
 0x84c   :  { %2662 = vmatprep.subr.mxu0 %v6375_v20  ;;  %2733 = vmatprep.subr.mxu1 %v6378_v44 }
 0x84d   :  { %2663 = vmatpush1.msra.mxu0 %v6381_v45  ;;  %2734 = vmatpush1.msra.mxu1 %v6384_v47 }
 0x84e   :  { %2664 = vmatprep.subr.mxu0 %v6387_v48  ;;  %2735 = vmatprep.subr.mxu1 %v6390_v49 }
 0x84f   :  { %2665 = vmatpush1.msra.mxu0 %v6393_v50  ;;  %2736 = vmatpush1.msra.mxu1 %v6396_v52 }
 0x850   :  { %2666 = vmatprep.subr.mxu0 %v6399_v55  ;;  %2737 = vmatprep.subr.mxu1 %v6402_v58 }
 0x851   :  { %2667 = vmatpush1.msra.mxu0 %v6405_v59  ;;  %2738 = vmatpush1.msra.mxu1 %v6408_v57 }
 0x852   :  { %2668 = vmatprep.subr.mxu0 %v6411_v60  ;;  %2739 = vmatprep.subr.mxu1 %v6414_v4 }
 0x853   :  { %2669 = vmatpush1.msra.mxu0 %v6417_v6  ;;  %2740 = vmatpush1.msra.mxu1 %v6420_v7 }
 0x854   :  { %2670 = vmatprep.subr.mxu0 %v6423_v3  ;;  %2741 = vmatprep.subr.mxu1 %v6426_v11 }
 0x855   :  { %2671 = vmatpush1.msra.mxu0 %v6429_v32  ;;  %2742 = vmatpush1.msra.mxu1 %v6432_v29 }
 0x856   :  { %2672 = vmatprep.subr.mxu0 %v6435_v21  ;;  %2743 = vmatprep.subr.mxu1 %v6438_v37 }
 0x857   :  { %2673 = vmatpush1.msra.mxu0 %v6441_v25  ;;  %2744 = vmatpush1.msra.mxu1 %v6444_v17 }
 0x858   :  { %2674 = vmatprep.subr.mxu0 %v6447_v19  ;;  %2745 = vmatprep.subr.mxu1 %v6450_v41 }
 0x859   :  { %2675 = vmatpush1.msra.mxu0 %v6453_v42  ;;  %2746 = vmatpush1.msra.mxu1 %v6456_v16 }
 0x85a   :  { %2676 = vmatprep.subr.mxu0 %v6459_v18  ;;  %2747 = vmatprep.subr.mxu1 %v6462_v24 }
 0x85b   :  { %2677 = vmatpush1.msra.mxu0 %v6465_v13  ;;  %2748 = vmatpush1.msra.mxu1 %v6468_v40 }
 0x85c   :  { %2678 = vmatprep.subr.mxu0 %v7916_v51  ;;  %2749 = vmatprep.subr.mxu1 %v7917_v61 }
 0x85d   :  { %2679 = vmatpush1.msra.mxu0 %v7918_v63  ;;  %2750 = vmatpush1.msra.mxu1 %v7919_v28 }
 0x85e   :  { %2680 = vmatprep.subr.mxu0 %v7920_v30  ;;  %2751 = vmatprep.subr.mxu1 %v7921_v56 }
 0x85f   :  { %2681 = vmatpush1.msra.mxu0 %v7922_v34  ;;  %2752 = vmatpush1.msra.mxu1 %v7923_v39 }
 0x860   :  { %2682 = vmatprep.subr.mxu0 %v7924_v62  ;;  %2753 = vmatprep.subr.mxu1 %v7925_v15 }
 0x861   :  { %2683 = vmatpush1.msra.mxu0 %v7926_v27  ;;  %2754 = vmatpush1.msra.mxu1 %v7927_v53 }
 0x862   :  { %2684 = vmatprep.subr.mxu0 %v7928_v22  ;;  %2755 = vmatprep.subr.mxu1 %v7929_v26  ;;  %v7937_v22 = vld [vmem:[#allocation31_spill] sm:$0xff]  ;;  %v2281_v26 = vpop.f32.mrf.mxu0 }
 0x863   :  { %2685 = vmatpush1.msra.mxu0 %v7930_v10  ;;  %2756 = vmatpush1.msra.mxu1 %v7931_v43  ;;  %v2394_v10 = vpop.f32.mrf.mxu1 }
 0x864   :  { %2686 = vmatprep.subr.mxu0 %v7932_v8  ;;  %2757 = vmatprep.subr.mxu1 %v7933_v12  ;;  %v2283_v53 = vpop.f32.mrf.mxu0 }
 0x865   :  { %2687 = vmatpush1.msra.mxu0 %v7934_v23  ;;  %2720 = vmatprep.mubr.f32.mxu0 %v7878_v1  ;;  %v2396_v43 = vpop.f32.mrf.mxu1 }
 0x866   :  { %2758 = vmatpush1.msra.mxu1 %v7935_v54  ;;  %2791 = vmatprep.mubr.f32.mxu1 %v7878_v1  ;;  %v6617_v27 = vpop.f32.mrf.mxu0 }
 0x867   :  { %2831 = vmatprep.subr.mxu0 %v7936_v14  ;;  %2902 = vmatprep.subr.mxu1 %v7937_v22  ;;  %7938 = vst [vmem:[#allocation52_spill] sm:$0xff] %v6617_v27  ;;  %v6619_v8 = vpop.f32.mrf.mxu1 }
 0x868   :  { %7939 = vst [vmem:[#allocation36_spill] sm:$0xff] %v6619_v8  ;;  %v6621_v12 = vpop.f32.mrf.mxu0 }
 0x869   :  { %7940 = vst [vmem:[#allocation23_spill] sm:$0xff] %v6621_v12  ;;  %v6623_v23 = vpop.f32.mrf.mxu1 }
 0x86a   :  { %7941 = vst [vmem:[#allocation26_spill] sm:$0xff] %v6623_v23  ;;  %v6625_v15 = vpop.f32.mrf.mxu0 }
 0x86b   :  { %7942 = vst [vmem:[#allocation17_spill] sm:$0xff] %v6625_v15  ;;  %v6627_v54 = vpop.f32.mrf.mxu1 }
 0x86c   :  { %7943 = vst [vmem:[#allocation37_spill] sm:$0xff] %v6627_v54  ;;  %v6629_v1 = vpop.f32.mrf.mxu0 }
 0x86d   :  { %7944 = vst [vmem:[#allocation56_spill] sm:$0xff] %v6629_v1  ;;  %v6631_v14 = vpop.f32.mrf.mxu1 }
 0x86e   :  { %7945 = vst [vmem:[#allocation27_spill] sm:$0xff] %v6631_v14  ;;  %v6633_v22 = vpop.f32.mrf.mxu0 }
 0x86f   :  { %7946 = vst [vmem:[#allocation60_spill] sm:$0xff] %v6633_v22  ;;  %v6635_v62 = vpop.f32.mrf.mxu1 }
 0x870   :  { %7947 = vst [vmem:[#allocation38_spill] sm:$0xff] %v6635_v62  ;;  %v6637_v39 = vpop.f32.mrf.mxu0 }
 0x871   :  { %7948 = vst [vmem:[#allocation45_spill] sm:$0xff] %v6637_v39  ;;  %v6639_v27 = vpop.f32.mrf.mxu1 }
 0x872   :  { %7949 = vst [vmem:[#allocation28_spill] sm:$0xff] %v6639_v27  ;;  %v6641_v8 = vpop.f32.mrf.mxu0 }
 0x873   :  { %7950 = vst [vmem:[#allocation44_spill] sm:$0xff] %v6641_v8  ;;  %v6643_v12 = vpop.f32.mrf.mxu1 }
 0x874   :  { %7951 = vst [vmem:[#allocation39_spill] sm:$0xff] %v6643_v12  ;;  %v6645_v23 = vpop.f32.mrf.mxu0  ;;  %v2185_v12 = vld [vmem:[%s7470_s6] sm:$0xf] }
 0x875   :  { %7952 = vst [vmem:[#allocation34_spill] sm:$0xff] %v6645_v23  ;;  %v6647_v15 = vpop.f32.mrf.mxu1  ;;  %v7961_v23 = vld [vmem:[#allocation15_spill] sm:$0xff] }
 0x876   :  { %7953 = vst [vmem:[#allocation29_spill] sm:$0xff] %v6647_v15  ;;  %v6649_v54 = vpop.f32.mrf.mxu0  ;;  %v7962_v15 = vsub.s32 0, %v7961_v23 }
 0x877   :  { %7954 = vst [vmem:[#allocation24_spill] sm:$0xff] %v6649_v54  ;;  %v6651_v1 = vpop.f32.mrf.mxu1 }
 0x878   :  { %7955 = vst [vmem:[#allocation40_spill] sm:$0xff] %v6651_v1  ;;  %v6653_v14 = vpop.f32.mrf.mxu0  ;;  %v6668_v27 = vrot.slane %v2185_v12, %v7962_v15 }
 0x879   :  { %7956 = vst [vmem:[#allocation69_spill] sm:$0xff] %v6653_v14  ;;  %v6655_v22 = vpop.f32.mrf.mxu1 }
 0x87a   :  { %7957 = vst [vmem:[#allocation70_spill] sm:$0xff] %v6655_v22  ;;  %v6657_v62 = vpop.f32.mrf.mxu0  ;;  %7963 = vst [vmem:[#allocation20_spill] sm:$0xff] %v6668_v27  ;;  %v7966_v22 = vsub.s32 1, %v7961_v23  ;;  %v2282_v34 = vadd.f32 %v2281_v26, %v6668_v27 }
 0x87b   :  { %7958 = vst [vmem:[#allocation55_spill] sm:$0xff] %v6657_v62  ;;  %v6659_v39 = vpop.f32.mrf.mxu1 }
 0x87c   :  { %7959 = vst [vmem:[#allocation54_spill] sm:$0xff] %v6659_v39  ;;  %v6664_v8 = vpop.f32.mrf.mxu0  ;;  %v6676_v14 = vrot.slane %v2185_v12, %v7966_v22  ;;  %v7970_v22 = vsub.s32 3, %v7961_v23 }
 0x87d   :  { %7960 = vst [vmem:[#allocation72_spill] sm:$0xff] %v6664_v8  ;;  %v6670_v54 = vpop.f32.mrf.mxu1 }
 0x87e   :  { %7964 = vst [vmem:[#allocation22_spill] sm:$0xff] %v6670_v54  ;;  %v2284_v8 = vadd.f32 %v2283_v53, %v6676_v14  ;;  %v6688_v51 = vrot.slane %v2185_v12, %v7970_v22 }
 0x880   :  { %v2397_v26 = vadd.f32 %v2396_v43, %v6688_v51 }
 0x902   :  { %v6672_v1 = vpop.f32.mrf.mxu0  ;;  %v6678_v62 = vpop.f32.mrf.mxu1 }
 0x903   :  { %7965 = vst [vmem:[#allocation25_spill] sm:$0xff] %v6672_v1  ;;  %7967 = vst [vmem:[#allocation30_spill] sm:$0xff] %v6678_v62 }
 0x904   :  { %v6680_v39 = vpop.f32.mrf.mxu0  ;;  %v6684_v30 = vpop.f32.mrf.mxu1 }
 0x905   :  { %7968 = vst [vmem:[#allocation58_spill] sm:$0xff] %v6680_v39  ;;  %7969 = vst [vmem:[#allocation19_spill] sm:$0xff] %v6684_v30  ;;  %v7971_v39 = vsub.s32 2, %v7961_v23 }
 0x906   :  { %v2547_v56 = vpop.f32.mrf.mxu0  ;;  %v2618_v1 = vpop.f32.mrf.mxu1 }
 0x907   :  { %v2623_v15 = vadd.f32 %v2547_v56, %v2282_v34  ;;  %v6693_v53 = vrot.slane %v2185_v12, %v7971_v39  ;;  %v4437_v39 = vld [vmem:[%s7474_s10 + $0x8] sm:$0xff] }
 0x908   :  { %v2549_v28 = vpop.f32.mrf.mxu0  ;;  %v2620_v62 = vpop.f32.mrf.mxu1 }
 0x909   :  { %v4438_v54 = vmul.f32 -1.442695, %v2623_v15  ;;  %v2624_v63 = vadd.f32 %v2549_v28, %v2284_v8  ;;  %v2626_v30 = vadd.f32 %v2620_v62, %v2397_v26  ;;  %v2395_v56 = vadd.f32 %v2394_v10, %v6693_v53 }
 0x90b   :  { %4685 = vpow2.f32 %v4438_v54  ;;  %v4439_v61 = vmul.f32 -1.442695, %v2624_v63  ;;  %v4440_v34 = vmul.f32 -1.442695, %v2626_v30  ;;  %v2625_v8 = vadd.f32 %v2618_v1, %v2395_v56 }
 0x90d   :  { %4687 = vpow2.f32 %v4439_v61 }
 0x90e   :  { %4689 = vpow2.f32 %v4440_v34  ;;  %v7973_v34 = vld [vmem:[#allocation32_spill] sm:$0xff] }
 0x918   :  { %v4686_v28 = vpop.eup %4685 }
 0x919   :  { %v2630_v54 = vadd.f32 1.0, %v4686_v28  ;;  %v7974_v28 = vld [vmem:[#allocation43_spill] sm:$0xff] }
 0x91a   :  { %v4688_v63 = vpop.eup %4687 }
 0x91b   :  { %4691 = vrcp.f32 %v2630_v54  ;;  %v2636_v15 = vadd.f32 1.0, %v4688_v63  ;;  %v4690_v61 = vpop.eup %4689  ;;  %v7976_v54 = vld [vmem:[#allocation61_spill] sm:$0xff]  ;;  %v7977_v63 = vld [vmem:[#allocation62_spill] sm:$0xff] }
 0x91c   :  { %4693 = vtanh.f32 %v2625_v8  ;;  %v2643_v12 = vadd.f32 1.0, %v4690_v61  ;;  %v7975_v8 = vld [vmem:[#allocation33_spill] sm:$0xff]  ;;  %v7979_v61 = vld [vmem:[#allocation46_spill] sm:$0xff] }
 0x91d   :  { %4695 = vrcp.f32 %v2636_v15  ;;  %v7978_v15 = vld [vmem:[#allocation47_spill] sm:$0xff] }
 0x91e   :  { %4697 = vrcp.f32 %v2643_v12  ;;  %v7984_v12 = vld [vmem:[#allocation65_spill] sm:$0xff] }
 0x928   :  { %v4692_v22 = vpop.eup %4691 }
 0x929   :  { %v4694_v43 = vpop.eup %4693 }
 0x92a   :  { %v4696_v62 = vpop.eup %4695  ;;  %v2647_v10 = vmul.f32 %v4694_v43, %v4692_v22  ;;  %v7980_v22 = vld [vmem:[#allocation63_spill] sm:$0xff]  ;;  %v7982_v43 = vld [vmem:[#allocation49_spill] sm:$0xff] }
 0x92b   :  { %v2646_v30 = vmul.f32 %v4696_v62, %v4437_v39  ;;  %v4698_v1 = vpop.eup %4697  ;;  %v7981_v39 = vld [vmem:[#allocation64_spill] sm:$0xff] }
 0x92c   :  { %v7983_v62 = vld [vmem:[#allocation48_spill] sm:$0xff] }
 0x92d   :  { %v6699_v23 = vadd.f32 %v2647_v10, %v2646_v30  ;;  %v7985_v10 = vld [vmem:[#allocation66_spill] sm:$0xff]  ;;  %v7986_v30 = vld [vmem:[#allocation51_spill] sm:$0xff] }
 0x92f   :  { %4699 = vtanh.f32 %v6699_v23 }
 0x93c   :  { %v4700_v26 = vpop.eup %4699 }
 0x93d   :  { %v6702_v56 = vmul.f32 %v4700_v26, %v4698_v1  ;;  %v7987_v1 = vld [vmem:[#allocation50_spill] sm:$0xff]  ;;  %v7988_v26 = vld [vmem:[#allocation21_spill] sm:$0xff] }
 0x93f   :  { %7972 = vst [vmem:[#allocation71_spill] sm:$0xff] %v6702_v56  ;;  %2721 = vmatmul.mubr.f32.vlgmr.msra.gmra.mxu0 %v6702_v56  ;;  %2792 = vmatmul.mubr.f32.vlgmr.msra.gmra.mxu1 %v6702_v56  ;;  %v7989_v56 = vld [vmem:[#allocation35_spill] sm:$0xff] }
 0x940   :  { %2832 = vmatpush1.msra.mxu0 %v6345_v38  ;;  %2903 = vmatpush1.msra.mxu1 %v6348_v35 }
 0x941   :  { %2833 = vmatprep.subr.mxu0 %v6351_v9  ;;  %2904 = vmatprep.subr.mxu1 %v6354_v0 }
 0x942   :  { %2834 = vmatpush1.msra.mxu0 %v6357_v46  ;;  %2905 = vmatpush1.msra.mxu1 %v6360_v2 }
 0x943   :  { %2835 = vmatprep.subr.mxu0 %v6363_v33  ;;  %2906 = vmatprep.subr.mxu1 %v6366_v31 }
 0x944   :  { %2836 = vmatpush1.msra.mxu0 %v6369_v5  ;;  %2907 = vmatpush1.msra.mxu1 %v6372_v36 }
 0x945   :  { %2837 = vmatprep.subr.mxu0 %v6375_v20  ;;  %2908 = vmatprep.subr.mxu1 %v6378_v44 }
 0x946   :  { %2838 = vmatpush1.msra.mxu0 %v6381_v45  ;;  %2909 = vmatpush1.msra.mxu1 %v6384_v47 }
 0x947   :  { %2839 = vmatprep.subr.mxu0 %v6387_v48  ;;  %2910 = vmatprep.subr.mxu1 %v6390_v49 }
 0x948   :  { %2840 = vmatpush1.msra.mxu0 %v6393_v50  ;;  %2911 = vmatpush1.msra.mxu1 %v6396_v52 }
 0x949   :  { %2841 = vmatprep.subr.mxu0 %v6399_v55  ;;  %2912 = vmatprep.subr.mxu1 %v6402_v58 }
 0x94a   :  { %2842 = vmatpush1.msra.mxu0 %v6405_v59  ;;  %2913 = vmatpush1.msra.mxu1 %v6408_v57 }
 0x94b   :  { %2843 = vmatprep.subr.mxu0 %v6411_v60  ;;  %2914 = vmatprep.subr.mxu1 %v6414_v4 }
 0x94c   :  { %2844 = vmatpush1.msra.mxu0 %v6417_v6  ;;  %2915 = vmatpush1.msra.mxu1 %v6420_v7 }
 0x94d   :  { %2845 = vmatprep.subr.mxu0 %v6423_v3  ;;  %2916 = vmatprep.subr.mxu1 %v6426_v11 }
 0x94e   :  { %2846 = vmatpush1.msra.mxu0 %v6429_v32  ;;  %2917 = vmatpush1.msra.mxu1 %v6432_v29 }
 0x94f   :  { %2847 = vmatprep.subr.mxu0 %v6435_v21  ;;  %2918 = vmatprep.subr.mxu1 %v6438_v37 }
 0x950   :  { %2848 = vmatpush1.msra.mxu0 %v6441_v25  ;;  %2919 = vmatpush1.msra.mxu1 %v6444_v17 }
 0x951   :  { %2849 = vmatprep.subr.mxu0 %v6447_v19  ;;  %2920 = vmatprep.subr.mxu1 %v6450_v41 }
 0x952   :  { %2850 = vmatpush1.msra.mxu0 %v6453_v42  ;;  %2921 = vmatpush1.msra.mxu1 %v6456_v16 }
 0x953   :  { %2851 = vmatprep.subr.mxu0 %v6459_v18  ;;  %2922 = vmatprep.subr.mxu1 %v6462_v24 }
 0x954   :  { %2852 = vmatpush1.msra.mxu0 %v6465_v13  ;;  %2923 = vmatpush1.msra.mxu1 %v6468_v40 }
 0x955   :  { %2853 = vmatprep.subr.mxu0 %v7973_v34  ;;  %2924 = vmatprep.subr.mxu1 %v7974_v28  ;;  %v7999_v28 = vld [vmem:[#allocation36_spill] sm:$0xff] }
 0x956   :  { %2854 = vmatpush1.msra.mxu0 %v7975_v8  ;;  %2925 = vmatpush1.msra.mxu1 %v7976_v54 }
 0x957   :  { %2855 = vmatprep.subr.mxu0 %v7977_v63  ;;  %2926 = vmatprep.subr.mxu1 %v7978_v15 }
 0x958   :  { %2856 = vmatpush1.msra.mxu0 %v7979_v61  ;;  %2927 = vmatpush1.msra.mxu1 %v7980_v22  ;;  %v7990_v61 = vld [vmem:[#allocation68_spill] sm:$0xff]  ;;  %v7991_v22 = vld [vmem:[#allocation67_spill] sm:$0xff] }
 0x959   :  { %2857 = vmatprep.subr.mxu0 %v7981_v39  ;;  %2928 = vmatprep.subr.mxu1 %v7982_v43  ;;  %v7992_v39 = vmov 0.0   ;;  %v7993_v43 = vld [vmem:[#allocation53_spill] sm:$0xff] }
 0x95a   :  { %2858 = vmatpush1.msra.mxu0 %v7983_v62  ;;  %2929 = vmatpush1.msra.mxu1 %v7984_v12  ;;  %v7994_v12 = vld [vmem:[#allocation41_spill] sm:$0xff] }
 0x95b   :  { %2859 = vmatprep.subr.mxu0 %v7985_v10  ;;  %2930 = vmatprep.subr.mxu1 %v7986_v30  ;;  %v7995_v10 = vld [vmem:[#allocation31_spill] sm:$0xff] }
 0x95c   :  { %2860 = vmatpush1.msra.mxu0 %v7987_v1  ;;  %2931 = vmatpush1.msra.mxu1 %v7988_v26  ;;  %v7996_v1 = vld [vmem:[#allocation52_spill] sm:$0xff] }
 0x95d   :  { %2861 = vmatprep.subr.mxu0 %v7989_v56  ;;  %2932 = vmatprep.subr.mxu1 %v7990_v61  ;;  %v2288_v30 = vadd.f32 %v7996_v1, %v6668_v27  ;;  %v7997_v56 = vld [vmem:[#allocation23_spill] sm:$0xff]  ;;  %v2401_v1 = vadd.f32 %v7999_v28, %v6693_v53 }
 0x95e   :  { %2862 = vmatpush1.msra.mxu0 %v7991_v22  ;;  %2895 = vmatprep.mubr.f32.mxu0 %v7992_v39  ;;  %v2290_v62 = vadd.f32 %v7997_v56, %v6676_v14 }
 0x95f   :  { %2933 = vmatpush1.msra.mxu1 %v7993_v43  ;;  %2966 = vmatprep.mubr.f32.mxu1 %v7992_v39 }
 0x960   :  { %3006 = vmatprep.subr.mxu0 %v7994_v12  ;;  %3077 = vmatprep.subr.mxu1 %v7995_v10  ;;  %v7998_v12 = vld [vmem:[#allocation26_spill] sm:$0xff] }
 0x961   :  { %v2403_v8 = vadd.f32 %v7998_v12, %v6688_v51 }
 0x9ff   :  { %v2722_v26 = vpop.f32.mrf.mxu0  ;;  %v2793_v54 = vpop.f32.mrf.mxu1 }
 0xa00   :  { %v2798_v61 = vadd.f32 %v2722_v26, %v2288_v30  ;;  %v2800_v27 = vadd.f32 %v2793_v54, %v2401_v1  ;;  %v8019_v54 = vld [vmem:[#allocation68_spill] sm:$0xff]  ;;  %v8021_v26 = vmov 0.0   ;;  %v8022_v1 = vld [vmem:[#allocation53_spill] sm:$0xff] }
 0xa01   :  { %v2724_v15 = vpop.f32.mrf.mxu0  ;;  %v2795_v39 = vpop.f32.mrf.mxu1 }
 0xa02   :  { %v4441_v22 = vmul.f32 -1.442695, %v2798_v61  ;;  %v2799_v63 = vadd.f32 %v2724_v15, %v2290_v62  ;;  %v2801_v10 = vadd.f32 %v2795_v39, %v2403_v8 }
 0xa04   :  { %4701 = vpow2.f32 %v4441_v22  ;;  %v4442_v43 = vmul.f32 -1.442695, %v2799_v63  ;;  %v4443_v34 = vmul.f32 -1.442695, %v2801_v10  ;;  %v8020_v10 = vld [vmem:[#allocation67_spill] sm:$0xff] }
 0xa06   :  { %4703 = vpow2.f32 %v4442_v43 }
 0xa07   :  { %4705 = vtanh.f32 %v2800_v27 }
 0xa08   :  { %4707 = vpow2.f32 %v4443_v34  ;;  %v8018_v34 = vld [vmem:[#allocation35_spill] sm:$0xff] }
 0xa11   :  { %v4702_v40 = vpop.eup %4701 }
 0xa12   :  { %v2805_v56 = vadd.f32 1.0, %v4702_v40 }
 0xa13   :  { %v4704_v30 = vpop.eup %4703 }
 0xa14   :  { %4709 = vrcp.f32 %v2805_v56  ;;  %v2811_v15 = vadd.f32 1.0, %v4704_v30  ;;  %v4706_v63 = vpop.eup %4705  ;;  %v8023_v56 = vld [vmem:[#allocation41_spill] sm:$0xff]  ;;  %v8024_v30 = vld [vmem:[#allocation31_spill] sm:$0xff] }
 0xa15   :  { %v4708_v61 = vpop.eup %4707 }
 0xa16   :  { %4711 = vrcp.f32 %v2811_v15  ;;  %v2818_v12 = vadd.f32 1.0, %v4708_v61  ;;  %v8025_v15 = vld [vmem:[#allocation20_spill] sm:$0xff] }
 0xa18   :  { %4713 = vrcp.f32 %v2818_v12 }
 0xa21   :  { %v4710_v22 = vpop.eup %4709 }
 0xa22   :  { %v2822_v43 = vmul.f32 %v4710_v22, %v4706_v63  ;;  %v8026_v63 = vld [vmem:[#allocation17_spill] sm:$0xff] }
 0xa23   :  { %v4712_v62 = vpop.eup %4711  ;;  %v2294_v61 = vadd.f32 %v8026_v63, %v8025_v15 }
 0xa24   :  { %v2821_v8 = vmul.f32 %v4712_v62, %v6699_v23  ;;  %v8017_v23 = vld [vmem:[#allocation21_spill] sm:$0xff] }
 0xa25   :  { %v4714_v40 = vpop.eup %4713 }
 0xa26   :  { %v6781_v39 = vadd.f32 %v2822_v43, %v2821_v8  ;;  %v8027_v43 = vld [vmem:[#allocation56_spill] sm:$0xff] }
 0xa27   :  { %v2296_v62 = vadd.f32 %v8027_v43, %v6676_v14 }
 0xa28   :  { %4715 = vtanh.f32 %v6781_v39 }
 0xa35   :  { %v4716_v27 = vpop.eup %4715 }
 0xa36   :  { %v6784_v28 = vmul.f32 %v4716_v27, %v4714_v40 }
 0xa38   :  { %8000 = vst [vmem:[#allocation59_spill] sm:$0xff] %v6784_v28  ;;  %2896 = vmatmul.mubr.f32.vlgmr.msra.gmra.mxu0 %v6784_v28  ;;  %2967 = vmatmul.mubr.f32.vlgmr.msra.gmra.mxu1 %v6784_v28 }
 0xa39   :  { %3007 = vmatpush1.msra.mxu0 %v6345_v38  ;;  %3078 = vmatpush1.msra.mxu1 %v6348_v35  ;;  %v8001_v38 = vld [vmem:[#allocation42_spill] sm:$0xff]  ;;  %v8002_v35 = vld [vmem:[#allocation32_spill] sm:$0xff] }
 0xa3a   :  { %3008 = vmatprep.subr.mxu0 %v6351_v9  ;;  %3079 = vmatprep.subr.mxu1 %v6354_v0  ;;  %v8003_v9 = vld [vmem:[#allocation43_spill] sm:$0xff]  ;;  %v8004_v0 = vld [vmem:[#allocation33_spill] sm:$0xff] }
 0xa3b   :  { %3009 = vmatpush1.msra.mxu0 %v6357_v46  ;;  %3080 = vmatpush1.msra.mxu1 %v6360_v2  ;;  %v8005_v46 = vld [vmem:[#allocation61_spill] sm:$0xff]  ;;  %v8006_v2 = vld [vmem:[#allocation62_spill] sm:$0xff] }
 0xa3c   :  { %3010 = vmatprep.subr.mxu0 %v6363_v33  ;;  %3081 = vmatprep.subr.mxu1 %v6366_v31  ;;  %v8007_v33 = vld [vmem:[#allocation47_spill] sm:$0xff]  ;;  %v8008_v31 = vld [vmem:[#allocation46_spill] sm:$0xff] }
 0xa3d   :  { %3011 = vmatpush1.msra.mxu0 %v6369_v5  ;;  %3082 = vmatpush1.msra.mxu1 %v6372_v36  ;;  %v8009_v5 = vld [vmem:[#allocation63_spill] sm:$0xff]  ;;  %v8010_v36 = vld [vmem:[#allocation64_spill] sm:$0xff] }
 0xa3e   :  { %3012 = vmatprep.subr.mxu0 %v6375_v20  ;;  %3083 = vmatprep.subr.mxu1 %v6378_v44  ;;  %v8011_v20 = vld [vmem:[#allocation49_spill] sm:$0xff]  ;;  %v8012_v44 = vld [vmem:[#allocation48_spill] sm:$0xff] }
 0xa3f   :  { %3013 = vmatpush1.msra.mxu0 %v6381_v45  ;;  %3084 = vmatpush1.msra.mxu1 %v6384_v47  ;;  %v8013_v45 = vld [vmem:[#allocation65_spill] sm:$0xff]  ;;  %v8014_v47 = vld [vmem:[#allocation66_spill] sm:$0xff] }
 0xa40   :  { %3014 = vmatprep.subr.mxu0 %v6387_v48  ;;  %3085 = vmatprep.subr.mxu1 %v6390_v49  ;;  %v8015_v48 = vld [vmem:[#allocation51_spill] sm:$0xff]  ;;  %v8016_v49 = vld [vmem:[#allocation50_spill] sm:$0xff] }
 0xa41   :  { %3015 = vmatpush1.msra.mxu0 %v6393_v50  ;;  %3086 = vmatpush1.msra.mxu1 %v6396_v52 }
 0xa42   :  { %3016 = vmatprep.subr.mxu0 %v6399_v55  ;;  %3087 = vmatprep.subr.mxu1 %v6402_v58 }
 0xa43   :  { %3017 = vmatpush1.msra.mxu0 %v6405_v59  ;;  %3088 = vmatpush1.msra.mxu1 %v6408_v57 }
 0xa44   :  { %3018 = vmatprep.subr.mxu0 %v6411_v60  ;;  %3089 = vmatprep.subr.mxu1 %v6414_v4 }
 0xa45   :  { %3019 = vmatpush1.msra.mxu0 %v6417_v6  ;;  %3090 = vmatpush1.msra.mxu1 %v6420_v7 }
 0xa46   :  { %3020 = vmatprep.subr.mxu0 %v6423_v3  ;;  %3091 = vmatprep.subr.mxu1 %v6426_v11 }
 0xa47   :  { %3021 = vmatpush1.msra.mxu0 %v6429_v32  ;;  %3092 = vmatpush1.msra.mxu1 %v6432_v29 }
 0xa48   :  { %3022 = vmatprep.subr.mxu0 %v6435_v21  ;;  %3093 = vmatprep.subr.mxu1 %v6438_v37 }
 0xa49   :  { %3023 = vmatpush1.msra.mxu0 %v6441_v25  ;;  %3094 = vmatpush1.msra.mxu1 %v6444_v17 }
 0xa4a   :  { %3024 = vmatprep.subr.mxu0 %v6447_v19  ;;  %3095 = vmatprep.subr.mxu1 %v6450_v41 }
 0xa4b   :  { %3025 = vmatpush1.msra.mxu0 %v6453_v42  ;;  %3096 = vmatpush1.msra.mxu1 %v6456_v16 }
 0xa4c   :  { %3026 = vmatprep.subr.mxu0 %v6459_v18  ;;  %3097 = vmatprep.subr.mxu1 %v6462_v24 }
 0xa4d   :  { %3027 = vmatpush1.msra.mxu0 %v6465_v13  ;;  %3098 = vmatpush1.msra.mxu1 %v8001_v38 }
 0xa4e   :  { %3028 = vmatprep.subr.mxu0 %v8002_v35  ;;  %3099 = vmatprep.subr.mxu1 %v8003_v9 }
 0xa4f   :  { %3029 = vmatpush1.msra.mxu0 %v8004_v0  ;;  %3100 = vmatpush1.msra.mxu1 %v8005_v46 }
 0xa50   :  { %3030 = vmatprep.subr.mxu0 %v8006_v2  ;;  %3101 = vmatprep.subr.mxu1 %v8007_v33 }
 0xa51   :  { %3031 = vmatpush1.msra.mxu0 %v8008_v31  ;;  %3102 = vmatpush1.msra.mxu1 %v8009_v5 }
 0xa52   :  { %3032 = vmatprep.subr.mxu0 %v8010_v36  ;;  %3103 = vmatprep.subr.mxu1 %v8011_v20 }
 0xa53   :  { %3033 = vmatpush1.msra.mxu0 %v8012_v44  ;;  %3104 = vmatpush1.msra.mxu1 %v8013_v45 }
 0xa54   :  { %3034 = vmatprep.subr.mxu0 %v8014_v47  ;;  %3105 = vmatprep.subr.mxu1 %v8015_v48 }
 0xa55   :  { %3035 = vmatpush1.msra.mxu0 %v8016_v49  ;;  %3106 = vmatpush1.msra.mxu1 %v8017_v23 }
 0xa56   :  { %3036 = vmatprep.subr.mxu0 %v8018_v34  ;;  %3107 = vmatprep.subr.mxu1 %v8019_v54  ;;  %v8029_v54 = vld [vmem:[#allocation37_spill] sm:$0xff] }
 0xa57   :  { %3037 = vmatpush1.msra.mxu0 %v8020_v10  ;;  %3070 = vmatprep.mubr.f32.mxu0 %v8021_v26  ;;  %v2407_v63 = vadd.f32 %v8029_v54, %v6693_v53 }
 0xa58   :  { %3108 = vmatpush1.msra.mxu1 %v8022_v1  ;;  %3141 = vmatprep.mubr.f32.mxu1 %v8021_v26 }
 0xa59   :  { %3181 = vmatprep.subr.mxu0 %v8023_v56  ;;  %3252 = vmatprep.subr.mxu1 %v8024_v30  ;;  %v8028_v56 = vld [vmem:[#allocation27_spill] sm:$0xff] }
 0xa5a   :  { %v2409_v10 = vadd.f32 %v8028_v56, %v6688_v51  ;;  %v6879_v56 = vld [vmem:[#allocation9 + $0x1d8] sm:$0xff] }
 0xaf8   :  { %v2897_v22 = vpop.f32.mrf.mxu0  ;;  %v2968_v28 = vpop.f32.mrf.mxu1 }
 0xaf9   :  { %v2973_v12 = vadd.f32 %v2897_v22, %v2294_v61  ;;  %v2975_v15 = vadd.f32 %v2968_v28, %v2407_v63  ;;  %v6885_v63 = vld [vmem:[#allocation9 + $0x1d0] sm:$0xff] }
 0xafa   :  { %v2899_v8 = vpop.f32.mrf.mxu0  ;;  %v2970_v26 = vpop.f32.mrf.mxu1 }
 0xafb   :  { %v4444_v40 = vmul.f32 -1.442695, %v2973_v12  ;;  %v2974_v27 = vadd.f32 %v2899_v8, %v2296_v62  ;;  %v2976_v30 = vadd.f32 %v2970_v26, %v2409_v10 }
 0xafd   :  { %4717 = vpow2.f32 %v4444_v40  ;;  %v4445_v1 = vmul.f32 -1.442695, %v2974_v27  ;;  %v4446_v34 = vmul.f32 -1.442695, %v2976_v30  ;;  %v6882_v30 = vld [vmem:[#allocation9 + $0x1c0] sm:$0xff] }
 0xaff   :  { %4719 = vpow2.f32 %v4445_v1 }
 0xb00   :  { %4721 = vtanh.f32 %v2975_v15  ;;  %v6873_v15 = vld [vmem:[#allocation9 + $0x1f0] sm:$0xff] }
 0xb01   :  { %4723 = vpow2.f32 %v4446_v34  ;;  %v6870_v34 = vld [vmem:[#allocation9 + $0x1e0] sm:$0xff] }
 0xb0a   :  { %v4718_v23 = vpop.eup %4717 }
 0xb0b   :  { %v2980_v43 = vadd.f32 1.0, %v4718_v23 }
 0xb0c   :  { %v4720_v61 = vpop.eup %4719 }
 0xb0d   :  { %4725 = vrcp.f32 %v2980_v43  ;;  %v2986_v22 = vadd.f32 1.0, %v4720_v61  ;;  %v4722_v62 = vpop.eup %4721  ;;  %v6888_v43 = vld [vmem:[#allocation9 + $0x1a8] sm:$0xff]  ;;  %v6891_v61 = vld [vmem:[#allocation9 + $0x1b8] sm:$0xff] }
 0xb0e   :  { %v4724_v1 = vpop.eup %4723 }
 0xb0f   :  { %4727 = vrcp.f32 %v2986_v22  ;;  %v2993_v27 = vadd.f32 1.0, %v4724_v1  ;;  %v6894_v22 = vld [vmem:[#allocation9 + $0x1a0] sm:$0xff]  ;;  %v6900_v1 = vld [vmem:[#allocation9 + $0x188] sm:$0xff] }
 0xb11   :  { %4729 = vrcp.f32 %v2993_v27  ;;  %v6912_v27 = vld [vmem:[#allocation9 + $0x168] sm:$0xff] }
 0xb1a   :  { %v4726_v12 = vpop.eup %4725 }
 0xb1b   :  { %v2997_v8 = vmul.f32 %v4726_v12, %v4722_v62  ;;  %v6897_v62 = vld [vmem:[#allocation9 + $0x1b0] sm:$0xff]  ;;  %v6903_v12 = vld [vmem:[#allocation9 + $0x198] sm:$0xff] }
 0xb1c   :  { %v4728_v40 = vpop.eup %4727 }
 0xb1d   :  { %v2996_v10 = vmul.f32 %v4728_v40, %v6781_v39  ;;  %v6876_v39 = vld [vmem:[#allocation9 + $0x1c8] sm:$0xff]  ;;  %v6909_v40 = vld [vmem:[#allocation9 + $0x190] sm:$0xff] }
 0xb1e   :  { %v4730_v28 = vpop.eup %4729 }
 0xb1f   :  { %v6863_v26 = vadd.f32 %v2997_v8, %v2996_v10  ;;  %v6906_v8 = vld [vmem:[#allocation9 + $0x180] sm:$0xff]  ;;  %v6915_v10 = vld [vmem:[#allocation9 + $0x178] sm:$0xff] }
 0xb21   :  { %4731 = vtanh.f32 %v6863_v26 }
 0xb2e   :  { %v4732_v23 = vpop.eup %4731 }
 0xb2f   :  { %v6866_v54 = vmul.f32 %v4732_v23, %v4730_v28 }
 0xb31   :  { %8030 = vst [vmem:[#allocation57_spill] sm:$0xff] %v6866_v54  ;;  %3071 = vmatmul.mubr.f32.vlgmr.msra.gmra.mxu0 %v6866_v54  ;;  %3142 = vmatmul.mubr.f32.vlgmr.msra.gmra.mxu1 %v6866_v54  ;;  %v7121_v54 = vld [vmem:[#allocation9 + $0x38] sm:$0xff] }
 0xb32   :  { %3182 = vmatpush1.msra.mxu0 %v6870_v34  ;;  %3253 = vmatpush1.msra.mxu1 %v6873_v15  ;;  %8059 = vst [vmem:[#allocation65_spill] sm:$0xff] %v7121_v54 }
 0xb33   :  { %3183 = vmatprep.subr.mxu0 %v6876_v39  ;;  %3254 = vmatprep.subr.mxu1 %v6879_v56 }
 0xb34   :  { %3184 = vmatpush1.msra.mxu0 %v6882_v30  ;;  %3255 = vmatpush1.msra.mxu1 %v6885_v63 }
 0xb35   :  { %3185 = vmatprep.subr.mxu0 %v6888_v43  ;;  %3256 = vmatprep.subr.mxu1 %v6891_v61 }
 0xb36   :  { %3186 = vmatpush1.msra.mxu0 %v6894_v22  ;;  %3257 = vmatpush1.msra.mxu1 %v6897_v62 }
 0xb37   :  { %3187 = vmatprep.subr.mxu0 %v6900_v1  ;;  %3258 = vmatprep.subr.mxu1 %v6903_v12 }
 0xb38   :  { %3188 = vmatpush1.msra.mxu0 %v6906_v8  ;;  %3259 = vmatpush1.msra.mxu1 %v6909_v40 }
 0xb39   :  { %3189 = vmatprep.subr.mxu0 %v6912_v27  ;;  %3260 = vmatprep.subr.mxu1 %v6915_v10 }
 0xb3a   :  { %3190 = vmatpush1.msra.mxu0 %v6393_v50  ;;  %3261 = vmatpush1.msra.mxu1 %v6396_v52  ;;  %v8031_v50 = vld [vmem:[#allocation21_spill] sm:$0xff]  ;;  %v8032_v52 = vld [vmem:[#allocation35_spill] sm:$0xff] }
 0xb3b   :  { %3191 = vmatprep.subr.mxu0 %v6399_v55  ;;  %3262 = vmatprep.subr.mxu1 %v6402_v58  ;;  %v8033_v55 = vld [vmem:[#allocation68_spill] sm:$0xff]  ;;  %v8034_v58 = vld [vmem:[#allocation67_spill] sm:$0xff] }
 0xb3c   :  { %3192 = vmatpush1.msra.mxu0 %v6405_v59  ;;  %3263 = vmatpush1.msra.mxu1 %v6408_v57  ;;  %v8035_v59 = vmov 0.0   ;;  %v8036_v57 = vld [vmem:[#allocation53_spill] sm:$0xff] }
 0xb3d   :  { %3193 = vmatprep.subr.mxu0 %v6411_v60  ;;  %3264 = vmatprep.subr.mxu1 %v6414_v4  ;;  %v6966_v60 = vld [vmem:[#allocation9 + $0x1e8] sm:$0xff]  ;;  %v6969_v4 = vld [vmem:[#allocation9 + $0x1f8] sm:$0xff] }
 0xb3e   :  { %3194 = vmatpush1.msra.mxu0 %v6417_v6  ;;  %3265 = vmatpush1.msra.mxu1 %v6420_v7  ;;  %8037 = vst [vmem:[#allocation15_spill] sm:$0xff] %v6966_v60  ;;  %8038 = vst [vmem:[#allocation52_spill] sm:$0xff] %v6969_v4  ;;  %v8039_v6 = vld [vmem:[#allocation20_spill] sm:$0xff] }
 0xb3f   :  { %3195 = vmatprep.subr.mxu0 %v6423_v3  ;;  %3266 = vmatprep.subr.mxu1 %v6426_v11  ;;  %v8040_v7 = vld [vmem:[#allocation60_spill] sm:$0xff] }
 0xb40   :  { %3196 = vmatpush1.msra.mxu0 %v6429_v32  ;;  %3267 = vmatpush1.msra.mxu1 %v6432_v29  ;;  %v2300_v3 = vadd.f32 %v8040_v7, %v8039_v6  ;;  %v8041_v32 = vld [vmem:[#allocation45_spill] sm:$0xff]  ;;  %v7022_v7 = vld [vmem:[#allocation9 + $0x128] sm:$0xff] }
 0xb41   :  { %3197 = vmatprep.subr.mxu0 %v6435_v21  ;;  %3268 = vmatprep.subr.mxu1 %v6438_v37  ;;  %v2302_v29 = vadd.f32 %v8041_v32, %v6676_v14  ;;  %v7031_v32 = vld [vmem:[#allocation9 + $0x130] sm:$0xff] }
 0xb42   :  { %3198 = vmatpush1.msra.mxu0 %v6441_v25  ;;  %3269 = vmatpush1.msra.mxu1 %v6444_v17 }
 0xb43   :  { %3199 = vmatprep.subr.mxu0 %v6447_v19  ;;  %3270 = vmatprep.subr.mxu1 %v6450_v41 }
 0xb44   :  { %3200 = vmatpush1.msra.mxu0 %v6453_v42  ;;  %3271 = vmatpush1.msra.mxu1 %v6456_v16  ;;  %v8042_v16 = vld [vmem:[#allocation28_spill] sm:$0xff] }
 0xb45   :  { %3201 = vmatprep.subr.mxu0 %v6459_v18  ;;  %3272 = vmatprep.subr.mxu1 %v6462_v24  ;;  %v2415_v18 = vadd.f32 %v8042_v16, %v6688_v51  ;;  %v7058_v16 = vld [vmem:[#allocation9 + $0xc8] sm:$0xff] }
 0xb46   :  { %3202 = vmatpush1.msra.mxu0 %v6465_v13  ;;  %3273 = vmatpush1.msra.mxu1 %v8001_v38  ;;  %v8043_v13 = vld [vmem:[#allocation38_spill] sm:$0xff] }
 0xb47   :  { %3203 = vmatprep.subr.mxu0 %v8002_v35  ;;  %3274 = vmatprep.subr.mxu1 %v8003_v9  ;;  %v2413_v38 = vadd.f32 %v8043_v13, %v6693_v53  ;;  %v7067_v13 = vld [vmem:[#allocation9 + $0xd0] sm:$0xff] }
 0xb48   :  { %3204 = vmatpush1.msra.mxu0 %v8004_v0  ;;  %3275 = vmatpush1.msra.mxu1 %v8005_v46 }
 0xb49   :  { %3205 = vmatprep.subr.mxu0 %v8006_v2  ;;  %3276 = vmatprep.subr.mxu1 %v8007_v33 }
 0xb4a   :  { %3206 = vmatpush1.msra.mxu0 %v8008_v31  ;;  %3277 = vmatpush1.msra.mxu1 %v8009_v5 }
 0xb4b   :  { %3207 = vmatprep.subr.mxu0 %v8010_v36  ;;  %3278 = vmatprep.subr.mxu1 %v8011_v20 }
 0xb4c   :  { %3208 = vmatpush1.msra.mxu0 %v8012_v44  ;;  %3279 = vmatpush1.msra.mxu1 %v8013_v45 }
 0xb4d   :  { %3209 = vmatprep.subr.mxu0 %v8014_v47  ;;  %3280 = vmatprep.subr.mxu1 %v8015_v48 }
 0xb4e   :  { %3210 = vmatpush1.msra.mxu0 %v8016_v49  ;;  %3281 = vmatpush1.msra.mxu1 %v8031_v50  ;;  %v7007_v50 = vld [vmem:[#allocation9 + $0x170] sm:$0xff] }
 0xb4f   :  { %3211 = vmatprep.subr.mxu0 %v8032_v52  ;;  %3282 = vmatprep.subr.mxu1 %v8033_v55  ;;  %v7010_v52 = vld [vmem:[#allocation9 + $0x148] sm:$0xff]  ;;  %v7013_v55 = vld [vmem:[#allocation9 + $0x158] sm:$0xff] }
 0xb50   :  { %3212 = vmatpush1.msra.mxu0 %v8034_v58  ;;  %3245 = vmatprep.mubr.f32.mxu0 %v8035_v59  ;;  %v7016_v58 = vld [vmem:[#allocation9 + $0x140] sm:$0xff] }
 0xb51   :  { %3283 = vmatpush1.msra.mxu1 %v8036_v57  ;;  %3316 = vmatprep.mubr.f32.mxu1 %v8035_v59  ;;  %v7019_v57 = vld [vmem:[#allocation9 + $0x150] sm:$0xff] }
 0xb52   :  { %3356 = vmatprep.subr.mxu0 %v6966_v60  ;;  %3427 = vmatprep.subr.mxu1 %v6969_v4 }
 0xbf1   :  { %v3072_v11 = vpop.f32.mrf.mxu0  ;;  %v3143_v19 = vpop.f32.mrf.mxu1 }
 0xbf2   :  { %v3148_v21 = vadd.f32 %v3072_v11, %v2300_v3  ;;  %v3150_v35 = vadd.f32 %v3143_v19, %v2413_v38  ;;  %v7025_v3 = vld [vmem:[#allocation9 + $0x138] sm:$0xff]  ;;  %v7028_v11 = vld [vmem:[#allocation9 + $0x120] sm:$0xff]  ;;  %v7070_v38 = vld [vmem:[#allocation9 + $0xa8] sm:$0xff] }
 0xbf3   :  { %v3074_v37 = vpop.f32.mrf.mxu0  ;;  %v3145_v42 = vpop.f32.mrf.mxu1  ;;  %v7049_v19 = vld [vmem:[#allocation9 + $0xf8] sm:$0xff] }
 0xbf4   :  { %v4447_v25 = vmul.f32 -1.442695, %v3148_v21  ;;  %v3149_v17 = vadd.f32 %v3074_v37, %v2302_v29  ;;  %v3151_v24 = vadd.f32 %v3145_v42, %v2415_v18  ;;  %v7034_v29 = vld [vmem:[#allocation9 + $0x108] sm:$0xff]  ;;  %v7037_v21 = vld [vmem:[#allocation9 + $0x118] sm:$0xff]  ;;  %v7040_v37 = vld [vmem:[#allocation9 + $0x100] sm:$0xff] }
 0xbf5   :  { %v7055_v42 = vld [vmem:[#allocation9 + $0xf0] sm:$0xff]  ;;  %v7061_v18 = vld [vmem:[#allocation9 + $0xd8] sm:$0xff] }
 0xbf6   :  { %4733 = vpow2.f32 %v4447_v25  ;;  %v4448_v41 = vmul.f32 -1.442695, %v3149_v17  ;;  %v4449_v9 = vmul.f32 -1.442695, %v3151_v24  ;;  %v7043_v25 = vld [vmem:[#allocation9 + $0x110] sm:$0xff]  ;;  %v7046_v17 = vld [vmem:[#allocation9 + $0xe8] sm:$0xff] }
 0xbf7   :  { %v7064_v24 = vld [vmem:[#allocation9 + $0xc0] sm:$0xff] }
 0xbf8   :  { %4735 = vpow2.f32 %v4448_v41  ;;  %v7052_v41 = vld [vmem:[#allocation9 + $0xe0] sm:$0xff] }
 0xbf9   :  { %4737 = vtanh.f32 %v3150_v35  ;;  %v7073_v35 = vld [vmem:[#allocation9 + $0xb8] sm:$0xff] }
 0xbfa   :  { %4739 = vpow2.f32 %v4449_v9  ;;  %v7076_v9 = vld [vmem:[#allocation9 + $0xa0] sm:$0xff] }
 0xc03   :  { %v4734_v0 = vpop.eup %4733 }
 0xc04   :  { %v3155_v46 = vadd.f32 1.0, %v4734_v0  ;;  %v7079_v0 = vld [vmem:[#allocation9 + $0xb0] sm:$0xff] }
 0xc05   :  { %v4736_v2 = vpop.eup %4735  ;;  %8045 = vst [vmem:[#allocation26_spill] sm:$0xff] %v7079_v0 }
 0xc06   :  { %4741 = vrcp.f32 %v3155_v46  ;;  %v3161_v33 = vadd.f32 1.0, %v4736_v2  ;;  %v4738_v31 = vpop.eup %4737  ;;  %v7082_v46 = vld [vmem:[#allocation9 + $0x88] sm:$0xff]  ;;  %v7085_v2 = vld [vmem:[#allocation9 + $0x98] sm:$0xff] }
 0xc07   :  { %v4740_v5 = vpop.eup %4739  ;;  %8046 = vst [vmem:[#allocation36_spill] sm:$0xff] %v7082_v46  ;;  %8047 = vst [vmem:[#allocation42_spill] sm:$0xff] %v7085_v2 }
 0xc08   :  { %4743 = vrcp.f32 %v3161_v33  ;;  %v3168_v45 = vadd.f32 1.0, %v4740_v5  ;;  %v7088_v33 = vld [vmem:[#allocation9 + $0x80] sm:$0xff]  ;;  %v7094_v5 = vld [vmem:[#allocation9 + $0x68] sm:$0xff] }
 0xc09   :  { %8048 = vst [vmem:[#allocation32_spill] sm:$0xff] %v7088_v33  ;;  %8050 = vst [vmem:[#allocation33_spill] sm:$0xff] %v7094_v5 }
 0xc0a   :  { %4745 = vrcp.f32 %v3168_v45  ;;  %v7106_v45 = vld [vmem:[#allocation9 + $0x48] sm:$0xff] }
 0xc0b   :  { %8054 = vst [vmem:[#allocation46_spill] sm:$0xff] %v7106_v45 }
 0xc13   :  { %v4742_v36 = vpop.eup %4741 }
 0xc14   :  { %v3172_v20 = vmul.f32 %v4742_v36, %v4738_v31  ;;  %v7091_v31 = vld [vmem:[#allocation9 + $0x90] sm:$0xff]  ;;  %v7097_v36 = vld [vmem:[#allocation9 + $0x78] sm:$0xff] }
 0xc15   :  { %v4744_v44 = vpop.eup %4743  ;;  %8049 = vst [vmem:[#allocation43_spill] sm:$0xff] %v7091_v31  ;;  %8051 = vst [vmem:[#allocation61_spill] sm:$0xff] %v7097_v36 }
 0xc16   :  { %v3171_v47 = vmul.f32 %v4744_v44, %v6863_v26  ;;  %v7004_v26 = vld [vmem:[#allocation9 + $0x160] sm:$0xff]  ;;  %v7103_v44 = vld [vmem:[#allocation9 + $0x70] sm:$0xff] }
 0xc17   :  { %v4746_v49 = vpop.eup %4745  ;;  %8053 = vst [vmem:[#allocation47_spill] sm:$0xff] %v7103_v44 }
 0xc18   :  { %v6981_v48 = vadd.f32 %v3172_v20, %v3171_v47  ;;  %v7100_v20 = vld [vmem:[#allocation9 + $0x60] sm:$0xff]  ;;  %v7109_v47 = vld [vmem:[#allocation9 + $0x58] sm:$0xff] }
 0xc19   :  { %8052 = vst [vmem:[#allocation62_spill] sm:$0xff] %v7100_v20  ;;  %8055 = vst [vmem:[#allocation63_spill] sm:$0xff] %v7109_v47 }
 0xc1a   :  { %4747 = vtanh.f32 %v6981_v48 }
 0xc27   :  { %v4748_v28 = vpop.eup %4747 }
 0xc28   :  { %v6984_v23 = vmul.f32 %v4748_v28, %v4746_v49  ;;  %v7112_v49 = vld [vmem:[#allocation9 + $0x40] sm:$0xff]  ;;  %v7115_v28 = vld [vmem:[#allocation9 + $0x50] sm:$0xff] }
 0xc29   :  { %8056 = vst [vmem:[#allocation64_spill] sm:$0xff] %v7112_v49  ;;  %8057 = vst [vmem:[#allocation49_spill] sm:$0xff] %v7115_v28 }
 0xc2a   :  { %8044 = vst [vmem:[#allocation23_spill] sm:$0xff] %v6984_v23  ;;  %3246 = vmatmul.mubr.f32.vlgmr.msra.gmra.mxu0 %v6984_v23  ;;  %3317 = vmatmul.mubr.f32.vlgmr.msra.gmra.mxu1 %v6984_v23  ;;  %v7118_v23 = vld [vmem:[#allocation9 + $0x28] sm:$0xff] }
 0xc2b   :  { %3357 = vmatpush1.msra.mxu0 %v6870_v34  ;;  %3428 = vmatpush1.msra.mxu1 %v6873_v15  ;;  %8058 = vst [vmem:[#allocation48_spill] sm:$0xff] %v7118_v23 }
 0xc2c   :  { %3358 = vmatprep.subr.mxu0 %v6876_v39  ;;  %3429 = vmatprep.subr.mxu1 %v6879_v56 }
 0xc2d   :  { %3359 = vmatpush1.msra.mxu0 %v6882_v30  ;;  %3430 = vmatpush1.msra.mxu1 %v6885_v63 }
 0xc2e   :  { %3360 = vmatprep.subr.mxu0 %v6888_v43  ;;  %3431 = vmatprep.subr.mxu1 %v6891_v61 }
 0xc2f   :  { %3361 = vmatpush1.msra.mxu0 %v6894_v22  ;;  %3432 = vmatpush1.msra.mxu1 %v6897_v62 }
 0xc30   :  { %3362 = vmatprep.subr.mxu0 %v6900_v1  ;;  %3433 = vmatprep.subr.mxu1 %v6903_v12 }
 0xc31   :  { %3363 = vmatpush1.msra.mxu0 %v6906_v8  ;;  %3434 = vmatpush1.msra.mxu1 %v6909_v40 }
 0xc32   :  { %3364 = vmatprep.subr.mxu0 %v6912_v27  ;;  %3435 = vmatprep.subr.mxu1 %v6915_v10 }
 0xc33   :  { %3365 = vmatpush1.msra.mxu0 %v7004_v26  ;;  %3436 = vmatpush1.msra.mxu1 %v7007_v50 }
 0xc34   :  { %3366 = vmatprep.subr.mxu0 %v7010_v52  ;;  %3437 = vmatprep.subr.mxu1 %v7013_v55 }
 0xc35   :  { %3367 = vmatpush1.msra.mxu0 %v7016_v58  ;;  %3438 = vmatpush1.msra.mxu1 %v7019_v57 }
 0xc36   :  { %3368 = vmatprep.subr.mxu0 %v7022_v7  ;;  %3439 = vmatprep.subr.mxu1 %v7025_v3 }
 0xc37   :  { %3369 = vmatpush1.msra.mxu0 %v7028_v11  ;;  %3440 = vmatpush1.msra.mxu1 %v7031_v32 }
 0xc38   :  { %3370 = vmatprep.subr.mxu0 %v7034_v29  ;;  %3441 = vmatprep.subr.mxu1 %v7037_v21 }
 0xc39   :  { %3371 = vmatpush1.msra.mxu0 %v7040_v37  ;;  %3442 = vmatpush1.msra.mxu1 %v7043_v25 }
 0xc3a   :  { %3372 = vmatprep.subr.mxu0 %v7046_v17  ;;  %3443 = vmatprep.subr.mxu1 %v7049_v19 }
 0xc3b   :  { %3373 = vmatpush1.msra.mxu0 %v7052_v41  ;;  %3444 = vmatpush1.msra.mxu1 %v7055_v42 }
 0xc3c   :  { %3374 = vmatprep.subr.mxu0 %v7058_v16  ;;  %3445 = vmatprep.subr.mxu1 %v7061_v18 }
 0xc3d   :  { %3375 = vmatpush1.msra.mxu0 %v7064_v24  ;;  %3446 = vmatpush1.msra.mxu1 %v7067_v13 }
 0xc3e   :  { %3376 = vmatprep.subr.mxu0 %v7070_v38  ;;  %3447 = vmatprep.subr.mxu1 %v7073_v35 }
 0xc3f   :  { %3377 = vmatpush1.msra.mxu0 %v7076_v9  ;;  %3448 = vmatpush1.msra.mxu1 %v7079_v0 }
 0xc40   :  { %3378 = vmatprep.subr.mxu0 %v7082_v46  ;;  %3449 = vmatprep.subr.mxu1 %v7085_v2  ;;  %v8069_v2 = vld [vmem:[#allocation39_spill] sm:$0xff] }
 0xc41   :  { %3379 = vmatpush1.msra.mxu0 %v7088_v33  ;;  %3450 = vmatpush1.msra.mxu1 %v7091_v31 }
 0xc42   :  { %3380 = vmatprep.subr.mxu0 %v7094_v5  ;;  %3451 = vmatprep.subr.mxu1 %v7097_v36 }
 0xc43   :  { %3381 = vmatpush1.msra.mxu0 %v7100_v20  ;;  %3452 = vmatpush1.msra.mxu1 %v7103_v44 }
 0xc44   :  { %3382 = vmatprep.subr.mxu0 %v7106_v45  ;;  %3453 = vmatprep.subr.mxu1 %v7109_v47  ;;  %v7124_v45 = vld [vmem:[#allocation9 + $0x20] sm:$0xff]  ;;  %v7127_v47 = vld [vmem:[#allocation9 + $0x30] sm:$0xff] }
 0xc45   :  { %3383 = vmatpush1.msra.mxu0 %v7112_v49  ;;  %3454 = vmatpush1.msra.mxu1 %v7115_v28  ;;  %8060 = vst [vmem:[#allocation66_spill] sm:$0xff] %v7124_v45  ;;  %8061 = vst [vmem:[#allocation51_spill] sm:$0xff] %v7127_v47  ;;  %v7130_v49 = vld [vmem:[#allocation9 + $0x8] sm:$0xff]  ;;  %v7133_v28 = vld [vmem:[#allocation9 + $0x18] sm:$0xff] }
 0xc46   :  { %3384 = vmatprep.subr.mxu0 %v7118_v23  ;;  %3455 = vmatprep.subr.mxu1 %v7121_v54  ;;  %8062 = vst [vmem:[#allocation50_spill] sm:$0xff] %v7130_v49  ;;  %8063 = vst [vmem:[#allocation41_spill] sm:$0xff] %v7133_v28  ;;  %v7136_v23 = vld [vmem:[#allocation9] sm:$0xff]  ;;  %v7140_v54 = vld [vmem:[#allocation9 + $0x10] sm:$0xff] }
 0xc47   :  { %3385 = vmatpush1.msra.mxu0 %v7124_v45  ;;  %3456 = vmatpush1.msra.mxu1 %v7127_v47  ;;  %8064 = vst [vmem:[#allocation31_spill] sm:$0xff] %v7136_v23  ;;  %8065 = vst [vmem:[#allocation17_spill] sm:$0xff] %v7140_v54  ;;  %v8067_v45 = vld [vmem:[#allocation34_spill] sm:$0xff] }
 0xc48   :  { %3386 = vmatprep.subr.mxu0 %v7130_v49  ;;  %3457 = vmatprep.subr.mxu1 %v7133_v28  ;;  %v8066_v49 = vld [vmem:[#allocation44_spill] sm:$0xff]  ;;  %v2308_v44 = vadd.f32 %v8067_v45, %v6676_v14 }
 0xc49   :  { %3387 = vmatpush1.msra.mxu0 %v7136_v23  ;;  %3420 = vmatprep.mubr.f32.mxu0 %v8035_v59  ;;  %v2306_v47 = vadd.f32 %v8066_v49, %v8039_v6  ;;  %v2419_v49 = vadd.f32 %v8069_v2, %v6693_v53  ;;  %v8073_v2 = vld [vmem:[#allocation42_spill] sm:$0xff] }
 0xc4a   :  { %3458 = vmatpush1.msra.mxu1 %v7140_v54  ;;  %3491 = vmatprep.mubr.f32.mxu1 %v8035_v59 }
 0xc4b   :  { %3531 = vmatprep.subr.mxu0 %v6966_v60  ;;  %3602 = vmatprep.subr.mxu1 %v6969_v4  ;;  %v8068_v60 = vld [vmem:[#allocation29_spill] sm:$0xff] }
 0xc4c   :  { %v2421_v33 = vadd.f32 %v8068_v60, %v6688_v51 }
 0xcea   :  { %v3247_v28 = vpop.f32.mrf.mxu0  ;;  %v3318_v31 = vpop.f32.mrf.mxu1 }
 0xceb   :  { %v3323_v23 = vadd.f32 %v3247_v28, %v2306_v47  ;;  %v3325_v6 = vadd.f32 %v3318_v31, %v2419_v49  ;;  %v8074_v31 = vld [vmem:[#allocation32_spill] sm:$0xff]  ;;  %v8075_v28 = vld [vmem:[#allocation43_spill] sm:$0xff]  ;;  %v8076_v49 = vld [vmem:[#allocation33_spill] sm:$0xff] }
 0xcec   :  { %v3249_v20 = vpop.f32.mrf.mxu0  ;;  %v3320_v59 = vpop.f32.mrf.mxu1 }
 0xced   :  { %v4450_v36 = vmul.f32 -1.442695, %v3323_v23  ;;  %v3324_v5 = vadd.f32 %v3249_v20, %v2308_v44  ;;  %v3326_v4 = vadd.f32 %v3320_v59, %v2421_v33 }
 0xcef   :  { %4749 = vpow2.f32 %v4450_v36  ;;  %v4451_v54 = vmul.f32 -1.442695, %v3324_v5  ;;  %v4452_v46 = vmul.f32 -1.442695, %v3326_v4 }
 0xcf1   :  { %4751 = vpow2.f32 %v4451_v54 }
 0xcf2   :  { %4753 = vtanh.f32 %v3325_v6 }
 0xcf3   :  { %4755 = vpow2.f32 %v4452_v46  ;;  %v8072_v46 = vld [vmem:[#allocation36_spill] sm:$0xff] }
 0xcfc   :  { %v4750_v0 = vpop.eup %4749 }
 0xcfd   :  { %v3330_v45 = vadd.f32 1.0, %v4750_v0 }
 0xcfe   :  { %v4752_v47 = vpop.eup %4751 }
 0xcff   :  { %4757 = vrcp.f32 %v3330_v45  ;;  %v3336_v23 = vadd.f32 1.0, %v4752_v47  ;;  %v4754_v5 = vpop.eup %4753  ;;  %v8077_v45 = vld [vmem:[#allocation61_spill] sm:$0xff]  ;;  %v8078_v47 = vld [vmem:[#allocation62_spill] sm:$0xff] }
 0xd00   :  { %v4756_v54 = vpop.eup %4755 }
 0xd01   :  { %4759 = vrcp.f32 %v3336_v23  ;;  %v3343_v60 = vadd.f32 1.0, %v4756_v54  ;;  %v8079_v23 = vld [vmem:[#allocation47_spill] sm:$0xff] }
 0xd02   :  { %v8081_v54 = vld [vmem:[#allocation63_spill] sm:$0xff] }
 0xd03   :  { %4761 = vrcp.f32 %v3343_v60  ;;  %v8085_v60 = vld [vmem:[#allocation65_spill] sm:$0xff] }
 0xd0c   :  { %v4758_v36 = vpop.eup %4757 }
 0xd0d   :  { %v3347_v20 = vmul.f32 %v4758_v36, %v4754_v5  ;;  %v8080_v5 = vld [vmem:[#allocation46_spill] sm:$0xff]  ;;  %v8082_v36 = vld [vmem:[#allocation64_spill] sm:$0xff] }
 0xd0e   :  { %v4760_v44 = vpop.eup %4759 }
 0xd0f   :  { %v3346_v59 = vmul.f32 %v4760_v44, %v6981_v48  ;;  %v8071_v48 = vld [vmem:[#allocation26_spill] sm:$0xff]  ;;  %v8084_v44 = vld [vmem:[#allocation48_spill] sm:$0xff] }
 0xd10   :  { %v4762_v4 = vpop.eup %4761 }
 0xd11   :  { %v7155_v33 = vadd.f32 %v3347_v20, %v3346_v59  ;;  %v8083_v20 = vld [vmem:[#allocation49_spill] sm:$0xff]  ;;  %v8086_v59 = vld [vmem:[#allocation66_spill] sm:$0xff] }
 0xd13   :  { %4763 = vtanh.f32 %v7155_v33 }
 0xd20   :  { %v4764_v6 = vpop.eup %4763 }
 0xd21   :  { %v7158_v0 = vmul.f32 %v4764_v6, %v4762_v4  ;;  %v8087_v4 = vld [vmem:[#allocation51_spill] sm:$0xff]  ;;  %v8088_v6 = vld [vmem:[#allocation50_spill] sm:$0xff] }
 0xd23   :  { %8070 = vst [vmem:[#allocation56_spill] sm:$0xff] %v7158_v0  ;;  %3421 = vmatmul.mubr.f32.vlgmr.msra.gmra.mxu0 %v7158_v0  ;;  %3492 = vmatmul.mubr.f32.vlgmr.msra.gmra.mxu1 %v7158_v0  ;;  %v8089_v0 = vld [vmem:[#allocation41_spill] sm:$0xff] }
 0xd24   :  { %3532 = vmatpush1.msra.mxu0 %v6870_v34  ;;  %3603 = vmatpush1.msra.mxu1 %v6873_v15 }
 0xd25   :  { %3533 = vmatprep.subr.mxu0 %v6876_v39  ;;  %3604 = vmatprep.subr.mxu1 %v6879_v56 }
 0xd26   :  { %3534 = vmatpush1.msra.mxu0 %v6882_v30  ;;  %3605 = vmatpush1.msra.mxu1 %v6885_v63 }
 0xd27   :  { %3535 = vmatprep.subr.mxu0 %v6888_v43  ;;  %3606 = vmatprep.subr.mxu1 %v6891_v61 }
 0xd28   :  { %3536 = vmatpush1.msra.mxu0 %v6894_v22  ;;  %3607 = vmatpush1.msra.mxu1 %v6897_v62 }
 0xd29   :  { %3537 = vmatprep.subr.mxu0 %v6900_v1  ;;  %3608 = vmatprep.subr.mxu1 %v6903_v12 }
 0xd2a   :  { %3538 = vmatpush1.msra.mxu0 %v6906_v8  ;;  %3609 = vmatpush1.msra.mxu1 %v6909_v40 }
 0xd2b   :  { %3539 = vmatprep.subr.mxu0 %v6912_v27  ;;  %3610 = vmatprep.subr.mxu1 %v6915_v10 }
 0xd2c   :  { %3540 = vmatpush1.msra.mxu0 %v7004_v26  ;;  %3611 = vmatpush1.msra.mxu1 %v7007_v50 }
 0xd2d   :  { %3541 = vmatprep.subr.mxu0 %v7010_v52  ;;  %3612 = vmatprep.subr.mxu1 %v7013_v55 }
 0xd2e   :  { %3542 = vmatpush1.msra.mxu0 %v7016_v58  ;;  %3613 = vmatpush1.msra.mxu1 %v7019_v57 }
 0xd2f   :  { %3543 = vmatprep.subr.mxu0 %v7022_v7  ;;  %3614 = vmatprep.subr.mxu1 %v7025_v3 }
 0xd30   :  { %3544 = vmatpush1.msra.mxu0 %v7028_v11  ;;  %3615 = vmatpush1.msra.mxu1 %v7031_v32 }
 0xd31   :  { %3545 = vmatprep.subr.mxu0 %v7034_v29  ;;  %3616 = vmatprep.subr.mxu1 %v7037_v21 }
 0xd32   :  { %3546 = vmatpush1.msra.mxu0 %v7040_v37  ;;  %3617 = vmatpush1.msra.mxu1 %v7043_v25 }
 0xd33   :  { %3547 = vmatprep.subr.mxu0 %v7046_v17  ;;  %3618 = vmatprep.subr.mxu1 %v7049_v19 }
 0xd34   :  { %3548 = vmatpush1.msra.mxu0 %v7052_v41  ;;  %3619 = vmatpush1.msra.mxu1 %v7055_v42 }
 0xd35   :  { %3549 = vmatprep.subr.mxu0 %v7058_v16  ;;  %3620 = vmatprep.subr.mxu1 %v7061_v18 }
 0xd36   :  { %3550 = vmatpush1.msra.mxu0 %v7064_v24  ;;  %3621 = vmatpush1.msra.mxu1 %v7067_v13 }
 0xd37   :  { %3551 = vmatprep.subr.mxu0 %v7070_v38  ;;  %3622 = vmatprep.subr.mxu1 %v7073_v35 }
 0xd38   :  { %3552 = vmatpush1.msra.mxu0 %v7076_v9  ;;  %3623 = vmatpush1.msra.mxu1 %v8071_v48 }
 0xd39   :  { %3553 = vmatprep.subr.mxu0 %v8072_v46  ;;  %3624 = vmatprep.subr.mxu1 %v8073_v2  ;;  %v8099_v2 = vld [vmem:[#allocation40_spill] sm:$0xff] }
 0xd3a   :  { %3554 = vmatpush1.msra.mxu0 %v8074_v31  ;;  %3625 = vmatpush1.msra.mxu1 %v8075_v28 }
 0xd3b   :  { %3555 = vmatprep.subr.mxu0 %v8076_v49  ;;  %3626 = vmatprep.subr.mxu1 %v8077_v45 }
 0xd3c   :  { %3556 = vmatpush1.msra.mxu0 %v8078_v47  ;;  %3627 = vmatpush1.msra.mxu1 %v8079_v23  ;;  %v8090_v23 = vld [vmem:[#allocation31_spill] sm:$0xff] }
 0xd3d   :  { %3557 = vmatprep.subr.mxu0 %v8080_v5  ;;  %3628 = vmatprep.subr.mxu1 %v8081_v54  ;;  %v8091_v5 = vmov 0.0   ;;  %v8092_v54 = vld [vmem:[#allocation17_spill] sm:$0xff] }
 0xd3e   :  { %3558 = vmatpush1.msra.mxu0 %v8082_v36  ;;  %3629 = vmatpush1.msra.mxu1 %v8083_v20  ;;  %v8093_v20 = vld [vmem:[#allocation15_spill] sm:$0xff] }
 0xd3f   :  { %3559 = vmatprep.subr.mxu0 %v8084_v44  ;;  %3630 = vmatprep.subr.mxu1 %v8085_v60  ;;  %v8094_v44 = vld [vmem:[#allocation52_spill] sm:$0xff] }
 0xd40   :  { %3560 = vmatpush1.msra.mxu0 %v8086_v59  ;;  %3631 = vmatpush1.msra.mxu1 %v8087_v4  ;;  %v8095_v60 = vld [vmem:[#allocation20_spill] sm:$0xff] }
 0xd41   :  { %3561 = vmatprep.subr.mxu0 %v8088_v6  ;;  %3632 = vmatprep.subr.mxu1 %v8089_v0  ;;  %v8096_v59 = vld [vmem:[#allocation24_spill] sm:$0xff]  ;;  %v8097_v6 = vld [vmem:[#allocation69_spill] sm:$0xff] }
 0xd42   :  { %3562 = vmatpush1.msra.mxu0 %v8090_v23  ;;  %3595 = vmatprep.mubr.f32.mxu0 %v8091_v5  ;;  %v2312_v36 = vadd.f32 %v8096_v59, %v8095_v60  ;;  %v2314_v47 = vadd.f32 %v8097_v6, %v6676_v14  ;;  %v2425_v59 = vadd.f32 %v8099_v2, %v6693_v53 }
 0xd43   :  { %3633 = vmatpush1.msra.mxu1 %v8092_v54  ;;  %3666 = vmatprep.mubr.f32.mxu1 %v8091_v5 }
 0xd44   :  { %3706 = vmatprep.subr.mxu0 %v8093_v20  ;;  %3777 = vmatprep.subr.mxu1 %v8094_v44  ;;  %v8098_v20 = vld [vmem:[#allocation70_spill] sm:$0xff] }
 0xd45   :  { %v2427_v31 = vadd.f32 %v8098_v20, %v6688_v51 }
 0xde3   :  { %v3422_v4 = vpop.f32.mrf.mxu0  ;;  %v3493_v28 = vpop.f32.mrf.mxu1 }
 0xde4   :  { %v3498_v0 = vadd.f32 %v3422_v4, %v2312_v36  ;;  %v3500_v60 = vadd.f32 %v3493_v28, %v2425_v59 }
 0xde5   :  { %v3424_v45 = vpop.f32.mrf.mxu0  ;;  %v3495_v5 = vpop.f32.mrf.mxu1 }
 0xde6   :  { %v4453_v23 = vmul.f32 -1.442695, %v3498_v0  ;;  %v3499_v49 = vadd.f32 %v3424_v45, %v2314_v47  ;;  %v3501_v44 = vadd.f32 %v3495_v5, %v2427_v31 }
 0xde8   :  { %4765 = vpow2.f32 %v4453_v23  ;;  %v4454_v54 = vmul.f32 -1.442695, %v3499_v49  ;;  %v4455_v46 = vmul.f32 -1.442695, %v3501_v44 }
 0xdea   :  { %4767 = vpow2.f32 %v4454_v54 }
 0xdeb   :  { %4769 = vtanh.f32 %v3500_v60 }
 0xdec   :  { %4771 = vpow2.f32 %v4455_v46 }
 0xdf5   :  { %v4766_v48 = vpop.eup %4765 }
 0xdf6   :  { %v3505_v6 = vadd.f32 1.0, %v4766_v48 }
 0xdf7   :  { %v4768_v36 = vpop.eup %4767 }
 0xdf8   :  { %4773 = vrcp.f32 %v3505_v6  ;;  %v3511_v0 = vadd.f32 1.0, %v4768_v36  ;;  %v4770_v49 = vpop.eup %4769 }
 0xdf9   :  { %v4772_v45 = vpop.eup %4771 }
 0xdfa   :  { %4775 = vrcp.f32 %v3511_v0  ;;  %v3518_v4 = vadd.f32 1.0, %v4772_v45 }
 0xdfc   :  { %4777 = vrcp.f32 %v3518_v4 }
 0xe05   :  { %v4774_v47 = vpop.eup %4773 }
 0xe06   :  { %v3522_v23 = vmul.f32 %v4774_v47, %v4770_v49 }
 0xe07   :  { %v4776_v54 = vpop.eup %4775 }
 0xe08   :  { %v3521_v31 = vmul.f32 %v4776_v54, %v7155_v33 }
 0xe09   :  { %v4778_v48 = vpop.eup %4777 }
 0xe0a   :  { %v7237_v5 = vadd.f32 %v3522_v23, %v3521_v31 }
 0xe0c   :  { %4779 = vtanh.f32 %v7237_v5 }
 0xe19   :  { %v4780_v2 = vpop.eup %4779 }
 0xe1a   :  { %v7240_v28 = vmul.f32 %v4780_v2, %v4778_v48  ;;  %v3903_v2 = vld [vmem:[#allocation11 + $0x70] sm:$0xff] }
 0xe1c   :  { %3596 = vmatmul.mubr.f32.vlgmr.msra.gmra.mxu0 %v7240_v28  ;;  %3667 = vmatmul.mubr.f32.vlgmr.msra.gmra.mxu1 %v7240_v28 }
 0xe1d   :  { %3707 = vmatpush1.msra.mxu0 %v6870_v34  ;;  %3778 = vmatpush1.msra.mxu1 %v6873_v15  ;;  %v8100_v34 = vld [vmem:[#allocation26_spill] sm:$0xff]  ;;  %v8101_v15 = vld [vmem:[#allocation36_spill] sm:$0xff] }
 0xe1e   :  { %3708 = vmatprep.subr.mxu0 %v6876_v39  ;;  %3779 = vmatprep.subr.mxu1 %v6879_v56  ;;  %v8102_v39 = vld [vmem:[#allocation42_spill] sm:$0xff]  ;;  %v8103_v56 = vld [vmem:[#allocation32_spill] sm:$0xff] }
 0xe1f   :  { %3709 = vmatpush1.msra.mxu0 %v6882_v30  ;;  %3780 = vmatpush1.msra.mxu1 %v6885_v63  ;;  %v8104_v30 = vld [vmem:[#allocation43_spill] sm:$0xff]  ;;  %v8105_v63 = vld [vmem:[#allocation33_spill] sm:$0xff] }
 0xe20   :  { %3710 = vmatprep.subr.mxu0 %v6888_v43  ;;  %3781 = vmatprep.subr.mxu1 %v6891_v61  ;;  %v8106_v43 = vld [vmem:[#allocation61_spill] sm:$0xff]  ;;  %v8107_v61 = vld [vmem:[#allocation62_spill] sm:$0xff] }
 0xe21   :  { %3711 = vmatpush1.msra.mxu0 %v6894_v22  ;;  %3782 = vmatpush1.msra.mxu1 %v6897_v62  ;;  %v8108_v22 = vld [vmem:[#allocation47_spill] sm:$0xff]  ;;  %v8109_v62 = vld [vmem:[#allocation46_spill] sm:$0xff] }
 0xe22   :  { %3712 = vmatprep.subr.mxu0 %v6900_v1  ;;  %3783 = vmatprep.subr.mxu1 %v6903_v12  ;;  %v8110_v1 = vld [vmem:[#allocation63_spill] sm:$0xff]  ;;  %v8111_v12 = vld [vmem:[#allocation64_spill] sm:$0xff] }
 0xe23   :  { %3713 = vmatpush1.msra.mxu0 %v6906_v8  ;;  %3784 = vmatpush1.msra.mxu1 %v6909_v40  ;;  %v8112_v8 = vld [vmem:[#allocation49_spill] sm:$0xff]  ;;  %v8113_v40 = vld [vmem:[#allocation48_spill] sm:$0xff] }
 0xe24   :  { %3714 = vmatprep.subr.mxu0 %v6912_v27  ;;  %3785 = vmatprep.subr.mxu1 %v6915_v10  ;;  %v8114_v27 = vld [vmem:[#allocation65_spill] sm:$0xff]  ;;  %v8115_v10 = vld [vmem:[#allocation66_spill] sm:$0xff] }
 0xe25   :  { %3715 = vmatpush1.msra.mxu0 %v7004_v26  ;;  %3786 = vmatpush1.msra.mxu1 %v7007_v50  ;;  %v8116_v26 = vld [vmem:[#allocation51_spill] sm:$0xff]  ;;  %v8117_v50 = vld [vmem:[#allocation50_spill] sm:$0xff] }
 0xe26   :  { %3716 = vmatprep.subr.mxu0 %v7010_v52  ;;  %3787 = vmatprep.subr.mxu1 %v7013_v55  ;;  %v8118_v52 = vld [vmem:[#allocation41_spill] sm:$0xff]  ;;  %v8119_v55 = vld [vmem:[#allocation31_spill] sm:$0xff] }
 0xe27   :  { %3717 = vmatpush1.msra.mxu0 %v7016_v58  ;;  %3788 = vmatpush1.msra.mxu1 %v7019_v57  ;;  %v8120_v58 = vmov 0.0   ;;  %v8121_v57 = vld [vmem:[#allocation17_spill] sm:$0xff] }
 0xe28   :  { %3718 = vmatprep.subr.mxu0 %v7022_v7  ;;  %3789 = vmatprep.subr.mxu1 %v7025_v3  ;;  %v3904_v7 = vld [vmem:[#allocation11 + $0x78] sm:$0xff]  ;;  %v8122_v3 = vld [vmem:[#allocation20_spill] sm:$0xff] }
 0xe29   :  { %3719 = vmatpush1.msra.mxu0 %v7028_v11  ;;  %3790 = vmatpush1.msra.mxu1 %v7031_v32  ;;  %v8123_v11 = vld [vmem:[#allocation55_spill] sm:$0xff] }
 0xe2a   :  { %3720 = vmatprep.subr.mxu0 %v7034_v29  ;;  %3791 = vmatprep.subr.mxu1 %v7037_v21  ;;  %v2318_v32 = vadd.f32 %v8123_v11, %v8122_v3  ;;  %v8124_v21 = vld [vmem:[#allocation72_spill] sm:$0xff] }
 0xe2b   :  { %3721 = vmatpush1.msra.mxu0 %v7040_v37  ;;  %3792 = vmatpush1.msra.mxu1 %v7043_v25  ;;  %v2320_v37 = vadd.f32 %v8124_v21, %v6676_v14 }
 0xe2c   :  { %3722 = vmatprep.subr.mxu0 %v7046_v17  ;;  %3793 = vmatprep.subr.mxu1 %v7049_v19 }
 0xe2d   :  { %3723 = vmatpush1.msra.mxu0 %v7052_v41  ;;  %3794 = vmatpush1.msra.mxu1 %v7055_v42 }
 0xe2e   :  { %3724 = vmatprep.subr.mxu0 %v7058_v16  ;;  %3795 = vmatprep.subr.mxu1 %v7061_v18 }
 0xe2f   :  { %3725 = vmatpush1.msra.mxu0 %v7064_v24  ;;  %3796 = vmatpush1.msra.mxu1 %v7067_v13  ;;  %v8125_v24 = vld [vmem:[#allocation22_spill] sm:$0xff] }
 0xe30   :  { %3726 = vmatprep.subr.mxu0 %v7070_v38  ;;  %3797 = vmatprep.subr.mxu1 %v7073_v35  ;;  %v2433_v13 = vadd.f32 %v8125_v24, %v6688_v51  ;;  %v8126_v35 = vld [vmem:[#allocation54_spill] sm:$0xff] }
 0xe31   :  { %3727 = vmatpush1.msra.mxu0 %v7076_v9  ;;  %3798 = vmatpush1.msra.mxu1 %v8100_v34  ;;  %v2431_v9 = vadd.f32 %v8126_v35, %v6693_v53  ;;  %v8127_v34 = vld [vmem:[#allocation71_spill] sm:$0xff] }
 0xe32   :  { %3728 = vmatprep.subr.mxu0 %v8101_v15  ;;  %3799 = vmatprep.subr.mxu1 %v8102_v39  ;;  %v3902_v15 = vld [vmem:[#allocation11 + $0x68] sm:$0xff]  ;;  %v3901_v39 = vld [vmem:[#allocation11 + $0x60] sm:$0xff] }
 0xe33   :  { %3729 = vmatpush1.msra.mxu0 %v8103_v56  ;;  %3800 = vmatpush1.msra.mxu1 %v8104_v30  ;;  %v3899_v56 = vld [vmem:[#allocation11 + $0x50] sm:$0xff]  ;;  %v3898_v30 = vld [vmem:[#allocation11 + $0x48] sm:$0xff]  ;;  %v7337_v35 = vld [vmem:[%s7472_s8] ss:$0 sm:$0xff] }
 0xe34   :  { %3730 = vmatprep.subr.mxu0 %v8105_v63  ;;  %3801 = vmatprep.subr.mxu1 %v8106_v43  ;;  %v3897_v63 = vld [vmem:[#allocation11 + $0x40] sm:$0xff]  ;;  %v3896_v43 = vld [vmem:[#allocation11 + $0x38] sm:$0xff] }
 0xe35   :  { %3731 = vmatpush1.msra.mxu0 %v8107_v61  ;;  %3802 = vmatpush1.msra.mxu1 %v8108_v22  ;;  %v3895_v61 = vld [vmem:[#allocation11 + $0x30] sm:$0xff]  ;;  %v3894_v22 = vld [vmem:[#allocation11 + $0x28] sm:$0xff] }
 0xe36   :  { %3732 = vmatprep.subr.mxu0 %v8109_v62  ;;  %3803 = vmatprep.subr.mxu1 %v8110_v1  ;;  %v3893_v62 = vld [vmem:[#allocation11 + $0x20] sm:$0xff]  ;;  %v3892_v1 = vld [vmem:[#allocation11 + $0x18] sm:$0xff] }
 0xe37   :  { %3733 = vmatpush1.msra.mxu0 %v8111_v12  ;;  %3804 = vmatpush1.msra.mxu1 %v8112_v8  ;;  %v3891_v12 = vld [vmem:[#allocation11 + $0x10] sm:$0xff]  ;;  %v3890_v8 = vld [vmem:[#allocation11 + $0x8] sm:$0xff] }
 0xe38   :  { %3734 = vmatprep.subr.mxu0 %v8113_v40  ;;  %3805 = vmatprep.subr.mxu1 %v8114_v27  ;;  %v3889_v40 = vld [vmem:[#allocation11] sm:$0xff] }
 0xe39   :  { %3735 = vmatpush1.msra.mxu0 %v8115_v10  ;;  %3806 = vmatpush1.msra.mxu1 %v8116_v26  ;;  %v8128_v27 = vld [vmem:[#allocation59_spill] sm:$0xff]  ;;  %v8129_v10 = vld [vmem:[#allocation57_spill] sm:$0xff] }
 0xe3a   :  { %3736 = vmatprep.subr.mxu0 %v8117_v50  ;;  %3807 = vmatprep.subr.mxu1 %v8118_v52  ;;  %v8130_v26 = vld [vmem:[#allocation23_spill] sm:$0xff]  ;;  %v8131_v50 = vld [vmem:[#allocation56_spill] sm:$0xff]  ;;  %v8132_v52 = vld [vmem:[#allocation25_spill] sm:$0xff] }
 0xe3b   :  { %3737 = vmatpush1.msra.mxu0 %v8119_v55  ;;  %3770 = vmatprep.mubr.f32.mxu0 %v8120_v58  ;;  %v2324_v55 = vadd.f32 %v8132_v52, %v8122_v3 }
 0xe3c   :  { %3808 = vmatpush1.msra.mxu1 %v8121_v57  ;;  %3841 = vmatprep.mubr.f32.mxu1 %v8120_v58  ;;  %v8133_v57 = vld [vmem:[#allocation58_spill] sm:$0xff] }
 0xe3d   :  { %4489 = vmatprep.subr.mxu0 %v3904_v7 }
 0xedc   :  { %v3597_v29 = vpop.f32.mrf.mxu0  ;;  %v3668_v42 = vpop.f32.mrf.mxu1 }
 0xedd   :  { %v3673_v25 = vadd.f32 %v3597_v29, %v2318_v32  ;;  %v3675_v33 = vadd.f32 %v3668_v42, %v2431_v9  ;;  %v8135_v42 = vld [vmem:[#allocation30_spill] sm:$0xff] }
 0xede   :  { %v3599_v17 = vpop.f32.mrf.mxu0  ;;  %v3670_v18 = vpop.f32.mrf.mxu1  ;;  %v2437_v3 = vadd.f32 %v8135_v42, %v6693_v53 }
 0xedf   :  { %v4456_v19 = vmul.f32 -1.442695, %v3673_v25  ;;  %v3674_v41 = vadd.f32 %v3599_v17, %v2320_v37  ;;  %v3676_v38 = vadd.f32 %v3670_v18, %v2433_v13 }
 0xee1   :  { %4781 = vpow2.f32 %v4456_v19  ;;  %v4457_v16 = vmul.f32 -1.442695, %v3674_v41  ;;  %v4458_v46 = vmul.f32 -1.442695, %v3676_v38  ;;  %v8134_v19 = vld [vmem:[#allocation19_spill] sm:$0xff] }
 0xee3   :  { %4783 = vpow2.f32 %v4457_v16 }
 0xee4   :  { %4785 = vtanh.f32 %v3675_v33 }
 0xee5   :  { %4787 = vpow2.f32 %v4458_v46 }
 0xeee   :  { %v4782_v60 = vpop.eup %4781 }
 0xeef   :  { %v3680_v20 = vadd.f32 1.0, %v4782_v60 }
 0xef0   :  { %v4784_v44 = vpop.eup %4783 }
 0xef1   :  { %4789 = vrcp.f32 %v3680_v20  ;;  %v3686_v59 = vadd.f32 1.0, %v4784_v44  ;;  %v4786_v6 = vpop.eup %4785 }
 0xef2   :  { %v4788_v36 = vpop.eup %4787 }
 0xef3   :  { %4791 = vrcp.f32 %v3686_v59  ;;  %v3693_v47 = vadd.f32 1.0, %v4788_v36 }
 0xef5   :  { %4793 = vrcp.f32 %v3693_v47 }
 0xefe   :  { %v4790_v0 = vpop.eup %4789 }
 0xeff   :  { %v3697_v49 = vmul.f32 %v4790_v0, %v4786_v6 }
 0xf00   :  { %v4792_v45 = vpop.eup %4791 }
 0xf01   :  { %v3696_v23 = vmul.f32 %v4792_v45, %v7237_v5  ;;  %v3900_v5 = vld [vmem:[#allocation11 + $0x58] sm:$0xff] }
 0xf02   :  { %v4794_v4 = vpop.eup %4793 }
 0xf03   :  { %v7317_v54 = vadd.f32 %v3697_v49, %v3696_v23 }
 0xf05   :  { %4795 = vtanh.f32 %v7317_v54 }
 0xf12   :  { %v4796_v31 = vpop.eup %4795 }
 0xf13   :  { %v3700_v48 = vmul.f32 %v4796_v31, %v4794_v4 }
 0xf15   :  { %3771 = vmatmul.mubr.f32.vlgmr.msra.gmra.mxu0 %v3700_v48  ;;  %3842 = vmatmul.mubr.f32.vlgmr.msra.gmra.mxu1 %v3700_v48 }
 0xf16   :  { %4490 = vmatpush3.msra.mxu0 %v3904_v7  ;;  %4521 = vmatprep.mubr.f32.mxu0 %v8127_v34  ;;  %v2326_v7 = vadd.f32 %v8133_v57, %v6676_v14 }
 0xf17   :  { %4491 = vmatprep.subr.mxu0 %v3903_v2 }
 0xf18   :  { %4492 = vmatpush3.msra.mxu0 %v3903_v2 }
 0xf19   :  { %4493 = vmatprep.subr.mxu0 %v3902_v15 }
 0xf1a   :  { %4494 = vmatpush3.msra.mxu0 %v3902_v15 }
 0xf1b   :  { %4495 = vmatprep.subr.mxu0 %v3901_v39 }
 0xf1c   :  { %4496 = vmatpush3.msra.mxu0 %v3901_v39 }
 0xf1d   :  { %4497 = vmatprep.subr.mxu0 %v3900_v5 }
 0xf1e   :  { %4498 = vmatpush3.msra.mxu0 %v3900_v5 }
 0xf1f   :  { %4499 = vmatprep.subr.mxu0 %v3899_v56 }
 0xf20   :  { %4500 = vmatpush3.msra.mxu0 %v3899_v56 }
 0xf21   :  { %4501 = vmatprep.subr.mxu0 %v3898_v30 }
 0xf22   :  { %4502 = vmatpush3.msra.mxu0 %v3898_v30 }
 0xf23   :  { %4503 = vmatprep.subr.mxu0 %v3897_v63 }
 0xf24   :  { %4504 = vmatpush3.msra.mxu0 %v3897_v63 }
 0xf25   :  { %4505 = vmatprep.subr.mxu0 %v3896_v43 }
 0xf26   :  { %4506 = vmatpush3.msra.mxu0 %v3896_v43 }
 0xf27   :  { %4507 = vmatprep.subr.mxu0 %v3895_v61 }
 0xf28   :  { %4508 = vmatpush3.msra.mxu0 %v3895_v61 }
 0xf29   :  { %4509 = vmatprep.subr.mxu0 %v3894_v22 }
 0xf2a   :  { %4510 = vmatpush3.msra.mxu0 %v3894_v22 }
 0xf2b   :  { %4511 = vmatprep.subr.mxu0 %v3893_v62 }
 0xf2c   :  { %4512 = vmatpush3.msra.mxu0 %v3893_v62 }
 0xf2d   :  { %4513 = vmatprep.subr.mxu0 %v3892_v1 }
 0xf2e   :  { %4514 = vmatpush3.msra.mxu0 %v3892_v1 }
 0xf2f   :  { %4515 = vmatprep.subr.mxu0 %v3891_v12 }
 0xf30   :  { %4516 = vmatpush3.msra.mxu0 %v3891_v12 }
 0xf31   :  { %4517 = vmatprep.subr.mxu0 %v3890_v8 }
 0xf32   :  { %4518 = vmatpush3.msra.mxu0 %v3890_v8 }
 0xf33   :  { %4519 = vmatprep.subr.mxu0 %v3889_v40 }
 0xf34   :  { %4520 = vmatpush3.msra.mxu0 %v3889_v40 }
 0xf35   :  { %4522 = vmatmul.mubr.f32.vlgmr.msra.gmra.mxu0 %v8128_v27 }
 0xf36   :  { %4524 = vmatprep.mubr.f32.mxu0 %v8129_v10 }
 0xf39   :  { %4525 = vmatmul.mubr.f32.gmra.mxu0 %v8130_v26 }
 0xf3a   :  { %4527 = vmatprep.mubr.f32.mxu0 %v8131_v50 }
 0xf3d   :  { %4528 = vmatmul.mubr.f32.gmra.mxu0 %v7240_v28  ;;  %v2439_v28 = vadd.f32 %v8134_v19, %v6688_v51 }
 0xf3e   :  { %4530 = vmatprep.mubr.f32.mxu0 %v3700_v48 }
 0xfd5   :  { %v3772_v58 = vpop.f32.mrf.mxu0  ;;  %v3843_v37 = vpop.f32.mrf.mxu1 }
 0xfd6   :  { %v3848_v11 = vadd.f32 %v3772_v58, %v2324_v55  ;;  %v3850_v16 = vadd.f32 %v3843_v37, %v2437_v3 }
 0xfd7   :  { %v3774_v32 = vpop.f32.mrf.mxu0  ;;  %v3845_v17 = vpop.f32.mrf.mxu1 }
 0xfd8   :  { %v4459_v29 = vmul.f32 -1.442695, %v3848_v11  ;;  %v3849_v21 = vadd.f32 %v3774_v32, %v2326_v7  ;;  %v3851_v41 = vadd.f32 %v3845_v17, %v2439_v28 }
 0xfda   :  { %4797 = vpow2.f32 %v4459_v29  ;;  %v4460_v25 = vmul.f32 -1.442695, %v3849_v21  ;;  %v4461_v18 = vmul.f32 -1.442695, %v3851_v41  ;;  %v8136_v29 = vld [vmem:[#allocation16_spill] sm:$0xff] }
 0xfdc   :  { %4799 = vpow2.f32 %v4460_v25 }
 0xfdd   :  { %4801 = vtanh.f32 %v3850_v16 }
 0xfde   :  { %4803 = vpow2.f32 %v4461_v18 }
 0xfe7   :  { %v4798_v24 = vpop.eup %4797 }
 0xfe8   :  { %v3855_v14 = vadd.f32 1.0, %v4798_v24 }
 0xfe9   :  { %v4800_v13 = vpop.eup %4799 }
 0xfea   :  { %4805 = vrcp.f32 %v3855_v14  ;;  %v3861_v38 = vadd.f32 1.0, %v4800_v13  ;;  %v4802_v51 = vpop.eup %4801 }
 0xfeb   :  { %v4804_v33 = vpop.eup %4803 }
 0xfec   :  { %4807 = vrcp.f32 %v3861_v38  ;;  %v3868_v36 = vadd.f32 1.0, %v4804_v33 }
 0xfee   :  { %4809 = vrcp.f32 %v3868_v36 }
 0xff5   :  { %v4523_v9 = vpop.f32.mrf.mxu0 }
 0xff6   :  { %v7340_v53 = vadd.f32 %v4523_v9, %v7337_v35 }
 0xff7   :  { %v4806_v46 = vpop.eup %4805  ;;  %v3978_v60 = vpop.f32.mrf.mxu0 }
 0xff8   :  { %v3872_v20 = vmul.f32 %v4806_v46, %v4802_v51  ;;  %4019 = vmax.xlane.f32.xlu0 %v7340_v53  ;;  %v3979_v0 = vadd.f32 %v7337_v35, %v3978_v60 }
 0xff9   :  { %v4808_v44 = vpop.eup %4807  ;;  %v4526_v59 = vpop.f32.mrf.mxu0 }
 0xffa   :  { %v3871_v6 = vmul.f32 %v4808_v44, %v7317_v54  ;;  %v7346_v49 = vadd.f32 %v4526_v59, %v7337_v35 }
 0xffb   :  { %v3988_v45 = vpop.f32.mrf.mxu0  ;;  %v4810_v2 = vpop.eup %4809 }
 0xffc   :  { %4023 = vmax.xlane.f32.xlu1 %v7346_v49  ;;  %4017 = vmax.xlane.f32.xlu0 %v3979_v0  ;;  %v3873_v23 = vadd.f32 %v3872_v20, %v3871_v6  ;;  %v3989_v4 = vadd.f32 %v7337_v35, %v3988_v45  ;;  %v4105_v58 = vcombine.low %v7340_v53, %v7346_v49  ;;  %v8137_v6 = vld [vmem:[#allocation18_spill] sm:$0xff] }
 0xffd   :  { %v4529_v47 = vpop.f32.mrf.mxu0  ;;  %v4106_v32 = vcombine.high %v7340_v53, %v7346_v49 }
 0xffe   :  { %4811 = vtanh.f32 %v3873_v23  ;;  %4463 = vst [vmem:[%s7478_s14 + $0x8] sm:$0xff] %v3873_v23  ;;  %v4004_v48 = vadd.f32 %v4529_v47, %v7337_v35  ;;  %v4089_v52 = vcombine.low %v3979_v0, %v3989_v4  ;;  %v4090_v57 = vcombine.high %v3979_v0, %v3989_v4 }
 0xfff   :  { %v3998_v31 = vpop.f32.mrf.mxu0  ;;  %v4113_v28 = vrot.slane %v4105_v58, %v8136_v29  ;;  %v4120_v18 = vrot.slane %v4106_v32, %v8136_v29 }
0x1000   :  { %v3999_v54 = vadd.f32 %v7337_v35, %v3998_v31  ;;  %4021 = vmax.xlane.f32.xlu1 %v3989_v4  ;;  %v4097_v21 = vrot.slane %v4089_v52, %v8136_v29  ;;  %v4104_v41 = vrot.slane %v4090_v57, %v8136_v29 }
0x1002   :  { %4025 = vmax.xlane.f32.xlu0 %v3999_v54  ;;  %v4153_v24 = vcombine.low %v4097_v21, %v4113_v28  ;;  %v4154_v14 = vcombine.high %v4097_v21, %v4113_v28  ;;  %v4169_v33 = vcombine.low %v4104_v41, %v4120_v18 }
0x1004   :  { %4027 = vmax.xlane.f32.xlu1 %v4004_v48  ;;  %v4161_v36 = vrot.slane %v4153_v24, %v8137_v6  ;;  %v4177_v31 = vrot.slane %v4169_v33, %v8137_v6 }
0x100b   :  { %v4812_v34 = vpop.eup %4811 }
0x100c   :  { %v3875_v15 = vmul.f32 %v4812_v34, %v4810_v2 }
0x100e   :  { %4462 = vst [vmem:[%s7477_s13 + $0x8] sm:$0xff] %v3875_v15  ;;  %4531 = vmatmul.mubr.f32.gmra.mxu0 %v3875_v15 }
0x1081   :  { %v4020_v39 = vpop.xlane.xlu0 %4019 }
0x1082   :  { %v4034_v63 = vsub.f32 %v7340_v53, %v4020_v39  ;;  %v4170_v53 = vcombine.high %v4104_v41, %v4120_v18 }
0x1084   :  { %v4043_v61 = vmul.f32 1.442695, %v4034_v63 }
0x1085   :  { %v4024_v5 = vpop.xlane.xlu1 %4023  ;;  %v4018_v56 = vpop.xlane.xlu0 %4017 }
0x1086   :  { %v4033_v43 = vsub.f32 %v3979_v0, %v4018_v56  ;;  %v4036_v22 = vsub.f32 %v7346_v49, %v4024_v5  ;;  %4813 = vpow2.f32 %v4043_v61  ;;  %v4168_v0 = vrot.slane %v4154_v14, %v8137_v6 }
0x1088   :  { %v4041_v1 = vmul.f32 1.442695, %v4033_v43  ;;  %v4047_v40 = vmul.f32 1.442695, %v4036_v22 }
0x1089   :  { %v4022_v30 = vpop.xlane.xlu1 %4021 }
0x108a   :  { %v4035_v12 = vsub.f32 %v3989_v4, %v4022_v30  ;;  %4815 = vpow2.f32 %v4041_v1 }
0x108b   :  { %v4026_v8 = vpop.xlane.xlu0 %4025  ;;  %4817 = vpow2.f32 %v4047_v40 }
0x108c   :  { %v4045_v10 = vmul.f32 1.442695, %v4035_v12  ;;  %v4037_v26 = vsub.f32 %v3999_v54, %v4026_v8 }
0x108d   :  { %v4028_v62 = vpop.xlane.xlu1 %4027 }
0x108e   :  { %v4038_v27 = vsub.f32 %v4004_v48, %v4028_v62  ;;  %4819 = vpow2.f32 %v4045_v10  ;;  %v4049_v55 = vmul.f32 1.442695, %v4037_v26 }
0x1090   :  { %v4051_v50 = vmul.f32 1.442695, %v4038_v27 }
0x1092   :  { %4821 = vpow2.f32 %v4051_v50 }
0x1093   :  { %4823 = vpow2.f32 %v4049_v55  ;;  %v7374_v16 = vpop.eup %4813 }
0x1097   :  { %v7382_v9 = vpop.eup %4815 }
0x1098   :  { %v7385_v59 = vpop.eup %4817 }
0x109b   :  { %v4820_v4 = vpop.eup %4819 }
0x109f   :  { %v4822_v39 = vpop.eup %4821 }
0x10a0   :  { %v4824_v43 = vpop.eup %4823 }
0x10ce   :  { %v4532_v7 = vpop.f32.mrf.mxu0 }
0x10cf   :  { %v7363_v11 = vadd.f32 %v4532_v7, %v7337_v35 }
0x10d0   :  { %v4008_v37 = vpop.f32.mrf.mxu0 }
0x10d1   :  { %v4137_v25 = vcombine.low %v4004_v48, %v7363_v11  ;;  %v4138_v17 = vcombine.high %v4004_v48, %v7363_v11  ;;  %v4009_v19 = vadd.f32 %v7337_v35, %v4008_v37  ;;  %4031 = vmax.xlane.f32.xlu1 %v7363_v11 }
0x10d3   :  { %v4121_v42 = vcombine.low %v3999_v54, %v4009_v19  ;;  %v4122_v3 = vcombine.high %v3999_v54, %v4009_v19  ;;  %4029 = vmax.xlane.f32.xlu0 %v4009_v19  ;;  %v4145_v13 = vrot.slane %v4137_v25, %v8136_v29  ;;  %v4152_v38 = vrot.slane %v4138_v17, %v8136_v29 }
0x10d4   :  { %v4184_v54 = vrot.slane %v4170_v53, %v8137_v6 }
0x10d5   :  { %v4129_v35 = vrot.slane %v4121_v42, %v8136_v29  ;;  %v4136_v51 = vrot.slane %v4122_v3, %v8136_v29  ;;  %4059 = vadd.xlane.f32.xlu1 %v7374_v16 }
0x10d7   :  { %v4185_v46 = vcombine.low %v4129_v35, %v4145_v13  ;;  %v4186_v60 = vcombine.high %v4129_v35, %v4145_v13  ;;  %v4201_v20 = vcombine.low %v4136_v51, %v4152_v38  ;;  %v4202_v44 = vcombine.high %v4136_v51, %v4152_v38  ;;  %4057 = vadd.xlane.f32.xlu0 %v7382_v9 }
0x10d9   :  { %v4193_v49 = vrot.slane %v4185_v46, %v8137_v6  ;;  %v4200_v45 = vrot.slane %v4186_v60, %v8137_v6  ;;  %v4209_v47 = vrot.slane %v4201_v20, %v8137_v6  ;;  %v4216_v23 = vrot.slane %v4202_v44, %v8137_v6  ;;  %4063 = vadd.xlane.f32.xlu1 %v7385_v59 }
0x10db   :  { %v4217_v48 = vcombine.low %v4161_v36, %v4193_v49  ;;  %v4218_v2 = vcombine.high %v4161_v36, %v4193_v49  ;;  %v4219_v34 = vcombine.low %v4168_v0, %v4200_v45  ;;  %v4220_v15 = vcombine.high %v4168_v0, %v4200_v45  ;;  %4061 = vadd.xlane.f32.xlu0 %v4820_v4 }
0x10dc   :  { %v4221_v5 = vcombine.low %v4177_v31, %v4209_v47  ;;  %v4222_v56 = vcombine.high %v4177_v31, %v4209_v47  ;;  %v4223_v30 = vcombine.low %v4184_v54, %v4216_v23  ;;  %v4224_v63 = vcombine.high %v4184_v54, %v4216_v23 }
0x10dd   :  { %4225 = vst [vmem:[%s7475_s11] sm:$0xff] %v4217_v48  ;;  %4226 = vst [vmem:[%s7475_s11 + $0x8] sm:$0xff] %v4218_v2  ;;  %4067 = vadd.xlane.f32.xlu1 %v4822_v39 }
0x10de   :  { %4227 = vst [vmem:[%s7475_s11 + $0x10] sm:$0xff] %v4219_v34  ;;  %4228 = vst [vmem:[%s7475_s11 + $0x18] sm:$0xff] %v4220_v15 }
0x10df   :  { %4229 = vst [vmem:[%s7475_s11 + $0x20] sm:$0xff] %v4221_v5  ;;  %4230 = vst [vmem:[%s7475_s11 + $0x28] sm:$0xff] %v4222_v56  ;;  %4065 = vadd.xlane.f32.xlu0 %v4824_v43 }
0x10e0   :  { %4231 = vst [vmem:[%s7475_s11 + $0x30] sm:$0xff] %v4223_v30  ;;  %4232 = vst [vmem:[%s7475_s11 + $0x38] sm:$0xff] %v4224_v63 }
0x115a   :  { %v4032_v61 = vpop.xlane.xlu1 %4031 }
0x115b   :  { %v4040_v22 = vsub.f32 %v7363_v11, %v4032_v61 }
0x115c   :  { %v4030_v62 = vpop.xlane.xlu0 %4029 }
0x115d   :  { %v4055_v1 = vmul.f32 1.442695, %v4040_v22  ;;  %v4039_v12 = vsub.f32 %v4009_v19, %v4030_v62 }
0x115e   :  { %v4060_v26 = vpop.xlane.xlu1 %4059 }
0x115f   :  { %4825 = vpow2.f32 %v4055_v1  ;;  %v4053_v8 = vmul.f32 1.442695, %v4039_v12 }
0x1160   :  { %v4058_v10 = vpop.xlane.xlu0 %4057 }
0x1161   :  { %4827 = vpow2.f32 %v4053_v8 }
0x1162   :  { %v4064_v52 = vpop.xlane.xlu1 %4063 }
0x1164   :  { %v4062_v50 = vpop.xlane.xlu0 %4061 }
0x1165   :  { %4829 = vrcp.f32 %v4062_v50 }
0x1166   :  { %4831 = vrcp.f32 %v4058_v10  ;;  %v4068_v55 = vpop.xlane.xlu1 %4067 }
0x1167   :  { %4833 = vrcp.f32 %v4064_v52 }
0x1168   :  { %4835 = vrcp.f32 %v4060_v26  ;;  %v4066_v58 = vpop.xlane.xlu0 %4065 }
0x1169   :  { %4837 = vrcp.f32 %v4068_v55 }
0x116a   :  { %4839 = vrcp.f32 %v4066_v58 }
0x116c   :  { %v4826_v40 = vpop.eup %4825 }
0x116d   :  { %4071 = vadd.xlane.f32.xlu1 %v4826_v40 }
0x116e   :  { %v4828_v27 = vpop.eup %4827 }
0x116f   :  { %4069 = vadd.xlane.f32.xlu0 %v4828_v27 }
0x1172   :  { %v4830_v11 = vpop.eup %4829 }
0x1173   :  { %v4832_v32 = vpop.eup %4831  ;;  %v4078_v37 = vmul.f32 %v4830_v11, %v4820_v4 }
0x1174   :  { %v4834_v21 = vpop.eup %4833  ;;  %v4074_v17 = vmul.f32 %v4832_v32, %v7382_v9 }
0x1175   :  { %v4836_v25 = vpop.eup %4835  ;;  %v4080_v19 = vmul.f32 %v4834_v21, %v7385_v59 }
0x1176   :  { %v4838_v28 = vpop.eup %4837  ;;  %v4076_v41 = vmul.f32 %v4836_v25, %v7374_v16  ;;  %v4233_v42 = vcombine.low %v4074_v17, %v4078_v37  ;;  %v4234_v14 = vcombine.high %v4074_v17, %v4078_v37 }
0x1177   :  { %v4840_v3 = vpop.eup %4839  ;;  %v4084_v13 = vmul.f32 %v4838_v28, %v4822_v39 }
0x1178   :  { %v4249_v24 = vcombine.low %v4076_v41, %v4080_v19  ;;  %v4250_v51 = vcombine.high %v4076_v41, %v4080_v19  ;;  %v4241_v33 = vrot.slane %v4233_v42, %v8136_v29  ;;  %v4082_v53 = vmul.f32 %v4840_v3, %v4824_v43 }
0x1179   :  { %v4248_v44 = vrot.slane %v4234_v14, %v8136_v29 }
0x117a   :  { %v4257_v20 = vrot.slane %v4249_v24, %v8136_v29  ;;  %v4264_v36 = vrot.slane %v4250_v51, %v8136_v29 }
0x117c   :  { %v4297_v0 = vcombine.low %v4241_v33, %v4257_v20  ;;  %v4298_v49 = vcombine.high %v4241_v33, %v4257_v20  ;;  %v4313_v31 = vcombine.low %v4248_v44, %v4264_v36  ;;  %v4314_v54 = vcombine.high %v4248_v44, %v4264_v36 }
0x117e   :  { %v4305_v39 = vrot.slane %v4297_v0, %v8137_v6  ;;  %v4312_v5 = vrot.slane %v4298_v49, %v8137_v6  ;;  %v4328_v61 = vrot.slane %v4314_v54, %v8137_v6 }
0x11f6   :  { %v4072_v57 = vpop.xlane.xlu1 %4071 }
0x11f7   :  { %4841 = vrcp.f32 %v4072_v57 }
0x11f8   :  { %v4070_v7 = vpop.xlane.xlu0 %4069 }
0x11f9   :  { %4843 = vrcp.f32 %v4070_v7 }
0x1204   :  { %v4842_v18 = vpop.eup %4841 }
0x1205   :  { %v4088_v38 = vmul.f32 %v4842_v18, %v4826_v40 }
0x1206   :  { %v4844_v35 = vpop.eup %4843 }
0x1207   :  { %v4281_v46 = vcombine.low %v4084_v13, %v4088_v38  ;;  %v4282_v60 = vcombine.high %v4084_v13, %v4088_v38  ;;  %v4086_v9 = vmul.f32 %v4844_v35, %v4828_v27 }
0x1209   :  { %v4265_v16 = vcombine.low %v4082_v53, %v4086_v9  ;;  %v4266_v59 = vcombine.high %v4082_v53, %v4086_v9  ;;  %v4289_v45 = vrot.slane %v4281_v46, %v8136_v29  ;;  %v4296_v47 = vrot.slane %v4282_v60, %v8136_v29 }
0x120b   :  { %v4273_v23 = vrot.slane %v4265_v16, %v8136_v29  ;;  %v4280_v4 = vrot.slane %v4266_v59, %v8136_v29  ;;  %v4321_v29 = vrot.slane %v4313_v31, %v8137_v6 }
0x120d   :  { %v4329_v48 = vcombine.low %v4273_v23, %v4289_v45  ;;  %v4330_v2 = vcombine.high %v4273_v23, %v4289_v45  ;;  %v4345_v34 = vcombine.low %v4280_v4, %v4296_v47  ;;  %v4346_v15 = vcombine.high %v4280_v4, %v4296_v47 }
0x120f   :  { %v4337_v56 = vrot.slane %v4329_v48, %v8137_v6  ;;  %v4344_v30 = vrot.slane %v4330_v2, %v8137_v6  ;;  %v4353_v63 = vrot.slane %v4345_v34, %v8137_v6  ;;  %v4360_v43 = vrot.slane %v4346_v15, %v8137_v6 }
0x1211   :  { %v4361_v22 = vcombine.low %v4305_v39, %v4337_v56  ;;  %v4362_v62 = vcombine.high %v4305_v39, %v4337_v56  ;;  %v4363_v1 = vcombine.low %v4312_v5, %v4344_v30  ;;  %v4364_v12 = vcombine.high %v4312_v5, %v4344_v30 }
0x1212   :  { %v4365_v8 = vcombine.low %v4321_v29, %v4353_v63  ;;  %v4366_v40 = vcombine.high %v4321_v29, %v4353_v63  ;;  %v4367_v27 = vcombine.low %v4328_v61, %v4360_v43  ;;  %v4368_v10 = vcombine.high %v4328_v61, %v4360_v43 }
0x1213   :  { %4369 = vst [vmem:[%s7476_s12] sm:$0xff] %v4361_v22  ;;  %4370 = vst [vmem:[%s7476_s12 + $0x8] sm:$0xff] %v4362_v62 }
0x1214   :  { %4371 = vst [vmem:[%s7476_s12 + $0x10] sm:$0xff] %v4363_v1  ;;  %4372 = vst [vmem:[%s7476_s12 + $0x18] sm:$0xff] %v4364_v12 }
0x1215   :  { %4373 = vst [vmem:[%s7476_s12 + $0x20] sm:$0xff] %v4365_v8  ;;  %4374 = vst [vmem:[%s7476_s12 + $0x28] sm:$0xff] %v4366_v40 }
0x1216   :  { %4375 = vst [vmem:[%s7476_s12 + $0x30] sm:$0xff] %v4367_v27  ;;  %4376 = vst [vmem:[%s7476_s12 + $0x38] sm:$0xff] %v4368_v10 }
0x1217   :  { %4393 = vsyncpa [#allocation5], 1 }
0x1218   :  { %4394 = vsyncpa [#allocation7], 1 }
0x1219   :  { %4395 = vsyncpa [#allocation10], 1 }

</bundles_post_ra>
